<compile_context>
chip_gen: v6e
topology: v6e:2x2x1
jax: 0.10.0
libtpu: 0.0.40
codegen_flags: <defaults>
</compile_context>

<pallas_src>
import functools

import jax
import jax.numpy as jnp
from jax import lax
from jax.experimental import pallas as pl
from jax.experimental.pallas import tpu as pltpu

INPUT_SIZE = 8       # len(features)
HIDDEN_SIZE = 128
NUM_LAYERS = 2
OUTPUT_SIZE = 4      # len(targets)
FC1_SIZE = 64
BN_EPS = 1e-5
LANE = 128           # lane-dense slab width


def lstm_model_kernel(
    # inputs
    xflat_ref,        # (T*B, INPUT_SIZE) f32  time-major, batch-padded, flat
    wih0_ref,         # (INPUT_SIZE, 4H)  bf16
    whh0_ref,         # (H, 4H)           bf16
    w1_ref,           # (2H, 4H)          bf16  == vstack([wih1, whh1])
    vec_ref,          # (1, 1792) f32  packed [b0|b1|gamma|beta|mean|var|fc1b|fc2b]
    fc1w_ref,         # (H, LANE)  f32  (zero-padded cols >= FC1_SIZE)
    fc2w_ref,         # (LANE, LANE) f32 (zero-padded rows/cols)
    # outputs
    out_ref,          # (B, LANE) f32
    # scratch
    xp0_ref,          # (T*B, 4H) f32 — hoisted layer-0 input projection
    *,
    seq_len,
    batch,
):
    T, B, H = seq_len, batch, HIDDEN_SIZE
    G = 4 * H
    bf16, f32 = jnp.bfloat16, jnp.float32

    # ---- unpack the packed bias/BN slab (all offsets are multiples of 128) --
    b0 = vec_ref[:, 0:G]
    b1 = vec_ref[:, G:2 * G]
    off = 2 * G
    gamma = vec_ref[:, off + 0 * H: off + 1 * H]
    beta = vec_ref[:, off + 1 * H: off + 2 * H]
    mean = vec_ref[:, off + 2 * H: off + 3 * H]
    var = vec_ref[:, off + 3 * H: off + 4 * H]
    fc1b = vec_ref[:, off + 4 * H: off + 5 * H]
    fc2b = vec_ref[:, off + 5 * H: off + 6 * H]

    def sigmoid(x):
        # single tanh EUP push per vreg (vs possible exp + reciprocal)
        return 0.5 * jnp.tanh(0.5 * x) + 0.5

    def gates_to_state(gates, c):
        # PyTorch gate order: i, f, g, o  (128-lane aligned slices)
        i = sigmoid(gates[:, 0 * H:1 * H])
        f = sigmoid(gates[:, 1 * H:2 * H])
        g = jnp.tanh(gates[:, 2 * H:3 * H])
        o = sigmoid(gates[:, 3 * H:4 * H])
        c_new = f * c + i * g                      # cell state stays f32
        h_new = (o * jnp.tanh(c_new)).astype(bf16)  # recurrent state in bf16
        return h_new, c_new

    # ---- hoisted layer-0 input projection (bias folded) -> VMEM scratch ----
    xp0_ref[...] = (
        jnp.dot(xflat_ref[...].astype(bf16), wih0_ref[...],
                preferred_element_type=f32) + b0
    )

    h0 = jnp.zeros((B, H), bf16)
    c0 = jnp.zeros((B, H), f32)
    h1 = jnp.zeros((B, H), bf16)
    c1 = jnp.zeros((B, H), f32)

    # ---- interleaved two-layer recurrence (critical path ~T+1 cell steps) ---
    # layer-1 step t and layer-0 step t+1 are independent; fully unrolled so
    # the LLO scheduler overlaps them.  Weight refs are re-loaded per step to
    # keep SSA live ranges small (spill avoidance).
    for t in range(T):                               # T is small & static
        g0 = xp0_ref[t * B:(t + 1) * B, :] + jnp.dot(
            h0, whh0_ref[...], preferred_element_type=f32)
        h0, c0 = gates_to_state(g0, c0)

        # fused input+hidden matmul for layer 1: K = 2H = 256
        xh = jnp.concatenate([h0, h1], axis=1)       # (B, 2H) bf16
        g1 = jnp.dot(xh, w1_ref[...], preferred_element_type=f32) + b1
        h1, c1 = gates_to_state(g1, c1)

    # dropout(p=0.2) between LSTM layers is identity in eval mode.

    # ---- head: out[:, -1, :] == h1 -> BN(eval) -> dropout(id) -> fc1+ReLU -> fc2
    h1f = h1.astype(f32)
    inv_std = lax.rsqrt(var + BN_EPS)
    hbn = (h1f - mean) * (inv_std * gamma) + beta

    z1 = jnp.maximum(
        jnp.dot(hbn, fc1w_ref[...], preferred_element_type=f32) + fc1b, 0.0)
    z2 = jnp.dot(z1, fc2w_ref[...], preferred_element_type=f32) + fc2b
    out_ref[...] = z2.astype(out_ref.dtype)          # lane-dense store


def _round_up(n, m):
    return ((n + m - 1) // m) * m


@jax.jit
def lstm_model_forward(x_btf, params):
    """x_btf: (B, T, INPUT_SIZE) batch-first, like the PyTorch module."""
    B, T, F = x_btf.shape
    H = HIDDEN_SIZE
    G = 4 * H
    B_pad = _round_up(max(B, 8), 8)        # at least one full sublane group

    # Layout plumbing (cheap XLA): time-major, batch-padded, flattened so the
    # layer-0 input projection is a single (T*B, F) matmul inside the kernel.
    x_tbf = jnp.transpose(x_btf, (1, 0, 2))
    x_tbf = jnp.pad(x_tbf, ((0, 0), (0, B_pad - B), (0, 0)))
    xflat = x_tbf.reshape(T * B_pad, F)

    bf16 = jnp.bfloat16
    wih0 = params["wih0"].astype(bf16)
    whh0 = params["whh0"].astype(bf16)
    # Pre-stacked layer-1 weight for the fused K=2H matmul.
    w1 = jnp.concatenate([params["wih1"], params["whh1"]], axis=0).astype(bf16)

    # Lane-dense padded FC weights (unmasked vector ops in the head).
    fc1w = jnp.pad(params["fc1_w"], ((0, 0), (0, LANE - FC1_SIZE)))
    fc2w = jnp.pad(params["fc2_w"],
                   ((0, LANE - FC1_SIZE), (0, LANE - OUTPUT_SIZE)))
    fc1b = jnp.pad(params["fc1_b"], ((0, 0), (0, LANE - FC1_SIZE)))
    fc2b = jnp.pad(params["fc2_b"], ((0, 0), (0, LANE - OUTPUT_SIZE)))

    # One packed (1, 1792) bias/BN slab -> one DMA instead of eight.
    vec = jnp.concatenate(
        [params["b0"], params["b1"],
         params["bn_gamma"], params["bn_beta"],
         params["bn_mean"], params["bn_var"],
         fc1b, fc2b], axis=1).astype(jnp.float32)

    inputs = (xflat, wih0, whh0, w1, vec, fc1w, fc2w)

    flops = (
        2 * T * B_pad * F * G            # layer-0 input projection (hoisted)
        + 2 * T * B_pad * H * G          # layer-0 recurrence
        + 2 * T * B_pad * (2 * H) * G    # layer-1 fused recurrence
        + 2 * B_pad * H * LANE           # fc1 (padded)
        + 2 * B_pad * LANE * LANE        # fc2 (padded)
    )
    transcendentals = 10 * T * B_pad * H   # 5 tanh-class ops per cell, 2 cells
    bytes_accessed = (
        sum(int(a.size) * a.dtype.itemsize for a in inputs) + B_pad * LANE * 4
    )

    vmem = pl.BlockSpec(memory_space=pltpu.MemorySpace.VMEM)
    out = pl.pallas_call(
        functools.partial(lstm_model_kernel, seq_len=T, batch=B_pad),
        out_shape=jax.ShapeDtypeStruct((B_pad, LANE), jnp.float32),
        in_specs=[vmem] * len(inputs),
        out_specs=vmem,
        scratch_shapes=[pltpu.VMEM((T * B_pad, G), jnp.float32)],
        cost_estimate=pl.CostEstimate(
            flops=flops,
            transcendentals=transcendentals,
            bytes_accessed=bytes_accessed,
        ),
    )(*inputs)
    return out[:B, :OUTPUT_SIZE]


def lstm_model_reference(x_btf, params):
    """Pure-JAX f32 reference matching the PyTorch module (eval mode)."""
    B, T, F = x_btf.shape
    H = HIDDEN_SIZE

    def cell(x_t, h, c, wih, whh, b):
        gates = x_t @ wih + h @ whh + b
        i = jax.nn.sigmoid(gates[:, 0 * H:1 * H])
        f = jax.nn.sigmoid(gates[:, 1 * H:2 * H])
        g = jnp.tanh(gates[:, 2 * H:3 * H])
        o = jax.nn.sigmoid(gates[:, 3 * H:4 * H])
        c = f * c + i * g
        h = o * jnp.tanh(c)
        return h, c

    h0 = c0 = h1 = c1 = jnp.zeros((B, H), jnp.float32)
    for t in range(T):
        x_t = x_btf[:, t, :]
        h0, c0 = cell(x_t, h0, c0, params["wih0"], params["whh0"], params["b0"])
        h1, c1 = cell(h0, h1, c1, params["wih1"], params["whh1"], params["b1"])
    hbn = (h1 - params["bn_mean"]) / jnp.sqrt(params["bn_var"] + BN_EPS)
    hbn = hbn * params["bn_gamma"] + params["bn_beta"]
    z1 = jnp.maximum(hbn @ params["fc1_w"] + params["fc1_b"], 0.0)
    return z1 @ params["fc2_w"] + params["fc2_b"]


def init_params(key):
    """Deterministic init mimicking PyTorch's uniform(-1/sqrt(H), 1/sqrt(H))."""
    H = HIDDEN_SIZE
    bound_lstm = 1.0 / jnp.sqrt(jnp.float32(H))
    bound_fc1 = 1.0 / jnp.sqrt(jnp.float32(H))
    bound_fc2 = 1.0 / jnp.sqrt(jnp.float32(FC1_SIZE))
    ks = jax.random.split(key, 16)

    def u(k, shape, bound):
        return jax.random.uniform(k, shape, jnp.float32, -bound, bound)

    return {
        # LSTM layer 0 (weights stored pre-transposed: (in, 4H))
        "wih0": u(ks[0], (INPUT_SIZE, 4 * H), bound_lstm),
        "whh0": u(ks[1], (H, 4 * H), bound_lstm),
        "b0": u(ks[2], (1, 4 * H), bound_lstm) + u(ks[3], (1, 4 * H), bound_lstm),
        # LSTM layer 1
        "wih1": u(ks[4], (H, 4 * H), bound_lstm),
        "whh1": u(ks[5], (H, 4 * H), bound_lstm),
        "b1": u(ks[6], (1, 4 * H), bound_lstm) + u(ks[7], (1, 4 * H), bound_lstm),
        # BatchNorm1d(hidden) — fresh module stats: gamma=1, beta=0, mean=0, var=1
        "bn_gamma": jnp.ones((1, H), jnp.float32),
        "bn_beta": jnp.zeros((1, H), jnp.float32),
        "bn_mean": jnp.zeros((1, H), jnp.float32),
        "bn_var": jnp.ones((1, H), jnp.float32),
        # fc1: Linear(H, 64)   (stored as (H, 64))
        "fc1_w": u(ks[8], (H, FC1_SIZE), bound_fc1),
        "fc1_b": u(ks[9], (1, FC1_SIZE), bound_fc1),
        # fc2: Linear(64, OUTPUT_SIZE)
        "fc2_w": u(ks[10], (FC1_SIZE, OUTPUT_SIZE), bound_fc2),
        "fc2_b": u(ks[11], (1, OUTPUT_SIZE), bound_fc2),
    }


if __name__ == "__main__":
    key = jax.random.PRNGKey(0)
    k_param, k_x = jax.random.split(key)

    B, T = 2, 8
    x = jax.random.normal(k_x, (B, T, INPUT_SIZE), jnp.float32)
    params = init_params(k_param)

    out = jax.block_until_ready(lstm_model_forward(x, params))
    assert out.shape == (B, OUTPUT_SIZE), out.shape
    assert bool(jnp.all(jnp.isfinite(out)))

    # bf16 MXU inputs / bf16 recurrent hidden state with f32 accumulation ->
    # small deviation vs the f32 reference.
    ref = jax.block_until_ready(lstm_model_reference(x, params))
    max_err = float(jnp.max(jnp.abs(out - ref)))
    assert max_err < 1e-1, f"kernel/reference mismatch: max_err={max_err}"

    print("KERNEL_OK")
</pallas_src>

<mosaic_0001>
module attributes {stable_mosaic.version = 11 : i64} {
  func.func @lstm_model_kernel(%arg0: memref<64x8xf32, #tpu.memory_space<vmem>>, %arg1: memref<8x512xbf16, #tpu.memory_space<vmem>>, %arg2: memref<128x512xbf16, #tpu.memory_space<vmem>>, %arg3: memref<256x512xbf16, #tpu.memory_space<vmem>>, %arg4: memref<1x1792xf32, #tpu.memory_space<vmem>>, %arg5: memref<128x128xf32, #tpu.memory_space<vmem>>, %arg6: memref<128x128xf32, #tpu.memory_space<vmem>>, %arg7: memref<8x128xf32, #tpu.memory_space<vmem>>, %arg8: memref<64x512xf32, #tpu.memory_space<vmem>>) attributes {dimension_semantics = [], scalar_prefetch = 0 : i64, scratch_operands = 1 : i64, tpu.core_type = #tpu.core_type<tc>} {
    %c0 = arith.constant 0 : index
    %c0_0 = arith.constant 0 : index
    %0 = vector.load %arg4[%c0, %c0_0] : memref<1x1792xf32, #tpu.memory_space<vmem>>, vector<1x512xf32>
    %c0_1 = arith.constant 0 : index
    %c512 = arith.constant 512 : index
    %1 = vector.load %arg4[%c0_1, %c512] : memref<1x1792xf32, #tpu.memory_space<vmem>>, vector<1x512xf32>
    %c0_2 = arith.constant 0 : index
    %c1024 = arith.constant 1024 : index
    %2 = vector.load %arg4[%c0_2, %c1024] : memref<1x1792xf32, #tpu.memory_space<vmem>>, vector<1x128xf32>
    %c0_3 = arith.constant 0 : index
    %c1152 = arith.constant 1152 : index
    %3 = vector.load %arg4[%c0_3, %c1152] : memref<1x1792xf32, #tpu.memory_space<vmem>>, vector<1x128xf32>
    %c0_4 = arith.constant 0 : index
    %c1280 = arith.constant 1280 : index
    %4 = vector.load %arg4[%c0_4, %c1280] : memref<1x1792xf32, #tpu.memory_space<vmem>>, vector<1x128xf32>
    %c0_5 = arith.constant 0 : index
    %c1408 = arith.constant 1408 : index
    %5 = vector.load %arg4[%c0_5, %c1408] : memref<1x1792xf32, #tpu.memory_space<vmem>>, vector<1x128xf32>
    %c0_6 = arith.constant 0 : index
    %c1536 = arith.constant 1536 : index
    %6 = vector.load %arg4[%c0_6, %c1536] : memref<1x1792xf32, #tpu.memory_space<vmem>>, vector<1x128xf32>
    %c0_7 = arith.constant 0 : index
    %c1664 = arith.constant 1664 : index
    %7 = vector.load %arg4[%c0_7, %c1664] : memref<1x1792xf32, #tpu.memory_space<vmem>>, vector<1x128xf32>
    %c0_8 = arith.constant 0 : index
    %c0_9 = arith.constant 0 : index
    %8 = vector.load %arg0[%c0_8, %c0_9] : memref<64x8xf32, #tpu.memory_space<vmem>>, vector<64x8xf32>
    %9 = arith.truncf %8 : vector<64x8xf32> to vector<64x8xbf16>
    %c0_10 = arith.constant 0 : index
    %c0_11 = arith.constant 0 : index
    %10 = vector.load %arg1[%c0_10, %c0_11] : memref<8x512xbf16, #tpu.memory_space<vmem>>, vector<8x512xbf16>
    %cst = arith.constant dense<0.000000e+00> : vector<64x512xf32>
    %11 = tpu.matmul %9, %10, %cst {dimension_numbers = #tpu.dot_dimension_numbers<[1], [0], [0], [1], [0, 0, 1, 1], [], []>} : vector<64x8xbf16>, vector<8x512xbf16>, vector<64x512xf32> -> vector<64x512xf32>
    %12 = vector.broadcast %0 : vector<1x512xf32> to vector<64x512xf32>
    %13 = arith.addf %11, %12 : vector<64x512xf32>
    %c0_12 = arith.constant 0 : index
    %c0_13 = arith.constant 0 : index
    %14 = vector.load %arg8[%c0_12, %c0_13] : memref<64x512xf32, #tpu.memory_space<vmem>>, vector<64x512xf32>
    tpu.vector_store %arg8[%c0_12, %c0_13], %13 {strides = array<i32>} : memref<64x512xf32, #tpu.memory_space<vmem>>, vector<64x512xf32>,
    %cst_14 = arith.constant 0.000000e+00 : bf16
    %15 = vector.broadcast %cst_14 : bf16 to vector<8x128xbf16>
    %cst_15 = arith.constant 0.000000e+00 : f32
    %16 = vector.broadcast %cst_15 : f32 to vector<8x128xf32>
    %cst_16 = arith.constant 0.000000e+00 : bf16
    %17 = vector.broadcast %cst_16 : bf16 to vector<8x128xbf16>
    %cst_17 = arith.constant 0.000000e+00 : f32
    %18 = vector.broadcast %cst_17 : f32 to vector<8x128xf32>
    %c0_18 = arith.constant 0 : index
    %c0_19 = arith.constant 0 : index
    %19 = vector.load %arg8[%c0_18, %c0_19] : memref<64x512xf32, #tpu.memory_space<vmem>>, vector<8x512xf32>
    %c0_20 = arith.constant 0 : index
    %c0_21 = arith.constant 0 : index
    %20 = vector.load %arg2[%c0_20, %c0_21] : memref<128x512xbf16, #tpu.memory_space<vmem>>, vector<128x512xbf16>
    %cst_22 = arith.constant dense<0.000000e+00> : vector<8x512xf32>
    %21 = tpu.matmul %15, %20, %cst_22 {dimension_numbers = #tpu.dot_dimension_numbers<[1], [0], [0], [1], [0, 0, 1, 1], [], []>} : vector<8x128xbf16>, vector<128x512xbf16>, vector<8x512xf32> -> vector<8x512xf32>
    %22 = arith.addf %19, %21 : vector<8x512xf32>
    %23 = vector.extract_strided_slice %22 {offsets = [0, 0], sizes = [8, 128], strides = [1, 1]} : vector<8x512xf32> to vector<8x128xf32>
    %cst_23 = arith.constant 5.000000e-01 : f32
    %24 = vector.broadcast %cst_23 : f32 to vector<8x128xf32>
    %25 = arith.mulf %24, %23 : vector<8x128xf32>
    %26 = math.tanh %25 : vector<8x128xf32>
    %cst_24 = arith.constant 5.000000e-01 : f32
    %27 = vector.broadcast %cst_24 : f32 to vector<8x128xf32>
    %28 = arith.mulf %27, %26 : vector<8x128xf32>
    %cst_25 = arith.constant 5.000000e-01 : f32
    %29 = vector.broadcast %cst_25 : f32 to vector<8x128xf32>
    %30 = arith.addf %28, %29 : vector<8x128xf32>
    %31 = vector.extract_strided_slice %22 {offsets = [0, 128], sizes = [8, 128], strides = [1, 1]} : vector<8x512xf32> to vector<8x128xf32>
    %cst_26 = arith.constant 5.000000e-01 : f32
    %32 = vector.broadcast %cst_26 : f32 to vector<8x128xf32>
    %33 = arith.mulf %32, %31 : vector<8x128xf32>
    %34 = math.tanh %33 : vector<8x128xf32>
    %cst_27 = arith.constant 5.000000e-01 : f32
    %35 = vector.broadcast %cst_27 : f32 to vector<8x128xf32>
    %36 = arith.mulf %35, %34 : vector<8x128xf32>
    %cst_28 = arith.constant 5.000000e-01 : f32
    %37 = vector.broadcast %cst_28 : f32 to vector<8x128xf32>
    %38 = arith.addf %36, %37 : vector<8x128xf32>
    %39 = vector.extract_strided_slice %22 {offsets = [0, 256], sizes = [8, 128], strides = [1, 1]} : vector<8x512xf32> to vector<8x128xf32>
    %40 = math.tanh %39 : vector<8x128xf32>
    %41 = vector.extract_strided_slice %22 {offsets = [0, 384], sizes = [8, 128], strides = [1, 1]} : vector<8x512xf32> to vector<8x128xf32>
    %cst_29 = arith.constant 5.000000e-01 : f32
    %42 = vector.broadcast %cst_29 : f32 to vector<8x128xf32>
    %43 = arith.mulf %42, %41 : vector<8x128xf32>
    %44 = math.tanh %43 : vector<8x128xf32>
    %cst_30 = arith.constant 5.000000e-01 : f32
    %45 = vector.broadcast %cst_30 : f32 to vector<8x128xf32>
    %46 = arith.mulf %45, %44 : vector<8x128xf32>
    %cst_31 = arith.constant 5.000000e-01 : f32
    %47 = vector.broadcast %cst_31 : f32 to vector<8x128xf32>
    %48 = arith.addf %46, %47 : vector<8x128xf32>
    %49 = arith.mulf %38, %16 : vector<8x128xf32>
    %50 = arith.mulf %30, %40 : vector<8x128xf32>
    %51 = arith.addf %49, %50 : vector<8x128xf32>
    %52 = math.tanh %51 : vector<8x128xf32>
    %53 = arith.mulf %48, %52 : vector<8x128xf32>
    %54 = arith.truncf %53 : vector<8x128xf32> to vector<8x128xbf16>
    %55 = tpu.concatenate %54, %17 in 1 : vector<8x128xbf16>, vector<8x128xbf16> -> vector<8x256xbf16>
    %c0_32 = arith.constant 0 : index
    %c0_33 = arith.constant 0 : index
    %56 = vector.load %arg3[%c0_32, %c0_33] : memref<256x512xbf16, #tpu.memory_space<vmem>>, vector<256x512xbf16>
    %cst_34 = arith.constant dense<0.000000e+00> : vector<8x512xf32>
    %57 = tpu.matmul %55, %56, %cst_34 {dimension_numbers = #tpu.dot_dimension_numbers<[1], [0], [0], [1], [0, 0, 1, 1], [], []>} : vector<8x256xbf16>, vector<256x512xbf16>, vector<8x512xf32> -> vector<8x512xf32>
    %58 = vector.broadcast %1 : vector<1x512xf32> to vector<8x512xf32>
    %59 = arith.addf %57, %58 : vector<8x512xf32>
    %60 = vector.extract_strided_slice %59 {offsets = [0, 0], sizes = [8, 128], strides = [1, 1]} : vector<8x512xf32> to vector<8x128xf32>
    %cst_35 = arith.constant 5.000000e-01 : f32
    %61 = vector.broadcast %cst_35 : f32 to vector<8x128xf32>
    %62 = arith.mulf %61, %60 : vector<8x128xf32>
    %63 = math.tanh %62 : vector<8x128xf32>
    %cst_36 = arith.constant 5.000000e-01 : f32
    %64 = vector.broadcast %cst_36 : f32 to vector<8x128xf32>
    %65 = arith.mulf %64, %63 : vector<8x128xf32>
    %cst_37 = arith.constant 5.000000e-01 : f32
    %66 = vector.broadcast %cst_37 : f32 to vector<8x128xf32>
    %67 = arith.addf %65, %66 : vector<8x128xf32>
    %68 = vector.extract_strided_slice %59 {offsets = [0, 128], sizes = [8, 128], strides = [1, 1]} : vector<8x512xf32> to vector<8x128xf32>
    %cst_38 = arith.constant 5.000000e-01 : f32
    %69 = vector.broadcast %cst_38 : f32 to vector<8x128xf32>
    %70 = arith.mulf %69, %68 : vector<8x128xf32>
    %71 = math.tanh %70 : vector<8x128xf32>
    %cst_39 = arith.constant 5.000000e-01 : f32
    %72 = vector.broadcast %cst_39 : f32 to vector<8x128xf32>
    %73 = arith.mulf %72, %71 : vector<8x128xf32>
    %cst_40 = arith.constant 5.000000e-01 : f32
    %74 = vector.broadcast %cst_40 : f32 to vector<8x128xf32>
    %75 = arith.addf %73, %74 : vector<8x128xf32>
    %76 = vector.extract_strided_slice %59 {offsets = [0, 256], sizes = [8, 128], strides = [1, 1]} : vector<8x512xf32> to vector<8x128xf32>
    %77 = math.tanh %76 : vector<8x128xf32>
    %78 = vector.extract_strided_slice %59 {offsets = [0, 384], sizes = [8, 128], strides = [1, 1]} : vector<8x512xf32> to vector<8x128xf32>
    %cst_41 = arith.constant 5.000000e-01 : f32
    %79 = vector.broadcast %cst_41 : f32 to vector<8x128xf32>
    %80 = arith.mulf %79, %78 : vector<8x128xf32>
    %81 = math.tanh %80 : vector<8x128xf32>
    %cst_42 = arith.constant 5.000000e-01 : f32
    %82 = vector.broadcast %cst_42 : f32 to vector<8x128xf32>
    %83 = arith.mulf %82, %81 : vector<8x128xf32>
    %cst_43 = arith.constant 5.000000e-01 : f32
    %84 = vector.broadcast %cst_43 : f32 to vector<8x128xf32>
    %85 = arith.addf %83, %84 : vector<8x128xf32>
    %86 = arith.mulf %75, %18 : vector<8x128xf32>
    %87 = arith.mulf %67, %77 : vector<8x128xf32>
    %88 = arith.addf %86, %87 : vector<8x128xf32>
    %89 = math.tanh %88 : vector<8x128xf32>
    %90 = arith.mulf %85, %89 : vector<8x128xf32>
    %91 = arith.truncf %90 : vector<8x128xf32> to vector<8x128xbf16>
    %c8 = arith.constant 8 : index
    %c0_44 = arith.constant 0 : index
    %92 = vector.load %arg8[%c8, %c0_44] : memref<64x512xf32, #tpu.memory_space<vmem>>, vector<8x512xf32>
    %c0_45 = arith.constant 0 : index
    %c0_46 = arith.constant 0 : index
    %93 = vector.load %arg2[%c0_45, %c0_46] : memref<128x512xbf16, #tpu.memory_space<vmem>>, vector<128x512xbf16>
    %cst_47 = arith.constant dense<0.000000e+00> : vector<8x512xf32>
    %94 = tpu.matmul %54, %93, %cst_47 {dimension_numbers = #tpu.dot_dimension_numbers<[1], [0], [0], [1], [0, 0, 1, 1], [], []>} : vector<8x128xbf16>, vector<128x512xbf16>, vector<8x512xf32> -> vector<8x512xf32>
    %95 = arith.addf %92, %94 : vector<8x512xf32>
    %96 = vector.extract_strided_slice %95 {offsets = [0, 0], sizes = [8, 128], strides = [1, 1]} : vector<8x512xf32> to vector<8x128xf32>
    %cst_48 = arith.constant 5.000000e-01 : f32
    %97 = vector.broadcast %cst_48 : f32 to vector<8x128xf32>
    %98 = arith.mulf %97, %96 : vector<8x128xf32>
    %99 = math.tanh %98 : vector<8x128xf32>
    %cst_49 = arith.constant 5.000000e-01 : f32
    %100 = vector.broadcast %cst_49 : f32 to vector<8x128xf32>
    %101 = arith.mulf %100, %99 : vector<8x128xf32>
    %cst_50 = arith.constant 5.000000e-01 : f32
    %102 = vector.broadcast %cst_50 : f32 to vector<8x128xf32>
    %103 = arith.addf %101, %102 : vector<8x128xf32>
    %104 = vector.extract_strided_slice %95 {offsets = [0, 128], sizes = [8, 128], strides = [1, 1]} : vector<8x512xf32> to vector<8x128xf32>
    %cst_51 = arith.constant 5.000000e-01 : f32
    %105 = vector.broadcast %cst_51 : f32 to vector<8x128xf32>
    %106 = arith.mulf %105, %104 : vector<8x128xf32>
    %107 = math.tanh %106 : vector<8x128xf32>
    %cst_52 = arith.constant 5.000000e-01 : f32
    %108 = vector.broadcast %cst_52 : f32 to vector<8x128xf32>
    %109 = arith.mulf %108, %107 : vector<8x128xf32>
    %cst_53 = arith.constant 5.000000e-01 : f32
    %110 = vector.broadcast %cst_53 : f32 to vector<8x128xf32>
    %111 = arith.addf %109, %110 : vector<8x128xf32>
    %112 = vector.extract_strided_slice %95 {offsets = [0, 256], sizes = [8, 128], strides = [1, 1]} : vector<8x512xf32> to vector<8x128xf32>
    %113 = math.tanh %112 : vector<8x128xf32>
    %114 = vector.extract_strided_slice %95 {offsets = [0, 384], sizes = [8, 128], strides = [1, 1]} : vector<8x512xf32> to vector<8x128xf32>
    %cst_54 = arith.constant 5.000000e-01 : f32
    %115 = vector.broadcast %cst_54 : f32 to vector<8x128xf32>
    %116 = arith.mulf %115, %114 : vector<8x128xf32>
    %117 = math.tanh %116 : vector<8x128xf32>
    %cst_55 = arith.constant 5.000000e-01 : f32
    %118 = vector.broadcast %cst_55 : f32 to vector<8x128xf32>
    %119 = arith.mulf %118, %117 : vector<8x128xf32>
    %cst_56 = arith.constant 5.000000e-01 : f32
    %120 = vector.broadcast %cst_56 : f32 to vector<8x128xf32>
    %121 = arith.addf %119, %120 : vector<8x128xf32>
    %122 = arith.mulf %111, %51 : vector<8x128xf32>
    %123 = arith.mulf %103, %113 : vector<8x128xf32>
    %124 = arith.addf %122, %123 : vector<8x128xf32>
    %125 = math.tanh %124 : vector<8x128xf32>
    %126 = arith.mulf %121, %125 : vector<8x128xf32>
    %127 = arith.truncf %126 : vector<8x128xf32> to vector<8x128xbf16>
    %128 = tpu.concatenate %127, %91 in 1 : vector<8x128xbf16>, vector<8x128xbf16> -> vector<8x256xbf16>
    %c0_57 = arith.constant 0 : index
    %c0_58 = arith.constant 0 : index
    %129 = vector.load %arg3[%c0_57, %c0_58] : memref<256x512xbf16, #tpu.memory_space<vmem>>, vector<256x512xbf16>
    %cst_59 = arith.constant dense<0.000000e+00> : vector<8x512xf32>
    %130 = tpu.matmul %128, %129, %cst_59 {dimension_numbers = #tpu.dot_dimension_numbers<[1], [0], [0], [1], [0, 0, 1, 1], [], []>} : vector<8x256xbf16>, vector<256x512xbf16>, vector<8x512xf32> -> vector<8x512xf32>
    %131 = vector.broadcast %1 : vector<1x512xf32> to vector<8x512xf32>
    %132 = arith.addf %130, %131 : vector<8x512xf32>
    %133 = vector.extract_strided_slice %132 {offsets = [0, 0], sizes = [8, 128], strides = [1, 1]} : vector<8x512xf32> to vector<8x128xf32>
    %cst_60 = arith.constant 5.000000e-01 : f32
    %134 = vector.broadcast %cst_60 : f32 to vector<8x128xf32>
    %135 = arith.mulf %134, %133 : vector<8x128xf32>
    %136 = math.tanh %135 : vector<8x128xf32>
    %cst_61 = arith.constant 5.000000e-01 : f32
    %137 = vector.broadcast %cst_61 : f32 to vector<8x128xf32>
    %138 = arith.mulf %137, %136 : vector<8x128xf32>
    %cst_62 = arith.constant 5.000000e-01 : f32
    %139 = vector.broadcast %cst_62 : f32 to vector<8x128xf32>
    %140 = arith.addf %138, %139 : vector<8x128xf32>
    %141 = vector.extract_strided_slice %132 {offsets = [0, 128], sizes = [8, 128], strides = [1, 1]} : vector<8x512xf32> to vector<8x128xf32>
    %cst_63 = arith.constant 5.000000e-01 : f32
    %142 = vector.broadcast %cst_63 : f32 to vector<8x128xf32>
    %143 = arith.mulf %142, %141 : vector<8x128xf32>
    %144 = math.tanh %143 : vector<8x128xf32>
    %cst_64 = arith.constant 5.000000e-01 : f32
    %145 = vector.broadcast %cst_64 : f32 to vector<8x128xf32>
    %146 = arith.mulf %145, %144 : vector<8x128xf32>
    %cst_65 = arith.constant 5.000000e-01 : f32
    %147 = vector.broadcast %cst_65 : f32 to vector<8x128xf32>
    %148 = arith.addf %146, %147 : vector<8x128xf32>
    %149 = vector.extract_strided_slice %132 {offsets = [0, 256], sizes = [8, 128], strides = [1, 1]} : vector<8x512xf32> to vector<8x128xf32>
    %150 = math.tanh %149 : vector<8x128xf32>
    %151 = vector.extract_strided_slice %132 {offsets = [0, 384], sizes = [8, 128], strides = [1, 1]} : vector<8x512xf32> to vector<8x128xf32>
    %cst_66 = arith.constant 5.000000e-01 : f32
    %152 = vector.broadcast %cst_66 : f32 to vector<8x128xf32>
    %153 = arith.mulf %152, %151 : vector<8x128xf32>
    %154 = math.tanh %153 : vector<8x128xf32>
    %cst_67 = arith.constant 5.000000e-01 : f32
    %155 = vector.broadcast %cst_67 : f32 to vector<8x128xf32>
    %156 = arith.mulf %155, %154 : vector<8x128xf32>
    %cst_68 = arith.constant 5.000000e-01 : f32
    %157 = vector.broadcast %cst_68 : f32 to vector<8x128xf32>
    %158 = arith.addf %156, %157 : vector<8x128xf32>
    %159 = arith.mulf %148, %88 : vector<8x128xf32>
    %160 = arith.mulf %140, %150 : vector<8x128xf32>
    %161 = arith.addf %159, %160 : vector<8x128xf32>
    %162 = math.tanh %161 : vector<8x128xf32>
    %163 = arith.mulf %158, %162 : vector<8x128xf32>
    %164 = arith.truncf %163 : vector<8x128xf32> to vector<8x128xbf16>
    %c16 = arith.constant 16 : index
    %c0_69 = arith.constant 0 : index
    %165 = vector.load %arg8[%c16, %c0_69] : memref<64x512xf32, #tpu.memory_space<vmem>>, vector<8x512xf32>
    %c0_70 = arith.constant 0 : index
    %c0_71 = arith.constant 0 : index
    %166 = vector.load %arg2[%c0_70, %c0_71] : memref<128x512xbf16, #tpu.memory_space<vmem>>, vector<128x512xbf16>
    %cst_72 = arith.constant dense<0.000000e+00> : vector<8x512xf32>
    %167 = tpu.matmul %127, %166, %cst_72 {dimension_numbers = #tpu.dot_dimension_numbers<[1], [0], [0], [1], [0, 0, 1, 1], [], []>} : vector<8x128xbf16>, vector<128x512xbf16>, vector<8x512xf32> -> vector<8x512xf32>
    %168 = arith.addf %165, %167 : vector<8x512xf32>
    %169 = vector.extract_strided_slice %168 {offsets = [0, 0], sizes = [8, 128], strides = [1, 1]} : vector<8x512xf32> to vector<8x128xf32>
    %cst_73 = arith.constant 5.000000e-01 : f32
    %170 = vector.broadcast %cst_73 : f32 to vector<8x128xf32>
    %171 = arith.mulf %170, %169 : vector<8x128xf32>
    %172 = math.tanh %171 : vector<8x128xf32>
    %cst_74 = arith.constant 5.000000e-01 : f32
    %173 = vector.broadcast %cst_74 : f32 to vector<8x128xf32>
    %174 = arith.mulf %173, %172 : vector<8x128xf32>
    %cst_75 = arith.constant 5.000000e-01 : f32
    %175 = vector.broadcast %cst_75 : f32 to vector<8x128xf32>
    %176 = arith.addf %174, %175 : vector<8x128xf32>
    %177 = vector.extract_strided_slice %168 {offsets = [0, 128], sizes = [8, 128], strides = [1, 1]} : vector<8x512xf32> to vector<8x128xf32>
    %cst_76 = arith.constant 5.000000e-01 : f32
    %178 = vector.broadcast %cst_76 : f32 to vector<8x128xf32>
    %179 = arith.mulf %178, %177 : vector<8x128xf32>
    %180 = math.tanh %179 : vector<8x128xf32>
    %cst_77 = arith.constant 5.000000e-01 : f32
    %181 = vector.broadcast %cst_77 : f32 to vector<8x128xf32>
    %182 = arith.mulf %181, %180 : vector<8x128xf32>
    %cst_78 = arith.constant 5.000000e-01 : f32
    %183 = vector.broadcast %cst_78 : f32 to vector<8x128xf32>
    %184 = arith.addf %182, %183 : vector<8x128xf32>
    %185 = vector.extract_strided_slice %168 {offsets = [0, 256], sizes = [8, 128], strides = [1, 1]} : vector<8x512xf32> to vector<8x128xf32>
    %186 = math.tanh %185 : vector<8x128xf32>
    %187 = vector.extract_strided_slice %168 {offsets = [0, 384], sizes = [8, 128], strides = [1, 1]} : vector<8x512xf32> to vector<8x128xf32>
    %cst_79 = arith.constant 5.000000e-01 : f32
    %188 = vector.broadcast %cst_79 : f32 to vector<8x128xf32>
    %189 = arith.mulf %188, %187 : vector<8x128xf32>
    %190 = math.tanh %189 : vector<8x128xf32>
    %cst_80 = arith.constant 5.000000e-01 : f32
    %191 = vector.broadcast %cst_80 : f32 to vector<8x128xf32>
    %192 = arith.mulf %191, %190 : vector<8x128xf32>
    %cst_81 = arith.constant 5.000000e-01 : f32
    %193 = vector.broadcast %cst_81 : f32 to vector<8x128xf32>
    %194 = arith.addf %192, %193 : vector<8x128xf32>
    %195 = arith.mulf %184, %124 : vector<8x128xf32>
    %196 = arith.mulf %176, %186 : vector<8x128xf32>
    %197 = arith.addf %195, %196 : vector<8x128xf32>
    %198 = math.tanh %197 : vector<8x128xf32>
    %199 = arith.mulf %194, %198 : vector<8x128xf32>
    %200 = arith.truncf %199 : vector<8x128xf32> to vector<8x128xbf16>
    %201 = tpu.concatenate %200, %164 in 1 : vector<8x128xbf16>, vector<8x128xbf16> -> vector<8x256xbf16>
    %c0_82 = arith.constant 0 : index
    %c0_83 = arith.constant 0 : index
    %202 = vector.load %arg3[%c0_82, %c0_83] : memref<256x512xbf16, #tpu.memory_space<vmem>>, vector<256x512xbf16>
    %cst_84 = arith.constant dense<0.000000e+00> : vector<8x512xf32>
    %203 = tpu.matmul %201, %202, %cst_84 {dimension_numbers = #tpu.dot_dimension_numbers<[1], [0], [0], [1], [0, 0, 1, 1], [], []>} : vector<8x256xbf16>, vector<256x512xbf16>, vector<8x512xf32> -> vector<8x512xf32>
    %204 = vector.broadcast %1 : vector<1x512xf32> to vector<8x512xf32>
    %205 = arith.addf %203, %204 : vector<8x512xf32>
    %206 = vector.extract_strided_slice %205 {offsets = [0, 0], sizes = [8, 128], strides = [1, 1]} : vector<8x512xf32> to vector<8x128xf32>
    %cst_85 = arith.constant 5.000000e-01 : f32
    %207 = vector.broadcast %cst_85 : f32 to vector<8x128xf32>
    %208 = arith.mulf %207, %206 : vector<8x128xf32>
    %209 = math.tanh %208 : vector<8x128xf32>
    %cst_86 = arith.constant 5.000000e-01 : f32
    %210 = vector.broadcast %cst_86 : f32 to vector<8x128xf32>
    %211 = arith.mulf %210, %209 : vector<8x128xf32>
    %cst_87 = arith.constant 5.000000e-01 : f32
    %212 = vector.broadcast %cst_87 : f32 to vector<8x128xf32>
    %213 = arith.addf %211, %212 : vector<8x128xf32>
    %214 = vector.extract_strided_slice %205 {offsets = [0, 128], sizes = [8, 128], strides = [1, 1]} : vector<8x512xf32> to vector<8x128xf32>
    %cst_88 = arith.constant 5.000000e-01 : f32
    %215 = vector.broadcast %cst_88 : f32 to vector<8x128xf32>
    %216 = arith.mulf %215, %214 : vector<8x128xf32>
    %217 = math.tanh %216 : vector<8x128xf32>
    %cst_89 = arith.constant 5.000000e-01 : f32
    %218 = vector.broadcast %cst_89 : f32 to vector<8x128xf32>
    %219 = arith.mulf %218, %217 : vector<8x128xf32>
    %cst_90 = arith.constant 5.000000e-01 : f32
    %220 = vector.broadcast %cst_90 : f32 to vector<8x128xf32>
    %221 = arith.addf %219, %220 : vector<8x128xf32>
    %222 = vector.extract_strided_slice %205 {offsets = [0, 256], sizes = [8, 128], strides = [1, 1]} : vector<8x512xf32> to vector<8x128xf32>
    %223 = math.tanh %222 : vector<8x128xf32>
    %224 = vector.extract_strided_slice %205 {offsets = [0, 384], sizes = [8, 128], strides = [1, 1]} : vector<8x512xf32> to vector<8x128xf32>
    %cst_91 = arith.constant 5.000000e-01 : f32
    %225 = vector.broadcast %cst_91 : f32 to vector<8x128xf32>
    %226 = arith.mulf %225, %224 : vector<8x128xf32>
    %227 = math.tanh %226 : vector<8x128xf32>
    %cst_92 = arith.constant 5.000000e-01 : f32
    %228 = vector.broadcast %cst_92 : f32 to vector<8x128xf32>
    %229 = arith.mulf %228, %227 : vector<8x128xf32>
    %cst_93 = arith.constant 5.000000e-01 : f32
    %230 = vector.broadcast %cst_93 : f32 to vector<8x128xf32>
    %231 = arith.addf %229, %230 : vector<8x128xf32>
    %232 = arith.mulf %221, %161 : vector<8x128xf32>
    %233 = arith.mulf %213, %223 : vector<8x128xf32>
    %234 = arith.addf %232, %233 : vector<8x128xf32>
    %235 = math.tanh %234 : vector<8x128xf32>
    %236 = arith.mulf %231, %235 : vector<8x128xf32>
    %237 = arith.truncf %236 : vector<8x128xf32> to vector<8x128xbf16>
    %c24 = arith.constant 24 : index
    %c0_94 = arith.constant 0 : index
    %238 = vector.load %arg8[%c24, %c0_94] : memref<64x512xf32, #tpu.memory_space<vmem>>, vector<8x512xf32>
    %c0_95 = arith.constant 0 : index
    %c0_96 = arith.constant 0 : index
    %239 = vector.load %arg2[%c0_95, %c0_96] : memref<128x512xbf16, #tpu.memory_space<vmem>>, vector<128x512xbf16>
    %cst_97 = arith.constant dense<0.000000e+00> : vector<8x512xf32>
    %240 = tpu.matmul %200, %239, %cst_97 {dimension_numbers = #tpu.dot_dimension_numbers<[1], [0], [0], [1], [0, 0, 1, 1], [], []>} : vector<8x128xbf16>, vector<128x512xbf16>, vector<8x512xf32> -> vector<8x512xf32>
    %241 = arith.addf %238, %240 : vector<8x512xf32>
    %242 = vector.extract_strided_slice %241 {offsets = [0, 0], sizes = [8, 128], strides = [1, 1]} : vector<8x512xf32> to vector<8x128xf32>
    %cst_98 = arith.constant 5.000000e-01 : f32
    %243 = vector.broadcast %cst_98 : f32 to vector<8x128xf32>
    %244 = arith.mulf %243, %242 : vector<8x128xf32>
    %245 = math.tanh %244 : vector<8x128xf32>
    %cst_99 = arith.constant 5.000000e-01 : f32
    %246 = vector.broadcast %cst_99 : f32 to vector<8x128xf32>
    %247 = arith.mulf %246, %245 : vector<8x128xf32>
    %cst_100 = arith.constant 5.000000e-01 : f32
    %248 = vector.broadcast %cst_100 : f32 to vector<8x128xf32>
    %249 = arith.addf %247, %248 : vector<8x128xf32>
    %250 = vector.extract_strided_slice %241 {offsets = [0, 128], sizes = [8, 128], strides = [1, 1]} : vector<8x512xf32> to vector<8x128xf32>
    %cst_101 = arith.constant 5.000000e-01 : f32
    %251 = vector.broadcast %cst_101 : f32 to vector<8x128xf32>
    %252 = arith.mulf %251, %250 : vector<8x128xf32>
    %253 = math.tanh %252 : vector<8x128xf32>
    %cst_102 = arith.constant 5.000000e-01 : f32
    %254 = vector.broadcast %cst_102 : f32 to vector<8x128xf32>
    %255 = arith.mulf %254, %253 : vector<8x128xf32>
    %cst_103 = arith.constant 5.000000e-01 : f32
    %256 = vector.broadcast %cst_103 : f32 to vector<8x128xf32>
    %257 = arith.addf %255, %256 : vector<8x128xf32>
    %258 = vector.extract_strided_slice %241 {offsets = [0, 256], sizes = [8, 128], strides = [1, 1]} : vector<8x512xf32> to vector<8x128xf32>
    %259 = math.tanh %258 : vector<8x128xf32>
    %260 = vector.extract_strided_slice %241 {offsets = [0, 384], sizes = [8, 128], strides = [1, 1]} : vector<8x512xf32> to vector<8x128xf32>
    %cst_104 = arith.constant 5.000000e-01 : f32
    %261 = vector.broadcast %cst_104 : f32 to vector<8x128xf32>
    %262 = arith.mulf %261, %260 : vector<8x128xf32>
    %263 = math.tanh %262 : vector<8x128xf32>
    %cst_105 = arith.constant 5.000000e-01 : f32
    %264 = vector.broadcast %cst_105 : f32 to vector<8x128xf32>
    %265 = arith.mulf %264, %263 : vector<8x128xf32>
    %cst_106 = arith.constant 5.000000e-01 : f32
    %266 = vector.broadcast %cst_106 : f32 to vector<8x128xf32>
    %267 = arith.addf %265, %266 : vector<8x128xf32>
    %268 = arith.mulf %257, %197 : vector<8x128xf32>
    %269 = arith.mulf %249, %259 : vector<8x128xf32>
    %270 = arith.addf %268, %269 : vector<8x128xf32>
    %271 = math.tanh %270 : vector<8x128xf32>
    %272 = arith.mulf %267, %271 : vector<8x128xf32>
    %273 = arith.truncf %272 : vector<8x128xf32> to vector<8x128xbf16>
    %274 = tpu.concatenate %273, %237 in 1 : vector<8x128xbf16>, vector<8x128xbf16> -> vector<8x256xbf16>
    %c0_107 = arith.constant 0 : index
    %c0_108 = arith.constant 0 : index
    %275 = vector.load %arg3[%c0_107, %c0_108] : memref<256x512xbf16, #tpu.memory_space<vmem>>, vector<256x512xbf16>
    %cst_109 = arith.constant dense<0.000000e+00> : vector<8x512xf32>
    %276 = tpu.matmul %274, %275, %cst_109 {dimension_numbers = #tpu.dot_dimension_numbers<[1], [0], [0], [1], [0, 0, 1, 1], [], []>} : vector<8x256xbf16>, vector<256x512xbf16>, vector<8x512xf32> -> vector<8x512xf32>
    %277 = vector.broadcast %1 : vector<1x512xf32> to vector<8x512xf32>
    %278 = arith.addf %276, %277 : vector<8x512xf32>
    %279 = vector.extract_strided_slice %278 {offsets = [0, 0], sizes = [8, 128], strides = [1, 1]} : vector<8x512xf32> to vector<8x128xf32>
    %cst_110 = arith.constant 5.000000e-01 : f32
    %280 = vector.broadcast %cst_110 : f32 to vector<8x128xf32>
    %281 = arith.mulf %280, %279 : vector<8x128xf32>
    %282 = math.tanh %281 : vector<8x128xf32>
    %cst_111 = arith.constant 5.000000e-01 : f32
    %283 = vector.broadcast %cst_111 : f32 to vector<8x128xf32>
    %284 = arith.mulf %283, %282 : vector<8x128xf32>
    %cst_112 = arith.constant 5.000000e-01 : f32
    %285 = vector.broadcast %cst_112 : f32 to vector<8x128xf32>
    %286 = arith.addf %284, %285 : vector<8x128xf32>
    %287 = vector.extract_strided_slice %278 {offsets = [0, 128], sizes = [8, 128], strides = [1, 1]} : vector<8x512xf32> to vector<8x128xf32>
    %cst_113 = arith.constant 5.000000e-01 : f32
    %288 = vector.broadcast %cst_113 : f32 to vector<8x128xf32>
    %289 = arith.mulf %288, %287 : vector<8x128xf32>
    %290 = math.tanh %289 : vector<8x128xf32>
    %cst_114 = arith.constant 5.000000e-01 : f32
    %291 = vector.broadcast %cst_114 : f32 to vector<8x128xf32>
    %292 = arith.mulf %291, %290 : vector<8x128xf32>
    %cst_115 = arith.constant 5.000000e-01 : f32
    %293 = vector.broadcast %cst_115 : f32 to vector<8x128xf32>
    %294 = arith.addf %292, %293 : vector<8x128xf32>
    %295 = vector.extract_strided_slice %278 {offsets = [0, 256], sizes = [8, 128], strides = [1, 1]} : vector<8x512xf32> to vector<8x128xf32>
    %296 = math.tanh %295 : vector<8x128xf32>
    %297 = vector.extract_strided_slice %278 {offsets = [0, 384], sizes = [8, 128], strides = [1, 1]} : vector<8x512xf32> to vector<8x128xf32>
    %cst_116 = arith.constant 5.000000e-01 : f32
    %298 = vector.broadcast %cst_116 : f32 to vector<8x128xf32>
    %299 = arith.mulf %298, %297 : vector<8x128xf32>
    %300 = math.tanh %299 : vector<8x128xf32>
    %cst_117 = arith.constant 5.000000e-01 : f32
    %301 = vector.broadcast %cst_117 : f32 to vector<8x128xf32>
    %302 = arith.mulf %301, %300 : vector<8x128xf32>
    %cst_118 = arith.constant 5.000000e-01 : f32
    %303 = vector.broadcast %cst_118 : f32 to vector<8x128xf32>
    %304 = arith.addf %302, %303 : vector<8x128xf32>
    %305 = arith.mulf %294, %234 : vector<8x128xf32>
    %306 = arith.mulf %286, %296 : vector<8x128xf32>
    %307 = arith.addf %305, %306 : vector<8x128xf32>
    %308 = math.tanh %307 : vector<8x128xf32>
    %309 = arith.mulf %304, %308 : vector<8x128xf32>
    %310 = arith.truncf %309 : vector<8x128xf32> to vector<8x128xbf16>
    %c32 = arith.constant 32 : index
    %c0_119 = arith.constant 0 : index
    %311 = vector.load %arg8[%c32, %c0_119] : memref<64x512xf32, #tpu.memory_space<vmem>>, vector<8x512xf32>
    %c0_120 = arith.constant 0 : index
    %c0_121 = arith.constant 0 : index
    %312 = vector.load %arg2[%c0_120, %c0_121] : memref<128x512xbf16, #tpu.memory_space<vmem>>, vector<128x512xbf16>
    %cst_122 = arith.constant dense<0.000000e+00> : vector<8x512xf32>
    %313 = tpu.matmul %273, %312, %cst_122 {dimension_numbers = #tpu.dot_dimension_numbers<[1], [0], [0], [1], [0, 0, 1, 1], [], []>} : vector<8x128xbf16>, vector<128x512xbf16>, vector<8x512xf32> -> vector<8x512xf32>
    %314 = arith.addf %311, %313 : vector<8x512xf32>
    %315 = vector.extract_strided_slice %314 {offsets = [0, 0], sizes = [8, 128], strides = [1, 1]} : vector<8x512xf32> to vector<8x128xf32>
    %cst_123 = arith.constant 5.000000e-01 : f32
    %316 = vector.broadcast %cst_123 : f32 to vector<8x128xf32>
    %317 = arith.mulf %316, %315 : vector<8x128xf32>
    %318 = math.tanh %317 : vector<8x128xf32>
    %cst_124 = arith.constant 5.000000e-01 : f32
    %319 = vector.broadcast %cst_124 : f32 to vector<8x128xf32>
    %320 = arith.mulf %319, %318 : vector<8x128xf32>
    %cst_125 = arith.constant 5.000000e-01 : f32
    %321 = vector.broadcast %cst_125 : f32 to vector<8x128xf32>
    %322 = arith.addf %320, %321 : vector<8x128xf32>
    %323 = vector.extract_strided_slice %314 {offsets = [0, 128], sizes = [8, 128], strides = [1, 1]} : vector<8x512xf32> to vector<8x128xf32>
    %cst_126 = arith.constant 5.000000e-01 : f32
    %324 = vector.broadcast %cst_126 : f32 to vector<8x128xf32>
    %325 = arith.mulf %324, %323 : vector<8x128xf32>
    %326 = math.tanh %325 : vector<8x128xf32>
    %cst_127 = arith.constant 5.000000e-01 : f32
    %327 = vector.broadcast %cst_127 : f32 to vector<8x128xf32>
    %328 = arith.mulf %327, %326 : vector<8x128xf32>
    %cst_128 = arith.constant 5.000000e-01 : f32
    %329 = vector.broadcast %cst_128 : f32 to vector<8x128xf32>
    %330 = arith.addf %328, %329 : vector<8x128xf32>
    %331 = vector.extract_strided_slice %314 {offsets = [0, 256], sizes = [8, 128], strides = [1, 1]} : vector<8x512xf32> to vector<8x128xf32>
    %332 = math.tanh %331 : vector<8x128xf32>
    %333 = vector.extract_strided_slice %314 {offsets = [0, 384], sizes = [8, 128], strides = [1, 1]} : vector<8x512xf32> to vector<8x128xf32>
    %cst_129 = arith.constant 5.000000e-01 : f32
    %334 = vector.broadcast %cst_129 : f32 to vector<8x128xf32>
    %335 = arith.mulf %334, %333 : vector<8x128xf32>
    %336 = math.tanh %335 : vector<8x128xf32>
    %cst_130 = arith.constant 5.000000e-01 : f32
    %337 = vector.broadcast %cst_130 : f32 to vector<8x128xf32>
    %338 = arith.mulf %337, %336 : vector<8x128xf32>
    %cst_131 = arith.constant 5.000000e-01 : f32
    %339 = vector.broadcast %cst_131 : f32 to vector<8x128xf32>
    %340 = arith.addf %338, %339 : vector<8x128xf32>
    %341 = arith.mulf %330, %270 : vector<8x128xf32>
    %342 = arith.mulf %322, %332 : vector<8x128xf32>
    %343 = arith.addf %341, %342 : vector<8x128xf32>
    %344 = math.tanh %343 : vector<8x128xf32>
    %345 = arith.mulf %340, %344 : vector<8x128xf32>
    %346 = arith.truncf %345 : vector<8x128xf32> to vector<8x128xbf16>
    %347 = tpu.concatenate %346, %310 in 1 : vector<8x128xbf16>, vector<8x128xbf16> -> vector<8x256xbf16>
    %c0_132 = arith.constant 0 : index
    %c0_133 = arith.constant 0 : index
    %348 = vector.load %arg3[%c0_132, %c0_133] : memref<256x512xbf16, #tpu.memory_space<vmem>>, vector<256x512xbf16>
    %cst_134 = arith.constant dense<0.000000e+00> : vector<8x512xf32>
    %349 = tpu.matmul %347, %348, %cst_134 {dimension_numbers = #tpu.dot_dimension_numbers<[1], [0], [0], [1], [0, 0, 1, 1], [], []>} : vector<8x256xbf16>, vector<256x512xbf16>, vector<8x512xf32> -> vector<8x512xf32>
    %350 = vector.broadcast %1 : vector<1x512xf32> to vector<8x512xf32>
    %351 = arith.addf %349, %350 : vector<8x512xf32>
    %352 = vector.extract_strided_slice %351 {offsets = [0, 0], sizes = [8, 128], strides = [1, 1]} : vector<8x512xf32> to vector<8x128xf32>
    %cst_135 = arith.constant 5.000000e-01 : f32
    %353 = vector.broadcast %cst_135 : f32 to vector<8x128xf32>
    %354 = arith.mulf %353, %352 : vector<8x128xf32>
    %355 = math.tanh %354 : vector<8x128xf32>
    %cst_136 = arith.constant 5.000000e-01 : f32
    %356 = vector.broadcast %cst_136 : f32 to vector<8x128xf32>
    %357 = arith.mulf %356, %355 : vector<8x128xf32>
    %cst_137 = arith.constant 5.000000e-01 : f32
    %358 = vector.broadcast %cst_137 : f32 to vector<8x128xf32>
    %359 = arith.addf %357, %358 : vector<8x128xf32>
    %360 = vector.extract_strided_slice %351 {offsets = [0, 128], sizes = [8, 128], strides = [1, 1]} : vector<8x512xf32> to vector<8x128xf32>
    %cst_138 = arith.constant 5.000000e-01 : f32
    %361 = vector.broadcast %cst_138 : f32 to vector<8x128xf32>
    %362 = arith.mulf %361, %360 : vector<8x128xf32>
    %363 = math.tanh %362 : vector<8x128xf32>
    %cst_139 = arith.constant 5.000000e-01 : f32
    %364 = vector.broadcast %cst_139 : f32 to vector<8x128xf32>
    %365 = arith.mulf %364, %363 : vector<8x128xf32>
    %cst_140 = arith.constant 5.000000e-01 : f32
    %366 = vector.broadcast %cst_140 : f32 to vector<8x128xf32>
    %367 = arith.addf %365, %366 : vector<8x128xf32>
    %368 = vector.extract_strided_slice %351 {offsets = [0, 256], sizes = [8, 128], strides = [1, 1]} : vector<8x512xf32> to vector<8x128xf32>
    %369 = math.tanh %368 : vector<8x128xf32>
    %370 = vector.extract_strided_slice %351 {offsets = [0, 384], sizes = [8, 128], strides = [1, 1]} : vector<8x512xf32> to vector<8x128xf32>
    %cst_141 = arith.constant 5.000000e-01 : f32
    %371 = vector.broadcast %cst_141 : f32 to vector<8x128xf32>
    %372 = arith.mulf %371, %370 : vector<8x128xf32>
    %373 = math.tanh %372 : vector<8x128xf32>
    %cst_142 = arith.constant 5.000000e-01 : f32
    %374 = vector.broadcast %cst_142 : f32 to vector<8x128xf32>
    %375 = arith.mulf %374, %373 : vector<8x128xf32>
    %cst_143 = arith.constant 5.000000e-01 : f32
    %376 = vector.broadcast %cst_143 : f32 to vector<8x128xf32>
    %377 = arith.addf %375, %376 : vector<8x128xf32>
    %378 = arith.mulf %367, %307 : vector<8x128xf32>
    %379 = arith.mulf %359, %369 : vector<8x128xf32>
    %380 = arith.addf %378, %379 : vector<8x128xf32>
    %381 = math.tanh %380 : vector<8x128xf32>
    %382 = arith.mulf %377, %381 : vector<8x128xf32>
    %383 = arith.truncf %382 : vector<8x128xf32> to vector<8x128xbf16>
    %c40 = arith.constant 40 : index
    %c0_144 = arith.constant 0 : index
    %384 = vector.load %arg8[%c40, %c0_144] : memref<64x512xf32, #tpu.memory_space<vmem>>, vector<8x512xf32>
    %c0_145 = arith.constant 0 : index
    %c0_146 = arith.constant 0 : index
    %385 = vector.load %arg2[%c0_145, %c0_146] : memref<128x512xbf16, #tpu.memory_space<vmem>>, vector<128x512xbf16>
    %cst_147 = arith.constant dense<0.000000e+00> : vector<8x512xf32>
    %386 = tpu.matmul %346, %385, %cst_147 {dimension_numbers = #tpu.dot_dimension_numbers<[1], [0], [0], [1], [0, 0, 1, 1], [], []>} : vector<8x128xbf16>, vector<128x512xbf16>, vector<8x512xf32> -> vector<8x512xf32>
    %387 = arith.addf %384, %386 : vector<8x512xf32>
    %388 = vector.extract_strided_slice %387 {offsets = [0, 0], sizes = [8, 128], strides = [1, 1]} : vector<8x512xf32> to vector<8x128xf32>
    %cst_148 = arith.constant 5.000000e-01 : f32
    %389 = vector.broadcast %cst_148 : f32 to vector<8x128xf32>
    %390 = arith.mulf %389, %388 : vector<8x128xf32>
    %391 = math.tanh %390 : vector<8x128xf32>
    %cst_149 = arith.constant 5.000000e-01 : f32
    %392 = vector.broadcast %cst_149 : f32 to vector<8x128xf32>
    %393 = arith.mulf %392, %391 : vector<8x128xf32>
    %cst_150 = arith.constant 5.000000e-01 : f32
    %394 = vector.broadcast %cst_150 : f32 to vector<8x128xf32>
    %395 = arith.addf %393, %394 : vector<8x128xf32>
    %396 = vector.extract_strided_slice %387 {offsets = [0, 128], sizes = [8, 128], strides = [1, 1]} : vector<8x512xf32> to vector<8x128xf32>
    %cst_151 = arith.constant 5.000000e-01 : f32
    %397 = vector.broadcast %cst_151 : f32 to vector<8x128xf32>
    %398 = arith.mulf %397, %396 : vector<8x128xf32>
    %399 = math.tanh %398 : vector<8x128xf32>
    %cst_152 = arith.constant 5.000000e-01 : f32
    %400 = vector.broadcast %cst_152 : f32 to vector<8x128xf32>
    %401 = arith.mulf %400, %399 : vector<8x128xf32>
    %cst_153 = arith.constant 5.000000e-01 : f32
    %402 = vector.broadcast %cst_153 : f32 to vector<8x128xf32>
    %403 = arith.addf %401, %402 : vector<8x128xf32>
    %404 = vector.extract_strided_slice %387 {offsets = [0, 256], sizes = [8, 128], strides = [1, 1]} : vector<8x512xf32> to vector<8x128xf32>
    %405 = math.tanh %404 : vector<8x128xf32>
    %406 = vector.extract_strided_slice %387 {offsets = [0, 384], sizes = [8, 128], strides = [1, 1]} : vector<8x512xf32> to vector<8x128xf32>
    %cst_154 = arith.constant 5.000000e-01 : f32
    %407 = vector.broadcast %cst_154 : f32 to vector<8x128xf32>
    %408 = arith.mulf %407, %406 : vector<8x128xf32>
    %409 = math.tanh %408 : vector<8x128xf32>
    %cst_155 = arith.constant 5.000000e-01 : f32
    %410 = vector.broadcast %cst_155 : f32 to vector<8x128xf32>
    %411 = arith.mulf %410, %409 : vector<8x128xf32>
    %cst_156 = arith.constant 5.000000e-01 : f32
    %412 = vector.broadcast %cst_156 : f32 to vector<8x128xf32>
    %413 = arith.addf %411, %412 : vector<8x128xf32>
    %414 = arith.mulf %403, %343 : vector<8x128xf32>
    %415 = arith.mulf %395, %405 : vector<8x128xf32>
    %416 = arith.addf %414, %415 : vector<8x128xf32>
    %417 = math.tanh %416 : vector<8x128xf32>
    %418 = arith.mulf %413, %417 : vector<8x128xf32>
    %419 = arith.truncf %418 : vector<8x128xf32> to vector<8x128xbf16>
    %420 = tpu.concatenate %419, %383 in 1 : vector<8x128xbf16>, vector<8x128xbf16> -> vector<8x256xbf16>
    %c0_157 = arith.constant 0 : index
    %c0_158 = arith.constant 0 : index
    %421 = vector.load %arg3[%c0_157, %c0_158] : memref<256x512xbf16, #tpu.memory_space<vmem>>, vector<256x512xbf16>
    %cst_159 = arith.constant dense<0.000000e+00> : vector<8x512xf32>
    %422 = tpu.matmul %420, %421, %cst_159 {dimension_numbers = #tpu.dot_dimension_numbers<[1], [0], [0], [1], [0, 0, 1, 1], [], []>} : vector<8x256xbf16>, vector<256x512xbf16>, vector<8x512xf32> -> vector<8x512xf32>
    %423 = vector.broadcast %1 : vector<1x512xf32> to vector<8x512xf32>
    %424 = arith.addf %422, %423 : vector<8x512xf32>
    %425 = vector.extract_strided_slice %424 {offsets = [0, 0], sizes = [8, 128], strides = [1, 1]} : vector<8x512xf32> to vector<8x128xf32>
    %cst_160 = arith.constant 5.000000e-01 : f32
    %426 = vector.broadcast %cst_160 : f32 to vector<8x128xf32>
    %427 = arith.mulf %426, %425 : vector<8x128xf32>
    %428 = math.tanh %427 : vector<8x128xf32>
    %cst_161 = arith.constant 5.000000e-01 : f32
    %429 = vector.broadcast %cst_161 : f32 to vector<8x128xf32>
    %430 = arith.mulf %429, %428 : vector<8x128xf32>
    %cst_162 = arith.constant 5.000000e-01 : f32
    %431 = vector.broadcast %cst_162 : f32 to vector<8x128xf32>
    %432 = arith.addf %430, %431 : vector<8x128xf32>
    %433 = vector.extract_strided_slice %424 {offsets = [0, 128], sizes = [8, 128], strides = [1, 1]} : vector<8x512xf32> to vector<8x128xf32>
    %cst_163 = arith.constant 5.000000e-01 : f32
    %434 = vector.broadcast %cst_163 : f32 to vector<8x128xf32>
    %435 = arith.mulf %434, %433 : vector<8x128xf32>
    %436 = math.tanh %435 : vector<8x128xf32>
    %cst_164 = arith.constant 5.000000e-01 : f32
    %437 = vector.broadcast %cst_164 : f32 to vector<8x128xf32>
    %438 = arith.mulf %437, %436 : vector<8x128xf32>
    %cst_165 = arith.constant 5.000000e-01 : f32
    %439 = vector.broadcast %cst_165 : f32 to vector<8x128xf32>
    %440 = arith.addf %438, %439 : vector<8x128xf32>
    %441 = vector.extract_strided_slice %424 {offsets = [0, 256], sizes = [8, 128], strides = [1, 1]} : vector<8x512xf32> to vector<8x128xf32>
    %442 = math.tanh %441 : vector<8x128xf32>
    %443 = vector.extract_strided_slice %424 {offsets = [0, 384], sizes = [8, 128], strides = [1, 1]} : vector<8x512xf32> to vector<8x128xf32>
    %cst_166 = arith.constant 5.000000e-01 : f32
    %444 = vector.broadcast %cst_166 : f32 to vector<8x128xf32>
    %445 = arith.mulf %444, %443 : vector<8x128xf32>
    %446 = math.tanh %445 : vector<8x128xf32>
    %cst_167 = arith.constant 5.000000e-01 : f32
    %447 = vector.broadcast %cst_167 : f32 to vector<8x128xf32>
    %448 = arith.mulf %447, %446 : vector<8x128xf32>
    %cst_168 = arith.constant 5.000000e-01 : f32
    %449 = vector.broadcast %cst_168 : f32 to vector<8x128xf32>
    %450 = arith.addf %448, %449 : vector<8x128xf32>
    %451 = arith.mulf %440, %380 : vector<8x128xf32>
    %452 = arith.mulf %432, %442 : vector<8x128xf32>
    %453 = arith.addf %451, %452 : vector<8x128xf32>
    %454 = math.tanh %453 : vector<8x128xf32>
    %455 = arith.mulf %450, %454 : vector<8x128xf32>
    %456 = arith.truncf %455 : vector<8x128xf32> to vector<8x128xbf16>
    %c48 = arith.constant 48 : index
    %c0_169 = arith.constant 0 : index
    %457 = vector.load %arg8[%c48, %c0_169] : memref<64x512xf32, #tpu.memory_space<vmem>>, vector<8x512xf32>
    %c0_170 = arith.constant 0 : index
    %c0_171 = arith.constant 0 : index
    %458 = vector.load %arg2[%c0_170, %c0_171] : memref<128x512xbf16, #tpu.memory_space<vmem>>, vector<128x512xbf16>
    %cst_172 = arith.constant dense<0.000000e+00> : vector<8x512xf32>
    %459 = tpu.matmul %419, %458, %cst_172 {dimension_numbers = #tpu.dot_dimension_numbers<[1], [0], [0], [1], [0, 0, 1, 1], [], []>} : vector<8x128xbf16>, vector<128x512xbf16>, vector<8x512xf32> -> vector<8x512xf32>
    %460 = arith.addf %457, %459 : vector<8x512xf32>
    %461 = vector.extract_strided_slice %460 {offsets = [0, 0], sizes = [8, 128], strides = [1, 1]} : vector<8x512xf32> to vector<8x128xf32>
    %cst_173 = arith.constant 5.000000e-01 : f32
    %462 = vector.broadcast %cst_173 : f32 to vector<8x128xf32>
    %463 = arith.mulf %462, %461 : vector<8x128xf32>
    %464 = math.tanh %463 : vector<8x128xf32>
    %cst_174 = arith.constant 5.000000e-01 : f32
    %465 = vector.broadcast %cst_174 : f32 to vector<8x128xf32>
    %466 = arith.mulf %465, %464 : vector<8x128xf32>
    %cst_175 = arith.constant 5.000000e-01 : f32
    %467 = vector.broadcast %cst_175 : f32 to vector<8x128xf32>
    %468 = arith.addf %466, %467 : vector<8x128xf32>
    %469 = vector.extract_strided_slice %460 {offsets = [0, 128], sizes = [8, 128], strides = [1, 1]} : vector<8x512xf32> to vector<8x128xf32>
    %cst_176 = arith.constant 5.000000e-01 : f32
    %470 = vector.broadcast %cst_176 : f32 to vector<8x128xf32>
    %471 = arith.mulf %470, %469 : vector<8x128xf32>
    %472 = math.tanh %471 : vector<8x128xf32>
    %cst_177 = arith.constant 5.000000e-01 : f32
    %473 = vector.broadcast %cst_177 : f32 to vector<8x128xf32>
    %474 = arith.mulf %473, %472 : vector<8x128xf32>
    %cst_178 = arith.constant 5.000000e-01 : f32
    %475 = vector.broadcast %cst_178 : f32 to vector<8x128xf32>
    %476 = arith.addf %474, %475 : vector<8x128xf32>
    %477 = vector.extract_strided_slice %460 {offsets = [0, 256], sizes = [8, 128], strides = [1, 1]} : vector<8x512xf32> to vector<8x128xf32>
    %478 = math.tanh %477 : vector<8x128xf32>
    %479 = vector.extract_strided_slice %460 {offsets = [0, 384], sizes = [8, 128], strides = [1, 1]} : vector<8x512xf32> to vector<8x128xf32>
    %cst_179 = arith.constant 5.000000e-01 : f32
    %480 = vector.broadcast %cst_179 : f32 to vector<8x128xf32>
    %481 = arith.mulf %480, %479 : vector<8x128xf32>
    %482 = math.tanh %481 : vector<8x128xf32>
    %cst_180 = arith.constant 5.000000e-01 : f32
    %483 = vector.broadcast %cst_180 : f32 to vector<8x128xf32>
    %484 = arith.mulf %483, %482 : vector<8x128xf32>
    %cst_181 = arith.constant 5.000000e-01 : f32
    %485 = vector.broadcast %cst_181 : f32 to vector<8x128xf32>
    %486 = arith.addf %484, %485 : vector<8x128xf32>
    %487 = arith.mulf %476, %416 : vector<8x128xf32>
    %488 = arith.mulf %468, %478 : vector<8x128xf32>
    %489 = arith.addf %487, %488 : vector<8x128xf32>
    %490 = math.tanh %489 : vector<8x128xf32>
    %491 = arith.mulf %486, %490 : vector<8x128xf32>
    %492 = arith.truncf %491 : vector<8x128xf32> to vector<8x128xbf16>
    %493 = tpu.concatenate %492, %456 in 1 : vector<8x128xbf16>, vector<8x128xbf16> -> vector<8x256xbf16>
    %c0_182 = arith.constant 0 : index
    %c0_183 = arith.constant 0 : index
    %494 = vector.load %arg3[%c0_182, %c0_183] : memref<256x512xbf16, #tpu.memory_space<vmem>>, vector<256x512xbf16>
    %cst_184 = arith.constant dense<0.000000e+00> : vector<8x512xf32>
    %495 = tpu.matmul %493, %494, %cst_184 {dimension_numbers = #tpu.dot_dimension_numbers<[1], [0], [0], [1], [0, 0, 1, 1], [], []>} : vector<8x256xbf16>, vector<256x512xbf16>, vector<8x512xf32> -> vector<8x512xf32>
    %496 = vector.broadcast %1 : vector<1x512xf32> to vector<8x512xf32>
    %497 = arith.addf %495, %496 : vector<8x512xf32>
    %498 = vector.extract_strided_slice %497 {offsets = [0, 0], sizes = [8, 128], strides = [1, 1]} : vector<8x512xf32> to vector<8x128xf32>
    %cst_185 = arith.constant 5.000000e-01 : f32
    %499 = vector.broadcast %cst_185 : f32 to vector<8x128xf32>
    %500 = arith.mulf %499, %498 : vector<8x128xf32>
    %501 = math.tanh %500 : vector<8x128xf32>
    %cst_186 = arith.constant 5.000000e-01 : f32
    %502 = vector.broadcast %cst_186 : f32 to vector<8x128xf32>
    %503 = arith.mulf %502, %501 : vector<8x128xf32>
    %cst_187 = arith.constant 5.000000e-01 : f32
    %504 = vector.broadcast %cst_187 : f32 to vector<8x128xf32>
    %505 = arith.addf %503, %504 : vector<8x128xf32>
    %506 = vector.extract_strided_slice %497 {offsets = [0, 128], sizes = [8, 128], strides = [1, 1]} : vector<8x512xf32> to vector<8x128xf32>
    %cst_188 = arith.constant 5.000000e-01 : f32
    %507 = vector.broadcast %cst_188 : f32 to vector<8x128xf32>
    %508 = arith.mulf %507, %506 : vector<8x128xf32>
    %509 = math.tanh %508 : vector<8x128xf32>
    %cst_189 = arith.constant 5.000000e-01 : f32
    %510 = vector.broadcast %cst_189 : f32 to vector<8x128xf32>
    %511 = arith.mulf %510, %509 : vector<8x128xf32>
    %cst_190 = arith.constant 5.000000e-01 : f32
    %512 = vector.broadcast %cst_190 : f32 to vector<8x128xf32>
    %513 = arith.addf %511, %512 : vector<8x128xf32>
    %514 = vector.extract_strided_slice %497 {offsets = [0, 256], sizes = [8, 128], strides = [1, 1]} : vector<8x512xf32> to vector<8x128xf32>
    %515 = math.tanh %514 : vector<8x128xf32>
    %516 = vector.extract_strided_slice %497 {offsets = [0, 384], sizes = [8, 128], strides = [1, 1]} : vector<8x512xf32> to vector<8x128xf32>
    %cst_191 = arith.constant 5.000000e-01 : f32
    %517 = vector.broadcast %cst_191 : f32 to vector<8x128xf32>
    %518 = arith.mulf %517, %516 : vector<8x128xf32>
    %519 = math.tanh %518 : vector<8x128xf32>
    %cst_192 = arith.constant 5.000000e-01 : f32
    %520 = vector.broadcast %cst_192 : f32 to vector<8x128xf32>
    %521 = arith.mulf %520, %519 : vector<8x128xf32>
    %cst_193 = arith.constant 5.000000e-01 : f32
    %522 = vector.broadcast %cst_193 : f32 to vector<8x128xf32>
    %523 = arith.addf %521, %522 : vector<8x128xf32>
    %524 = arith.mulf %513, %453 : vector<8x128xf32>
    %525 = arith.mulf %505, %515 : vector<8x128xf32>
    %526 = arith.addf %524, %525 : vector<8x128xf32>
    %527 = math.tanh %526 : vector<8x128xf32>
    %528 = arith.mulf %523, %527 : vector<8x128xf32>
    %529 = arith.truncf %528 : vector<8x128xf32> to vector<8x128xbf16>
    %c56 = arith.constant 56 : index
    %c0_194 = arith.constant 0 : index
    %530 = vector.load %arg8[%c56, %c0_194] : memref<64x512xf32, #tpu.memory_space<vmem>>, vector<8x512xf32>
    %c0_195 = arith.constant 0 : index
    %c0_196 = arith.constant 0 : index
    %531 = vector.load %arg2[%c0_195, %c0_196] : memref<128x512xbf16, #tpu.memory_space<vmem>>, vector<128x512xbf16>
    %cst_197 = arith.constant dense<0.000000e+00> : vector<8x512xf32>
    %532 = tpu.matmul %492, %531, %cst_197 {dimension_numbers = #tpu.dot_dimension_numbers<[1], [0], [0], [1], [0, 0, 1, 1], [], []>} : vector<8x128xbf16>, vector<128x512xbf16>, vector<8x512xf32> -> vector<8x512xf32>
    %533 = arith.addf %530, %532 : vector<8x512xf32>
    %534 = vector.extract_strided_slice %533 {offsets = [0, 0], sizes = [8, 128], strides = [1, 1]} : vector<8x512xf32> to vector<8x128xf32>
    %cst_198 = arith.constant 5.000000e-01 : f32
    %535 = vector.broadcast %cst_198 : f32 to vector<8x128xf32>
    %536 = arith.mulf %535, %534 : vector<8x128xf32>
    %537 = math.tanh %536 : vector<8x128xf32>
    %cst_199 = arith.constant 5.000000e-01 : f32
    %538 = vector.broadcast %cst_199 : f32 to vector<8x128xf32>
    %539 = arith.mulf %538, %537 : vector<8x128xf32>
    %cst_200 = arith.constant 5.000000e-01 : f32
    %540 = vector.broadcast %cst_200 : f32 to vector<8x128xf32>
    %541 = arith.addf %539, %540 : vector<8x128xf32>
    %542 = vector.extract_strided_slice %533 {offsets = [0, 128], sizes = [8, 128], strides = [1, 1]} : vector<8x512xf32> to vector<8x128xf32>
    %cst_201 = arith.constant 5.000000e-01 : f32
    %543 = vector.broadcast %cst_201 : f32 to vector<8x128xf32>
    %544 = arith.mulf %543, %542 : vector<8x128xf32>
    %545 = math.tanh %544 : vector<8x128xf32>
    %cst_202 = arith.constant 5.000000e-01 : f32
    %546 = vector.broadcast %cst_202 : f32 to vector<8x128xf32>
    %547 = arith.mulf %546, %545 : vector<8x128xf32>
    %cst_203 = arith.constant 5.000000e-01 : f32
    %548 = vector.broadcast %cst_203 : f32 to vector<8x128xf32>
    %549 = arith.addf %547, %548 : vector<8x128xf32>
    %550 = vector.extract_strided_slice %533 {offsets = [0, 256], sizes = [8, 128], strides = [1, 1]} : vector<8x512xf32> to vector<8x128xf32>
    %551 = math.tanh %550 : vector<8x128xf32>
    %552 = vector.extract_strided_slice %533 {offsets = [0, 384], sizes = [8, 128], strides = [1, 1]} : vector<8x512xf32> to vector<8x128xf32>
    %cst_204 = arith.constant 5.000000e-01 : f32
    %553 = vector.broadcast %cst_204 : f32 to vector<8x128xf32>
    %554 = arith.mulf %553, %552 : vector<8x128xf32>
    %555 = math.tanh %554 : vector<8x128xf32>
    %cst_205 = arith.constant 5.000000e-01 : f32
    %556 = vector.broadcast %cst_205 : f32 to vector<8x128xf32>
    %557 = arith.mulf %556, %555 : vector<8x128xf32>
    %cst_206 = arith.constant 5.000000e-01 : f32
    %558 = vector.broadcast %cst_206 : f32 to vector<8x128xf32>
    %559 = arith.addf %557, %558 : vector<8x128xf32>
    %560 = arith.mulf %549, %489 : vector<8x128xf32>
    %561 = arith.mulf %541, %551 : vector<8x128xf32>
    %562 = arith.addf %560, %561 : vector<8x128xf32>
    %563 = math.tanh %562 : vector<8x128xf32>
    %564 = arith.mulf %559, %563 : vector<8x128xf32>
    %565 = arith.truncf %564 : vector<8x128xf32> to vector<8x128xbf16>
    %566 = tpu.concatenate %565, %529 in 1 : vector<8x128xbf16>, vector<8x128xbf16> -> vector<8x256xbf16>
    %c0_207 = arith.constant 0 : index
    %c0_208 = arith.constant 0 : index
    %567 = vector.load %arg3[%c0_207, %c0_208] : memref<256x512xbf16, #tpu.memory_space<vmem>>, vector<256x512xbf16>
    %cst_209 = arith.constant dense<0.000000e+00> : vector<8x512xf32>
    %568 = tpu.matmul %566, %567, %cst_209 {dimension_numbers = #tpu.dot_dimension_numbers<[1], [0], [0], [1], [0, 0, 1, 1], [], []>} : vector<8x256xbf16>, vector<256x512xbf16>, vector<8x512xf32> -> vector<8x512xf32>
    %569 = vector.broadcast %1 : vector<1x512xf32> to vector<8x512xf32>
    %570 = arith.addf %568, %569 : vector<8x512xf32>
    %571 = vector.extract_strided_slice %570 {offsets = [0, 0], sizes = [8, 128], strides = [1, 1]} : vector<8x512xf32> to vector<8x128xf32>
    %cst_210 = arith.constant 5.000000e-01 : f32
    %572 = vector.broadcast %cst_210 : f32 to vector<8x128xf32>
    %573 = arith.mulf %572, %571 : vector<8x128xf32>
    %574 = math.tanh %573 : vector<8x128xf32>
    %cst_211 = arith.constant 5.000000e-01 : f32
    %575 = vector.broadcast %cst_211 : f32 to vector<8x128xf32>
    %576 = arith.mulf %575, %574 : vector<8x128xf32>
    %cst_212 = arith.constant 5.000000e-01 : f32
    %577 = vector.broadcast %cst_212 : f32 to vector<8x128xf32>
    %578 = arith.addf %576, %577 : vector<8x128xf32>
    %579 = vector.extract_strided_slice %570 {offsets = [0, 128], sizes = [8, 128], strides = [1, 1]} : vector<8x512xf32> to vector<8x128xf32>
    %cst_213 = arith.constant 5.000000e-01 : f32
    %580 = vector.broadcast %cst_213 : f32 to vector<8x128xf32>
    %581 = arith.mulf %580, %579 : vector<8x128xf32>
    %582 = math.tanh %581 : vector<8x128xf32>
    %cst_214 = arith.constant 5.000000e-01 : f32
    %583 = vector.broadcast %cst_214 : f32 to vector<8x128xf32>
    %584 = arith.mulf %583, %582 : vector<8x128xf32>
    %cst_215 = arith.constant 5.000000e-01 : f32
    %585 = vector.broadcast %cst_215 : f32 to vector<8x128xf32>
    %586 = arith.addf %584, %585 : vector<8x128xf32>
    %587 = vector.extract_strided_slice %570 {offsets = [0, 256], sizes = [8, 128], strides = [1, 1]} : vector<8x512xf32> to vector<8x128xf32>
    %588 = math.tanh %587 : vector<8x128xf32>
    %589 = vector.extract_strided_slice %570 {offsets = [0, 384], sizes = [8, 128], strides = [1, 1]} : vector<8x512xf32> to vector<8x128xf32>
    %cst_216 = arith.constant 5.000000e-01 : f32
    %590 = vector.broadcast %cst_216 : f32 to vector<8x128xf32>
    %591 = arith.mulf %590, %589 : vector<8x128xf32>
    %592 = math.tanh %591 : vector<8x128xf32>
    %cst_217 = arith.constant 5.000000e-01 : f32
    %593 = vector.broadcast %cst_217 : f32 to vector<8x128xf32>
    %594 = arith.mulf %593, %592 : vector<8x128xf32>
    %cst_218 = arith.constant 5.000000e-01 : f32
    %595 = vector.broadcast %cst_218 : f32 to vector<8x128xf32>
    %596 = arith.addf %594, %595 : vector<8x128xf32>
    %597 = arith.mulf %586, %526 : vector<8x128xf32>
    %598 = arith.mulf %578, %588 : vector<8x128xf32>
    %599 = arith.addf %597, %598 : vector<8x128xf32>
    %600 = math.tanh %599 : vector<8x128xf32>
    %601 = arith.mulf %596, %600 : vector<8x128xf32>
    %602 = arith.truncf %601 : vector<8x128xf32> to vector<8x128xbf16>
    %603 = arith.extf %602 : vector<8x128xbf16> to vector<8x128xf32>
    %cst_219 = arith.constant 9.99999974E-6 : f32
    %604 = vector.broadcast %cst_219 : f32 to vector<1x128xf32>
    %605 = arith.addf %5, %604 : vector<1x128xf32>
    %606 = math.rsqrt %605 : vector<1x128xf32>
    %607 = vector.broadcast %4 : vector<1x128xf32> to vector<8x128xf32>
    %608 = arith.subf %603, %607 : vector<8x128xf32>
    %609 = arith.mulf %606, %2 : vector<1x128xf32>
    %610 = vector.broadcast %609 : vector<1x128xf32> to vector<8x128xf32>
    %611 = arith.mulf %608, %610 : vector<8x128xf32>
    %612 = vector.broadcast %3 : vector<1x128xf32> to vector<8x128xf32>
    %613 = arith.addf %611, %612 : vector<8x128xf32>
    %c0_220 = arith.constant 0 : index
    %c0_221 = arith.constant 0 : index
    %614 = vector.load %arg5[%c0_220, %c0_221] : memref<128x128xf32, #tpu.memory_space<vmem>>, vector<128x128xf32>
    %cst_222 = arith.constant dense<0.000000e+00> : vector<8x128xf32>
    %615 = tpu.matmul %613, %614, %cst_222 {dimension_numbers = #tpu.dot_dimension_numbers<[1], [0], [0], [1], [0, 0, 1, 1], [], []>} : vector<8x128xf32>, vector<128x128xf32>, vector<8x128xf32> -> vector<8x128xf32>
    %616 = vector.broadcast %6 : vector<1x128xf32> to vector<8x128xf32>
    %617 = arith.addf %615, %616 : vector<8x128xf32>
    %cst_223 = arith.constant 0.000000e+00 : f32
    %618 = vector.broadcast %cst_223 : f32 to vector<8x128xf32>
    %619 = arith.maximumf %617, %618 : vector<8x128xf32>
    %c0_224 = arith.constant 0 : index
    %c0_225 = arith.constant 0 : index
    %620 = vector.load %arg6[%c0_224, %c0_225] : memref<128x128xf32, #tpu.memory_space<vmem>>, vector<128x128xf32>
    %cst_226 = arith.constant dense<0.000000e+00> : vector<8x128xf32>
    %621 = tpu.matmul %619, %620, %cst_226 {dimension_numbers = #tpu.dot_dimension_numbers<[1], [0], [0], [1], [0, 0, 1, 1], [], []>} : vector<8x128xf32>, vector<128x128xf32>, vector<8x128xf32> -> vector<8x128xf32>
    %622 = vector.broadcast %7 : vector<1x128xf32> to vector<8x128xf32>
    %623 = arith.addf %621, %622 : vector<8x128xf32>
    %c0_227 = arith.constant 0 : index
    %c0_228 = arith.constant 0 : index
    %624 = vector.load %arg7[%c0_227, %c0_228] : memref<8x128xf32, #tpu.memory_space<vmem>>, vector<8x128xf32>
    tpu.vector_store %arg7[%c0_227, %c0_228], %623 {strides = array<i32>} : memref<8x128xf32, #tpu.memory_space<vmem>>, vector<8x128xf32>,
    return
  }
}

</mosaic_0001>

<bundles_post_ra>
// kernel: lstm_model_forward.1
= control target key start
LH: loop header
LB: loop body
LE: loop exit
PB: predicated region body
PF: predicated region fallthrough
CT: control target
= control target key end

     0   :  { %vm93_vm0 = vcmask 1043456   ;;  %v6228_v2 = vmov 0   ;;  %vm80_vm1 = vcmask 64512   ;;  %vm3501_vm2 = vmmov 0   ;;  %s6220_s1 = inlined_call_operand.vmem [shape: bf16[8,512], index: 1, kind: input, shape index: {}]   ;;  %s6221_s0 = inlined_call_operand.vmem [shape: f32[64,8], index: 0, kind: input, shape index: {}]   ;;  %s6222_s2 = inlined_call_operand.vmem [shape: bf16[128,512], index: 2, kind: input, shape index: {}]   ;;  %s6223_s3 = inlined_call_operand.vmem [shape: bf16[256,512], index: 3, kind: input, shape index: {}]   ;;  %s6224_s4 = inlined_call_operand.vmem [shape: f32[1,1792], index: 4, kind: input, shape index: {}]   ;;  %s6225_s5 = inlined_call_operand.vmem [shape: f32[128,128], index: 5, kind: input, shape index: {}]   ;;  %s6226_s6 = inlined_call_operand.vmem [shape: f32[128,128], index: 6, kind: input, shape index: {}]   ;;  %s6227_s7 = inlined_call_operand.vmem [shape: f32[8,128], index: 7, kind: output, shape index: {}]  }
   0x1   :  { %v47_v0 = vld [vmem:[%s6220_s1] sm:$0xff]  ;;  %v48_v1 = vld [vmem:[%s6220_s1 + $0x8] sm:$0xff]  ;;  %138 = vmatprep.mubr.bf16.mxu0 %v6228_v2  ;;  %211 = vmatprep.mubr.bf16.mxu1 %v6228_v2  ;;  %v37_v20 = vld [vmem:[%s6221_s0 + $0x10] sm:$0xff] }
   0x2   :  { %v35_v3 = vld [vmem:[%s6221_s0] sm:$0xff]  ;;  %v2777_v4 = vcombine.high %v47_v0, %v47_v0  ;;  %v2779_v5 = vcombine.high %v48_v1, %v48_v1  ;;  %v2776_v6 = vcombine.low %v47_v0, %v47_v0  ;;  %v2778_v7 = vcombine.low %v48_v1, %v48_v1  ;;  %v36_v8 = vld [vmem:[%s6221_s0 + $0x8] sm:$0xff]  ;;  %v38_v21 = vld [vmem:[%s6221_s0 + $0x18] sm:$0xff] }
   0x3   :  { %v3559_v9 = vld [vmem:[%s6222_s2 + $0xe4] ss:$16 sps:$4 sm:$0xff]   ;;  %v43_v12 = vpack.c.bf16 %v36_v8, %v35_v3  ;;  %v3564_v13 = vld [vmem:[%s6222_s2 + $0xec] ss:$16 sps:$4 sm:$0xff]   ;;  %v3569_v14 = vld [vmem:[%s6222_s2 + $0xe0] ss:$16 sps:$4 sm:$0xff]   ;;  %v44_v24 = vpack.c.bf16 %v38_v21, %v37_v20 }
   0x4   :  { %2780 = vmatprep.subr.msk.bf16.mxu0 %vm93_vm0, %v2777_v4  ;;  %2785 = vmatprep.subr.msk.bf16.mxu1 %vm93_vm0, %v2779_v5  ;;  %v95_v10 = vsel %vm93_vm0, %v2776_v6, 0  ;;  %v101_v11 = vsel %vm93_vm0, %v2778_v7, 0  ;;  %v3574_v15 = vld [vmem:[%s6222_s2 + $0xe8] ss:$16 sps:$4 sm:$0xff]   ;;  %v3581_v16 = vld [vmem:[%s6222_s2 + $0xc4] ss:$16 sps:$4 sm:$0xff]  }
   0x5   :  { %121 = vmatpush1.bf16.msra.mxu0 %v95_v10  ;;  %194 = vmatpush1.bf16.msra.mxu1 %v101_v11  ;;  %v3586_v17 = vld [vmem:[%s6222_s2 + $0xcc] ss:$16 sps:$4 sm:$0xff]   ;;  %v3591_v18 = vld [vmem:[%s6222_s2 + $0xc0] ss:$16 sps:$4 sm:$0xff]   ;;  %v3598_v19 = vld [vmem:[%s6222_s2 + $0xc8] ss:$16 sps:$4 sm:$0xff]  }
   0x6   :  { %480 = vmatprep.subr.bf16.mxu0 %v3559_v9  ;;  %521 = vmatprep.subr.bf16.mxu1 %v3564_v13  ;;  %v3613_v22 = vld [vmem:[%s6222_s2 + $0xa4] ss:$16 sps:$4 sm:$0xff]   ;;  %v3618_v23 = vld [vmem:[%s6222_s2 + $0xac] ss:$16 sps:$4 sm:$0xff]   ;;  %v3627_v25 = vld [vmem:[%s6222_s2 + $0xa0] ss:$16 sps:$4 sm:$0xff]  }
   0x7   :  { %v3632_v26 = vld [vmem:[%s6222_s2 + $0xa8] ss:$16 sps:$4 sm:$0xff]   ;;  %v3639_v27 = vld [vmem:[%s6222_s2 + $0x84] ss:$16 sps:$4 sm:$0xff]   ;;  %v3644_v28 = vld [vmem:[%s6222_s2 + $0x8c] ss:$16 sps:$4 sm:$0xff]  }
   0x8   :  { %2781 = vmatmul.mubr.msk.bf16.vlgmr.msra.gmra.mxu0 %vm80_vm1, %v43_v12  ;;  %2786 = vmatmul.mubr.msk.bf16.vlgmr.msra.gmra.mxu1 %vm80_vm1, %v43_v12  ;;  %v3649_v29 = vld [vmem:[%s6222_s2 + $0x80] ss:$16 sps:$4 sm:$0xff]   ;;  %v3654_v30 = vld [vmem:[%s6222_s2 + $0x88] ss:$16 sps:$4 sm:$0xff]   ;;  %v3669_v33 = vld [vmem:[%s6222_s2 + $0x64] ss:$16 sps:$4 sm:$0xff]  }
   0x9   :  { %481 = vmatpush1.bf16.msra.mxu0 %v3569_v14  ;;  %522 = vmatpush1.bf16.msra.mxu1 %v3574_v15  ;;  %v39_v31 = vld [vmem:[%s6221_s0 + $0x20] sm:$0xff]  ;;  %v40_v32 = vld [vmem:[%s6221_s0 + $0x28] sm:$0xff]  ;;  %v41_v42 = vld [vmem:[%s6221_s0 + $0x30] sm:$0xff] }
   0xa   :  { %482 = vmatprep.subr.bf16.mxu0 %v3581_v16  ;;  %523 = vmatprep.subr.bf16.mxu1 %v3586_v17  ;;  %v3676_v34 = vld [vmem:[%s6222_s2 + $0x6c] ss:$16 sps:$4 sm:$0xff]   ;;  %v45_v35 = vpack.c.bf16 %v40_v32, %v39_v31  ;;  %v3683_v36 = vld [vmem:[%s6222_s2 + $0x60] ss:$16 sps:$4 sm:$0xff]   ;;  %v3690_v37 = vld [vmem:[%s6222_s2 + $0x68] ss:$16 sps:$4 sm:$0xff]  }
   0xb   :  { %148 = vmatprep.mubr.bf16.mxu0 %v6228_v2  ;;  %221 = vmatprep.mubr.bf16.mxu1 %v6228_v2  ;;  %v3697_v38 = vld [vmem:[%s6222_s2 + $0x44] ss:$16 sps:$4 sm:$0xff]   ;;  %v3702_v39 = vld [vmem:[%s6222_s2 + $0x4c] ss:$16 sps:$4 sm:$0xff]   ;;  %v3709_v40 = vld [vmem:[%s6222_s2 + $0x40] ss:$16 sps:$4 sm:$0xff]  }
   0xc   :  { %v3716_v41 = vld [vmem:[%s6222_s2 + $0x48] ss:$16 sps:$4 sm:$0xff]   ;;  %v3729_v44 = vld [vmem:[%s6222_s2 + $0x24] ss:$16 sps:$4 sm:$0xff]   ;;  %v3734_v45 = vld [vmem:[%s6222_s2 + $0x2c] ss:$16 sps:$4 sm:$0xff]  }
   0xd   :  { %483 = vmatpush1.bf16.msra.mxu0 %v3591_v18  ;;  %524 = vmatpush1.bf16.msra.mxu1 %v3598_v19  ;;  %v42_v43 = vld [vmem:[%s6221_s0 + $0x38] sm:$0xff]  ;;  %v3743_v47 = vld [vmem:[%s6222_s2 + $0x20] ss:$16 sps:$4 sm:$0xff]   ;;  %v3755_v49 = vld [vmem:[%s6222_s2 + $0x4] ss:$16 sps:$4 sm:$0xff]  }
   0xe   :  { %484 = vmatprep.subr.bf16.mxu0 %v3613_v22  ;;  %525 = vmatprep.subr.bf16.mxu1 %v3618_v23  ;;  %v46_v46 = vpack.c.bf16 %v42_v43, %v41_v42  ;;  %v3748_v48 = vld [vmem:[%s6222_s2 + $0x28] ss:$16 sps:$4 sm:$0xff]   ;;  %v3760_v50 = vld [vmem:[%s6222_s2 + $0xc] ss:$16 sps:$4 sm:$0xff]   ;;  %v3769_v51 = vld [vmem:[%s6222_s2] ss:$16 sps:$4 sm:$0xff]  }
   0xf   :  { %v3774_v52 = vld [vmem:[%s6222_s2 + $0x8] ss:$16 sps:$4 sm:$0xff]   ;;  %v3789_v53 = vld [vmem:[%s6223_s3 + $0xe4] ss:$16 sps:$4 sm:$0xff]   ;;  %v3794_v54 = vld [vmem:[%s6223_s3 + $0xec] ss:$16 sps:$4 sm:$0xff]  }
  0x10   :  { %2782 = vmatmul.mubr.msk.bf16.gmra.mxu0 %vm80_vm1, %v44_v24  ;;  %2787 = vmatmul.mubr.msk.bf16.gmra.mxu1 %vm80_vm1, %v44_v24  ;;  %v3800_v55 = vld [vmem:[%s6223_s3 + $0xe0] ss:$16 sps:$4 sm:$0xff]   ;;  %v3805_v56 = vld [vmem:[%s6223_s3 + $0xe8] ss:$16 sps:$4 sm:$0xff]   ;;  %v3813_v57 = vld [vmem:[%s6223_s3 + $0xc4] ss:$16 sps:$4 sm:$0xff]  }
  0x11   :  { %485 = vmatpush1.bf16.msra.mxu0 %v3627_v25  ;;  %526 = vmatpush1.bf16.msra.mxu1 %v3632_v26  ;;  %v3818_v58 = vld [vmem:[%s6223_s3 + $0xcc] ss:$16 sps:$4 sm:$0xff]   ;;  %v3823_v59 = vld [vmem:[%s6223_s3 + $0xc0] ss:$16 sps:$4 sm:$0xff]   ;;  %v3828_v60 = vld [vmem:[%s6223_s3 + $0xc8] ss:$16 sps:$4 sm:$0xff]  }
  0x12   :  { %486 = vmatprep.subr.bf16.mxu0 %v3639_v27  ;;  %527 = vmatprep.subr.bf16.mxu1 %v3644_v28  ;;  %v3837_v61 = vld [vmem:[%s6223_s3 + $0xa4] ss:$16 sps:$4 sm:$0xff]   ;;  %v3842_v62 = vld [vmem:[%s6223_s3 + $0xac] ss:$16 sps:$4 sm:$0xff]   ;;  %v3847_v63 = vld [vmem:[%s6223_s3 + $0xa0] ss:$16 sps:$4 sm:$0xff]  }
  0x13   :  { %158 = vmatprep.mubr.bf16.mxu0 %v6228_v2  ;;  %231 = vmatprep.mubr.bf16.mxu1 %v6228_v2  ;;  %6586 = vst [vmem:[#allocation3_spill] sm:$0xff] %v3847_v63  ;;  %v3852_v0 = vld [vmem:[%s6223_s3 + $0xa8] ss:$16 sps:$4 sm:$0xff]   ;;  %v3861_v1 = vld [vmem:[%s6223_s3 + $0x84] ss:$16 sps:$4 sm:$0xff]  }
  0x14   :  { %6587 = vst [vmem:[#allocation4_spill] sm:$0xff] %v3852_v0  ;;  %6588 = vst [vmem:[#allocation5_spill] sm:$0xff] %v3861_v1  ;;  %v3866_v3 = vld [vmem:[%s6223_s3 + $0x8c] ss:$16 sps:$4 sm:$0xff]   ;;  %v3871_v4 = vld [vmem:[%s6223_s3 + $0x80] ss:$16 sps:$4 sm:$0xff]  }
  0x15   :  { %487 = vmatpush1.bf16.msra.mxu0 %v3649_v29  ;;  %528 = vmatpush1.bf16.msra.mxu1 %v3654_v30  ;;  %6589 = vst [vmem:[#allocation6_spill] sm:$0xff] %v3866_v3  ;;  %6590 = vst [vmem:[#allocation7_spill] sm:$0xff] %v3871_v4  ;;  %v3876_v5 = vld [vmem:[%s6223_s3 + $0x88] ss:$16 sps:$4 sm:$0xff]   ;;  %v3885_v6 = vld [vmem:[%s6223_s3 + $0x64] ss:$16 sps:$4 sm:$0xff]  }
  0x16   :  { %488 = vmatprep.subr.bf16.mxu0 %v3669_v33  ;;  %529 = vmatprep.subr.bf16.mxu1 %v3676_v34  ;;  %6591 = vst [vmem:[#allocation8_spill] sm:$0xff] %v3876_v5  ;;  %6592 = vst [vmem:[#allocation9_spill] sm:$0xff] %v3885_v6  ;;  %v3890_v7 = vld [vmem:[%s6223_s3 + $0x6c] ss:$16 sps:$4 sm:$0xff]   ;;  %v3895_v8 = vld [vmem:[%s6223_s3 + $0x60] ss:$16 sps:$4 sm:$0xff]  }
  0x17   :  { %6593 = vst [vmem:[#allocation10_spill] sm:$0xff] %v3890_v7  ;;  %6594 = vst [vmem:[#allocation11_spill] sm:$0xff] %v3895_v8  ;;  %v3900_v10 = vld [vmem:[%s6223_s3 + $0x68] ss:$16 sps:$4 sm:$0xff]   ;;  %v3909_v11 = vld [vmem:[%s6223_s3 + $0x44] ss:$16 sps:$4 sm:$0xff]  }
  0x18   :  { %2783 = vmatmul.mubr.msk.bf16.gmra.mxu0 %vm80_vm1, %v45_v35  ;;  %2788 = vmatmul.mubr.msk.bf16.gmra.mxu1 %vm80_vm1, %v45_v35  ;;  %6595 = vst [vmem:[#allocation12_spill] sm:$0xff] %v3900_v10  ;;  %6596 = vst [vmem:[#allocation13_spill] sm:$0xff] %v3909_v11  ;;  %v3914_v12 = vld [vmem:[%s6223_s3 + $0x4c] ss:$16 sps:$4 sm:$0xff]   ;;  %v3919_v20 = vld [vmem:[%s6223_s3 + $0x40] ss:$16 sps:$4 sm:$0xff]  }
  0x19   :  { %489 = vmatpush1.bf16.msra.mxu0 %v3683_v36  ;;  %530 = vmatpush1.bf16.msra.mxu1 %v3690_v37  ;;  %6597 = vst [vmem:[#allocation14_spill] sm:$0xff] %v3914_v12  ;;  %6598 = vst [vmem:[#allocation15_spill] sm:$0xff] %v3919_v20  ;;  %v3924_v21 = vld [vmem:[%s6223_s3 + $0x48] ss:$16 sps:$4 sm:$0xff]   ;;  %v3933_v24 = vld [vmem:[%s6223_s3 + $0x24] ss:$16 sps:$4 sm:$0xff]  }
  0x1a   :  { %490 = vmatprep.subr.bf16.mxu0 %v3697_v38  ;;  %531 = vmatprep.subr.bf16.mxu1 %v3702_v39  ;;  %6599 = vst [vmem:[#allocation16_spill] sm:$0xff] %v3924_v21  ;;  %6600 = vst [vmem:[#allocation17_spill] sm:$0xff] %v3933_v24  ;;  %v3938_v31 = vld [vmem:[%s6223_s3 + $0x2c] ss:$16 sps:$4 sm:$0xff]   ;;  %v3943_v32 = vld [vmem:[%s6223_s3 + $0x20] ss:$16 sps:$4 sm:$0xff]  }
  0x1b   :  { %168 = vmatprep.mubr.bf16.mxu0 %v6228_v2  ;;  %241 = vmatprep.mubr.bf16.mxu1 %v6228_v2  ;;  %6601 = vst [vmem:[#allocation18_spill] sm:$0xff] %v3938_v31  ;;  %6602 = vst [vmem:[#allocation19_spill] sm:$0xff] %v3943_v32  ;;  %v3948_v35 = vld [vmem:[%s6223_s3 + $0x28] ss:$16 sps:$4 sm:$0xff]   ;;  %v3957_v42 = vld [vmem:[%s6223_s3 + $0x4] ss:$16 sps:$4 sm:$0xff]  }
  0x1c   :  { %6603 = vst [vmem:[#allocation20_spill] sm:$0xff] %v3948_v35  ;;  %6604 = vst [vmem:[#allocation21_spill] sm:$0xff] %v3957_v42  ;;  %v3962_v43 = vld [vmem:[%s6223_s3 + $0xc] ss:$16 sps:$4 sm:$0xff]  }
  0x1d   :  { %491 = vmatpush1.bf16.msra.mxu0 %v3709_v40  ;;  %532 = vmatpush1.bf16.msra.mxu1 %v3716_v41  ;;  %6605 = vst [vmem:[#allocation22_spill] sm:$0xff] %v3962_v43 }
  0x1e   :  { %492 = vmatprep.subr.bf16.mxu0 %v3729_v44  ;;  %533 = vmatprep.subr.bf16.mxu1 %v3734_v45 }
  0x20   :  { %2784 = vmatmul.mubr.msk.bf16.gmra.mxu0 %vm80_vm1, %v46_v46  ;;  %2789 = vmatmul.mubr.msk.bf16.gmra.mxu1 %vm80_vm1, %v46_v46  ;;  %v3967_v46 = vld [vmem:[%s6223_s3] ss:$16 sps:$4 sm:$0xff]  }
  0x21   :  { %493 = vmatpush1.bf16.msra.mxu0 %v3743_v47  ;;  %534 = vmatpush1.bf16.msra.mxu1 %v3748_v48  ;;  %6606 = vst [vmem:[#allocation23_spill] sm:$0xff] %v3967_v46 }
  0x22   :  { %494 = vmatprep.subr.bf16.mxu0 %v3755_v49  ;;  %535 = vmatprep.subr.bf16.mxu1 %v3760_v50 }
  0x23   :  { %512 = vmatprep.mubr.bf16.mxu0 %v6228_v2  ;;  %553 = vmatprep.mubr.bf16.mxu1 %v6228_v2 }
  0x25   :  { %495 = vmatpush1.bf16.msra.mxu0 %v3769_v51  ;;  %536 = vmatpush1.bf16.msra.mxu1 %v3774_v52 }
  0x26   :  { %990 = vmatprep.subr.bf16.mxu0 %v3789_v53  ;;  %1031 = vmatprep.subr.bf16.mxu1 %v3794_v54 }
  0x28   :  { %513 = vmatmul.mubr.bf16.vlgmr.msra.gmra.mxu0 %v6228_v2  ;;  %554 = vmatmul.mubr.bf16.vlgmr.msra.gmra.mxu1 %v6228_v2 }
  0x29   :  { %1022 = vmatprep.mubr.bf16.mxu0 %v6228_v2  ;;  %1063 = vmatprep.mubr.bf16.mxu1 %v6228_v2  ;;  %v3972_v2 = vld [vmem:[%s6223_s3 + $0x8] ss:$16 sps:$4 sm:$0xff]  }
  0x2a   :  { %991 = vmatpush1.bf16.msra.mxu0 %v3800_v55  ;;  %1032 = vmatpush1.bf16.msra.mxu1 %v3805_v56  ;;  %6607 = vst [vmem:[#allocation24_spill] sm:$0xff] %v3972_v2 }
  0x2b   :  { %992 = vmatprep.subr.bf16.mxu0 %v3813_v57  ;;  %1033 = vmatprep.subr.bf16.mxu1 %v3818_v58 }
  0x2e   :  { %993 = vmatpush1.bf16.msra.mxu0 %v3823_v59  ;;  %1034 = vmatpush1.bf16.msra.mxu1 %v3828_v60 }
  0x2f   :  { %994 = vmatprep.subr.bf16.mxu0 %v3837_v61  ;;  %1035 = vmatprep.subr.bf16.mxu1 %v3842_v62 }
  0x32   :  { %995 = vmatpush1.bf16.msra.mxu0 %v3847_v63  ;;  %1036 = vmatpush1.bf16.msra.mxu1 %v3852_v0 }
  0x33   :  { %996 = vmatprep.subr.bf16.mxu0 %v3861_v1  ;;  %1037 = vmatprep.subr.bf16.mxu1 %v3866_v3 }
  0x36   :  { %997 = vmatpush1.bf16.msra.mxu0 %v3871_v4  ;;  %1038 = vmatpush1.bf16.msra.mxu1 %v3876_v5 }
  0x37   :  { %998 = vmatprep.subr.bf16.mxu0 %v3885_v6  ;;  %1039 = vmatprep.subr.bf16.mxu1 %v3890_v7 }
  0x3a   :  { %999 = vmatpush1.bf16.msra.mxu0 %v3895_v8  ;;  %1040 = vmatpush1.bf16.msra.mxu1 %v3900_v10 }
  0x3b   :  { %1000 = vmatprep.subr.bf16.mxu0 %v3909_v11  ;;  %1041 = vmatprep.subr.bf16.mxu1 %v3914_v12 }
  0x3e   :  { %1001 = vmatpush1.bf16.msra.mxu0 %v3919_v20  ;;  %1042 = vmatpush1.bf16.msra.mxu1 %v3924_v21 }
  0x3f   :  { %1002 = vmatprep.subr.bf16.mxu0 %v3933_v24  ;;  %1043 = vmatprep.subr.bf16.mxu1 %v3938_v31 }
  0x42   :  { %1003 = vmatpush1.bf16.msra.mxu0 %v3943_v32  ;;  %1044 = vmatpush1.bf16.msra.mxu1 %v3948_v35  ;;  %v3981_v35 = vld [vmem:[%s6223_s3 + $0x1e4] ss:$16 sps:$4 sm:$0xff]   ;;  %v3986_v32 = vld [vmem:[%s6223_s3 + $0x1ec] ss:$16 sps:$4 sm:$0xff]  }
  0x43   :  { %1004 = vmatprep.subr.bf16.mxu0 %v3957_v42  ;;  %1045 = vmatprep.subr.bf16.mxu1 %v3962_v43  ;;  %6608 = vst [vmem:[#allocation25_spill] sm:$0xff] %v3981_v35  ;;  %6609 = vst [vmem:[#allocation26_spill] sm:$0xff] %v3986_v32  ;;  %v3991_v42 = vld [vmem:[%s6223_s3 + $0x1e0] ss:$16 sps:$4 sm:$0xff]   ;;  %v4010_v43 = vld [vmem:[%s6223_s3 + $0x1cc] ss:$16 sps:$4 sm:$0xff]  }
  0x44   :  { %6610 = vst [vmem:[#allocation27_spill] sm:$0xff] %v3991_v42  ;;  %6613 = vst [vmem:[#allocation30_spill] sm:$0xff] %v4010_v43 }
  0x46   :  { %1005 = vmatpush1.bf16.msra.mxu0 %v3967_v46  ;;  %1046 = vmatpush1.bf16.msra.mxu1 %v3972_v2  ;;  %v3996_v46 = vld [vmem:[%s6223_s3 + $0x1e8] ss:$16 sps:$4 sm:$0xff]   ;;  %v4005_v2 = vld [vmem:[%s6223_s3 + $0x1c4] ss:$16 sps:$4 sm:$0xff]  }
  0x47   :  { %6611 = vst [vmem:[#allocation28_spill] sm:$0xff] %v3996_v46  ;;  %1006 = vmatprep.subr.bf16.mxu0 %v3981_v35  ;;  %1047 = vmatprep.subr.bf16.mxu1 %v3986_v32  ;;  %6612 = vst [vmem:[#allocation29_spill] sm:$0xff] %v4005_v2  ;;  %v4015_v35 = vld [vmem:[%s6223_s3 + $0x1c0] ss:$16 sps:$4 sm:$0xff]   ;;  %v4034_v32 = vld [vmem:[%s6223_s3 + $0x1ac] ss:$16 sps:$4 sm:$0xff]  }
  0x48   :  { %6614 = vst [vmem:[#allocation31_spill] sm:$0xff] %v4015_v35  ;;  %6617 = vst [vmem:[#allocation34_spill] sm:$0xff] %v4034_v32 }
  0x4a   :  { %1007 = vmatpush2.bf16.msra.mxu0 %v3991_v42  ;;  %1048 = vmatpush2.bf16.msra.mxu1 %v3996_v46  ;;  %v4020_v42 = vld [vmem:[%s6223_s3 + $0x1c8] ss:$16 sps:$4 sm:$0xff]   ;;  %v4029_v46 = vld [vmem:[%s6223_s3 + $0x1a4] ss:$16 sps:$4 sm:$0xff]  }
  0x4b   :  { %6615 = vst [vmem:[#allocation32_spill] sm:$0xff] %v4020_v42  ;;  %1008 = vmatprep.subr.bf16.mxu0 %v4005_v2  ;;  %1049 = vmatprep.subr.bf16.mxu1 %v4010_v43  ;;  %6616 = vst [vmem:[#allocation33_spill] sm:$0xff] %v4029_v46  ;;  %v4039_v2 = vld [vmem:[%s6223_s3 + $0x1a0] ss:$16 sps:$4 sm:$0xff]   ;;  %v4058_v43 = vld [vmem:[%s6223_s3 + $0x18c] ss:$16 sps:$4 sm:$0xff]  }
  0x4c   :  { %6618 = vst [vmem:[#allocation35_spill] sm:$0xff] %v4039_v2  ;;  %6621 = vst [vmem:[#allocation38_spill] sm:$0xff] %v4058_v43 }
  0x4e   :  { %1009 = vmatpush2.bf16.msra.mxu0 %v4015_v35  ;;  %1050 = vmatpush2.bf16.msra.mxu1 %v4020_v42  ;;  %v4044_v35 = vld [vmem:[%s6223_s3 + $0x1a8] ss:$16 sps:$4 sm:$0xff]   ;;  %v4053_v42 = vld [vmem:[%s6223_s3 + $0x184] ss:$16 sps:$4 sm:$0xff]  }
  0x4f   :  { %6619 = vst [vmem:[#allocation36_spill] sm:$0xff] %v4044_v35  ;;  %1010 = vmatprep.subr.bf16.mxu0 %v4029_v46  ;;  %1051 = vmatprep.subr.bf16.mxu1 %v4034_v32  ;;  %6620 = vst [vmem:[#allocation37_spill] sm:$0xff] %v4053_v42  ;;  %v4063_v46 = vld [vmem:[%s6223_s3 + $0x180] ss:$16 sps:$4 sm:$0xff]   ;;  %v4082_v32 = vld [vmem:[%s6223_s3 + $0x16c] ss:$16 sps:$4 sm:$0xff]  }
  0x50   :  { %6622 = vst [vmem:[#allocation39_spill] sm:$0xff] %v4063_v46  ;;  %6625 = vst [vmem:[#allocation42_spill] sm:$0xff] %v4082_v32 }
  0x52   :  { %1011 = vmatpush2.bf16.msra.mxu0 %v4039_v2  ;;  %1052 = vmatpush2.bf16.msra.mxu1 %v4044_v35  ;;  %v4068_v2 = vld [vmem:[%s6223_s3 + $0x188] ss:$16 sps:$4 sm:$0xff]   ;;  %v4077_v35 = vld [vmem:[%s6223_s3 + $0x164] ss:$16 sps:$4 sm:$0xff]  }
  0x53   :  { %6623 = vst [vmem:[#allocation40_spill] sm:$0xff] %v4068_v2  ;;  %1012 = vmatprep.subr.bf16.mxu0 %v4053_v42  ;;  %1053 = vmatprep.subr.bf16.mxu1 %v4058_v43  ;;  %6624 = vst [vmem:[#allocation41_spill] sm:$0xff] %v4077_v35  ;;  %v4087_v42 = vld [vmem:[%s6223_s3 + $0x160] ss:$16 sps:$4 sm:$0xff]   ;;  %v4106_v43 = vld [vmem:[%s6223_s3 + $0x14c] ss:$16 sps:$4 sm:$0xff]  }
  0x54   :  { %6626 = vst [vmem:[#allocation43_spill] sm:$0xff] %v4087_v42  ;;  %6629 = vst [vmem:[#allocation46_spill] sm:$0xff] %v4106_v43 }
  0x56   :  { %1013 = vmatpush2.bf16.msra.mxu0 %v4063_v46  ;;  %1054 = vmatpush2.bf16.msra.mxu1 %v4068_v2  ;;  %v4092_v46 = vld [vmem:[%s6223_s3 + $0x168] ss:$16 sps:$4 sm:$0xff]   ;;  %v4101_v2 = vld [vmem:[%s6223_s3 + $0x144] ss:$16 sps:$4 sm:$0xff]  }
  0x57   :  { %6627 = vst [vmem:[#allocation44_spill] sm:$0xff] %v4092_v46  ;;  %1014 = vmatprep.subr.bf16.mxu0 %v4077_v35  ;;  %1055 = vmatprep.subr.bf16.mxu1 %v4082_v32  ;;  %6628 = vst [vmem:[#allocation45_spill] sm:$0xff] %v4101_v2  ;;  %v4111_v35 = vld [vmem:[%s6223_s3 + $0x140] ss:$16 sps:$4 sm:$0xff]   ;;  %v4130_v32 = vld [vmem:[%s6223_s3 + $0x12c] ss:$16 sps:$4 sm:$0xff]  }
  0x58   :  { %6630 = vst [vmem:[#allocation47_spill] sm:$0xff] %v4111_v35  ;;  %6633 = vst [vmem:[#allocation50_spill] sm:$0xff] %v4130_v32 }
  0x5a   :  { %1015 = vmatpush2.bf16.msra.mxu0 %v4087_v42  ;;  %1056 = vmatpush2.bf16.msra.mxu1 %v4092_v46  ;;  %v4116_v42 = vld [vmem:[%s6223_s3 + $0x148] ss:$16 sps:$4 sm:$0xff]   ;;  %v4125_v46 = vld [vmem:[%s6223_s3 + $0x124] ss:$16 sps:$4 sm:$0xff]  }
  0x5b   :  { %6631 = vst [vmem:[#allocation48_spill] sm:$0xff] %v4116_v42  ;;  %1016 = vmatprep.subr.bf16.mxu0 %v4101_v2  ;;  %1057 = vmatprep.subr.bf16.mxu1 %v4106_v43  ;;  %6632 = vst [vmem:[#allocation49_spill] sm:$0xff] %v4125_v46  ;;  %v4135_v2 = vld [vmem:[%s6223_s3 + $0x120] ss:$16 sps:$4 sm:$0xff]   ;;  %v4154_v43 = vld [vmem:[%s6223_s3 + $0x10c] ss:$16 sps:$4 sm:$0xff]  }
  0x5c   :  { %6634 = vst [vmem:[#allocation51_spill] sm:$0xff] %v4135_v2  ;;  %6637 = vst [vmem:[#allocation54_spill] sm:$0xff] %v4154_v43 }
  0x5e   :  { %1017 = vmatpush2.bf16.msra.mxu0 %v4111_v35  ;;  %1058 = vmatpush2.bf16.msra.mxu1 %v4116_v42  ;;  %v4140_v35 = vld [vmem:[%s6223_s3 + $0x128] ss:$16 sps:$4 sm:$0xff]   ;;  %v4149_v42 = vld [vmem:[%s6223_s3 + $0x104] ss:$16 sps:$4 sm:$0xff]  }
  0x5f   :  { %6635 = vst [vmem:[#allocation52_spill] sm:$0xff] %v4140_v35  ;;  %1018 = vmatprep.subr.bf16.mxu0 %v4125_v46  ;;  %1059 = vmatprep.subr.bf16.mxu1 %v4130_v32  ;;  %6636 = vst [vmem:[#allocation53_spill] sm:$0xff] %v4149_v42  ;;  %v4159_v46 = vld [vmem:[%s6223_s3 + $0x100] ss:$16 sps:$4 sm:$0xff]  }
  0x60   :  { %6638 = vst [vmem:[#allocation55_spill] sm:$0xff] %v4159_v46 }
  0x62   :  { %1019 = vmatpush2.bf16.msra.mxu0 %v4135_v2  ;;  %1060 = vmatpush2.bf16.msra.mxu1 %v4140_v35  ;;  %v4164_v2 = vld [vmem:[%s6223_s3 + $0x108] ss:$16 sps:$4 sm:$0xff]   ;;  %v50_v35 = vlaneseq }
  0x63   :  { %6639 = vst [vmem:[#allocation56_spill] sm:$0xff] %v4164_v2  ;;  %1020 = vmatprep.subr.bf16.mxu0 %v4149_v42  ;;  %1061 = vmatprep.subr.bf16.mxu1 %v4154_v43 }
  0x64   :  { %v4172_v32 = vshrl.u32 %v50_v35, 7 }
  0x66   :  { %1021 = vmatpush2.bf16.msra.mxu0 %v4159_v46  ;;  %1062 = vmatpush2.bf16.msra.mxu1 %v4164_v2  ;;  %6640 = vst [vmem:[#allocation57_spill] sm:$0xff] %v4172_v32  ;;  %v6324_v31 = vsub.s32 2, %v4172_v32  ;;  %v4176_v24 = vsub.s32 0, %v4172_v32  ;;  %v27_v46 = vld [vmem:[%s6224_s4] sm:$0xf]  ;;  %v6642_v20 = vsub.s32 3, %v4172_v32 }
  0x67   :  { %1095 = vmatprep.subr.bf16.mxu0 %v3559_v9  ;;  %1136 = vmatprep.subr.bf16.mxu1 %v3564_v13  ;;  %v6339_v13 = vsub.s32 1, %v4172_v32 }
  0x68   :  { %6641 = vst [vmem:[#allocation58_spill] sm:$0xff] %v4176_v24  ;;  %v4188_v9 = vrot.slane %v27_v46, %v6324_v31  ;;  %v53_v42 = vrot.slane %v27_v46, %v4176_v24  ;;  %v4198_v12 = vrot.slane %v27_v46, %v6642_v20 }
  0x69   :  { %v57_v8 = vrot.slane %v27_v46, %v6339_v13 }
  0xc8   :  { %v4182_v43 = vpop.f32.mrf.mxu0  ;;  %v4184_v2 = vpop.f32.mrf.mxu1 }
  0xc9   :  { %v214_v63 = vadd.f32 %v4184_v2, %v4188_v9 }
  0xca   :  { %v4191_v35 = vpop.f32.mrf.mxu0  ;;  %v4193_v21 = vpop.f32.mrf.mxu1 }
  0xcc   :  { %v144_v11 = vpop.f32.mrf.mxu0  ;;  %v217_v10 = vpop.f32.mrf.mxu1 }
  0xcd   :  { %v4202_v7 = vadd.f32 %v144_v11, %v53_v42  ;;  %v4205_v31 = vadd.f32 %v217_v10, %v4188_v9 }
  0xce   :  { %v146_v6 = vpop.f32.mrf.mxu0  ;;  %v219_v5 = vpop.f32.mrf.mxu1 }
  0xcf   :  { %6643 = vst [vmem:[#allocation59_spill] sm:$0xff] %v4202_v7  ;;  %6644 = vst [vmem:[#allocation60_spill] sm:$0xff] %v4205_v31  ;;  %v4207_v4 = vadd.f32 %v146_v6, %v57_v8  ;;  %v4210_v24 = vadd.f32 %v219_v5, %v4198_v12 }
  0xd0   :  { %v150_v3 = vpop.f32.mrf.mxu0  ;;  %v223_v20 = vpop.f32.mrf.mxu1 }
  0xd1   :  { %6645 = vst [vmem:[#allocation61_spill] sm:$0xff] %v4207_v4  ;;  %6646 = vst [vmem:[#allocation62_spill] sm:$0xff] %v4210_v24  ;;  %v4212_v1 = vadd.f32 %v150_v3, %v53_v42  ;;  %v4215_v0 = vadd.f32 %v223_v20, %v4188_v9 }
  0xd2   :  { %v152_v46 = vpop.f32.mrf.mxu0  ;;  %v225_v11 = vpop.f32.mrf.mxu1 }
  0xd3   :  { %6647 = vst [vmem:[#allocation63_spill] sm:$0xff] %v4212_v1  ;;  %6648 = vst [vmem:[#allocation64_spill] sm:$0xff] %v4215_v0  ;;  %v4217_v13 = vadd.f32 %v152_v46, %v57_v8  ;;  %v4220_v10 = vadd.f32 %v225_v11, %v4198_v12 }
  0xd4   :  { %v154_v31 = vpop.f32.mrf.mxu0  ;;  %v227_v6 = vpop.f32.mrf.mxu1 }
  0xd5   :  { %6649 = vst [vmem:[#allocation65_spill] sm:$0xff] %v4217_v13  ;;  %6650 = vst [vmem:[#allocation66_spill] sm:$0xff] %v4220_v10  ;;  %v4222_v4 = vadd.f32 %v154_v31, %v53_v42  ;;  %v4225_v5 = vadd.f32 %v227_v6, %v4188_v9 }
  0xd6   :  { %v156_v24 = vpop.f32.mrf.mxu0  ;;  %v229_v3 = vpop.f32.mrf.mxu1 }
  0xd7   :  { %6651 = vst [vmem:[#allocation67_spill] sm:$0xff] %v4222_v4  ;;  %6652 = vst [vmem:[#allocation68_spill] sm:$0xff] %v4225_v5  ;;  %v4227_v1 = vadd.f32 %v156_v24, %v57_v8  ;;  %v4230_v20 = vadd.f32 %v229_v3, %v4198_v12 }
  0xd8   :  { %v160_v0 = vpop.f32.mrf.mxu0  ;;  %v233_v46 = vpop.f32.mrf.mxu1 }
  0xd9   :  { %6653 = vst [vmem:[#allocation69_spill] sm:$0xff] %v4227_v1  ;;  %6654 = vst [vmem:[#allocation70_spill] sm:$0xff] %v4230_v20  ;;  %v4232_v13 = vadd.f32 %v160_v0, %v53_v42  ;;  %v4235_v11 = vadd.f32 %v233_v46, %v4188_v9 }
  0xda   :  { %v162_v10 = vpop.f32.mrf.mxu0  ;;  %v235_v31 = vpop.f32.mrf.mxu1 }
  0xdb   :  { %6655 = vst [vmem:[#allocation71_spill] sm:$0xff] %v4232_v13  ;;  %6656 = vst [vmem:[#allocation72_spill] sm:$0xff] %v4235_v11  ;;  %v4237_v4 = vadd.f32 %v162_v10, %v57_v8  ;;  %v4240_v6 = vadd.f32 %v235_v31, %v4198_v12 }
  0xdc   :  { %v164_v5 = vpop.f32.mrf.mxu0  ;;  %v237_v24 = vpop.f32.mrf.mxu1 }
  0xdd   :  { %6657 = vst [vmem:[#allocation73_spill] sm:$0xff] %v4237_v4  ;;  %6658 = vst [vmem:[#allocation74_spill] sm:$0xff] %v4240_v6  ;;  %v4242_v1 = vadd.f32 %v164_v5, %v53_v42  ;;  %v4245_v3 = vadd.f32 %v237_v24, %v4188_v9 }
  0xde   :  { %v166_v20 = vpop.f32.mrf.mxu0  ;;  %v239_v0 = vpop.f32.mrf.mxu1 }
  0xdf   :  { %6659 = vst [vmem:[#allocation75_spill] sm:$0xff] %v4242_v1  ;;  %6660 = vst [vmem:[#allocation76_spill] sm:$0xff] %v4245_v3  ;;  %v4247_v13 = vadd.f32 %v166_v20, %v57_v8  ;;  %v4250_v46 = vadd.f32 %v239_v0, %v4198_v12 }
  0xe0   :  { %v170_v11 = vpop.f32.mrf.mxu0  ;;  %v243_v10 = vpop.f32.mrf.mxu1 }
  0xe1   :  { %6661 = vst [vmem:[#allocation77_spill] sm:$0xff] %v4247_v13  ;;  %6662 = vst [vmem:[#allocation78_spill] sm:$0xff] %v4250_v46  ;;  %v4252_v4 = vadd.f32 %v170_v11, %v53_v42  ;;  %v4255_v31 = vadd.f32 %v243_v10, %v4188_v9 }
  0xe2   :  { %v172_v6 = vpop.f32.mrf.mxu0  ;;  %v245_v5 = vpop.f32.mrf.mxu1 }
  0xe3   :  { %6663 = vst [vmem:[#allocation79_spill] sm:$0xff] %v4252_v4  ;;  %6664 = vst [vmem:[#allocation80_spill] sm:$0xff] %v4255_v31  ;;  %v4257_v1 = vadd.f32 %v172_v6, %v57_v8  ;;  %v4260_v24 = vadd.f32 %v245_v5, %v4198_v12  ;;  %v141_v4 = vadd.f32 %v4182_v43, %v53_v42 }
  0xe4   :  { %v174_v3 = vpop.f32.mrf.mxu0  ;;  %v247_v20 = vpop.f32.mrf.mxu1  ;;  %v143_v5 = vadd.f32 %v4191_v35, %v57_v8 }
  0xe5   :  { %6665 = vst [vmem:[#allocation81_spill] sm:$0xff] %v4257_v1  ;;  %6666 = vst [vmem:[#allocation82_spill] sm:$0xff] %v4260_v24  ;;  %v4262_v13 = vadd.f32 %v174_v3, %v53_v42  ;;  %v4265_v0 = vadd.f32 %v247_v20, %v4188_v9 }
  0xe6   :  { %v176_v46 = vpop.f32.mrf.mxu0  ;;  %v249_v11 = vpop.f32.mrf.mxu1 }
  0xe7   :  { %6667 = vst [vmem:[#allocation83_spill] sm:$0xff] %v4262_v13  ;;  %6668 = vst [vmem:[#allocation84_spill] sm:$0xff] %v4265_v0  ;;  %v4268_v10 = vadd.f32 %v176_v46, %v57_v8  ;;  %v4271_v31 = vadd.f32 %v249_v11, %v4198_v12 }
  0xe8   :  { %v514_v6 = vpop.f32.mrf.mxu0  ;;  %v555_v1 = vpop.f32.mrf.mxu1 }
  0xe9   :  { %6669 = vst [vmem:[#allocation85_spill] sm:$0xff] %v4268_v10  ;;  %6670 = vst [vmem:[#allocation86_spill] sm:$0xff] %v4271_v31  ;;  %v562_v24 = vadd.f32 %v514_v6, %v141_v4  ;;  %v564_v11 = vadd.f32 %v555_v1, %v214_v63  ;;  %v216_v31 = vadd.f32 %v4193_v21, %v4198_v12  ;;  %v4386_v10 = vld [vmem:[%s6222_s2 + $0xec] ss:$16 sps:$4 sm:$0xff]  }
  0xea   :  { %v516_v7 = vpop.f32.mrf.mxu0  ;;  %v557_v3 = vpop.f32.mrf.mxu1 }
  0xeb   :  { %v566_v13 = vmul.f32 0.5, %v562_v24  ;;  %v563_v32 = vadd.f32 %v516_v7, %v143_v5  ;;  %v565_v4 = vadd.f32 %v557_v3, %v216_v31 }
  0xec   :  { %v518_v20 = vpop.f32.mrf.mxu0  ;;  %v559_v0 = vpop.f32.mrf.mxu1 }
  0xed   :  { %3145 = vtanh.f32 %v566_v13  ;;  %v570_v42 = vmul.f32 0.5, %v563_v32  ;;  %v575_v8 = vmul.f32 0.5, %v565_v4  ;;  %v6671_v20 = vmov 0   ;;  %v6710_v4 = vld [vmem:[#allocation41_spill] sm:$0xff] }
  0xee   :  { %v519_v43 = vpop.f32.mrf.mxu0  ;;  %v560_v46 = vpop.f32.mrf.mxu1 }
  0xef   :  { %3147 = vtanh.f32 %v570_v42  ;;  %v6706_v42 = vld [vmem:[#allocation37_spill] sm:$0xff]  ;;  %v6707_v43 = vld [vmem:[#allocation38_spill] sm:$0xff]  ;;  %v6708_v46 = vld [vmem:[#allocation39_spill] sm:$0xff] }
  0xf0   :  { %3149 = vtanh.f32 %v564_v11  ;;  %v6709_v11 = vld [vmem:[#allocation40_spill] sm:$0xff] }
  0xf1   :  { %3151 = vtanh.f32 %v575_v8  ;;  %v6711_v8 = vld [vmem:[#allocation42_spill] sm:$0xff] }
  0xfa   :  { %v3146_v35 = vpop.eup %3145 }
  0xfb   :  { %v568_v24 = vmul.f32 0.5, %v3146_v35  ;;  %v6712_v35 = vld [vmem:[#allocation43_spill] sm:$0xff] }
  0xfc   :  { %v3148_v7 = vpop.eup %3147 }
  0xfd   :  { %v569_v6 = vadd.f32 0.5, %v568_v24  ;;  %v572_v0 = vmul.f32 0.5, %v3148_v7  ;;  %v3150_v2 = vpop.eup %3149  ;;  %v6713_v24 = vld [vmem:[#allocation44_spill] sm:$0xff]  ;;  %v6714_v7 = vld [vmem:[#allocation45_spill] sm:$0xff] }
  0xfe   :  { %v3152_v63 = vpop.eup %3151 }
  0xff   :  { %v573_v5 = vadd.f32 0.5, %v572_v0  ;;  %v580_v32 = vmul.f32 %v3150_v2, %v569_v6  ;;  %v577_v1 = vmul.f32 0.5, %v3152_v63  ;;  %v6715_v6 = vld [vmem:[#allocation46_spill] sm:$0xff]  ;;  %v6716_v0 = vld [vmem:[#allocation47_spill] sm:$0xff]  ;;  %v6718_v2 = vld [vmem:[#allocation49_spill] sm:$0xff] }
 0x100   :  { %v6721_v63 = vld [vmem:[#allocation52_spill] sm:$0xff] }
 0x101   :  { %v579_v9 = vmul.f32 0.0, %v573_v5  ;;  %v578_v12 = vadd.f32 0.5, %v577_v1  ;;  %v6717_v5 = vld [vmem:[#allocation48_spill] sm:$0xff]  ;;  %v6722_v1 = vld [vmem:[#allocation53_spill] sm:$0xff] }
 0x103   :  { %v4278_v13 = vadd.f32 %v580_v32, %v579_v9  ;;  %v6719_v9 = vld [vmem:[#allocation50_spill] sm:$0xff]  ;;  %v6720_v32 = vld [vmem:[#allocation51_spill] sm:$0xff] }
 0x105   :  { %3153 = vtanh.f32 %v4278_v13 }
 0x112   :  { %v3154_v21 = vpop.eup %3153 }
 0x113   :  { %v583_v31 = vmul.f32 %v3154_v21, %v578_v12  ;;  %v6723_v12 = vld [vmem:[#allocation54_spill] sm:$0xff]  ;;  %v6724_v21 = vld [vmem:[#allocation55_spill] sm:$0xff] }
 0x115   :  { %v584_v3 = vpack.c.bf16 %v583_v31, %v583_v31  ;;  %v6725_v31 = vld [vmem:[#allocation56_spill] sm:$0xff] }
 0x117   :  { %1023 = vmatmul.mubr.bf16.vlgmr.msra.gmra.mxu0 %v584_v3  ;;  %1064 = vmatmul.mubr.bf16.vlgmr.msra.gmra.mxu1 %v584_v3 }
 0x118   :  { %1096 = vmatpush1.bf16.msra.mxu0 %v3569_v14  ;;  %1137 = vmatpush1.bf16.msra.mxu1 %v3574_v15  ;;  %v6672_v14 = vld [vmem:[#allocation3_spill] sm:$0xff]  ;;  %v6673_v15 = vld [vmem:[#allocation4_spill] sm:$0xff] }
 0x119   :  { %1097 = vmatprep.subr.bf16.mxu0 %v3581_v16  ;;  %1138 = vmatprep.subr.bf16.mxu1 %v3586_v17  ;;  %v6674_v16 = vld [vmem:[#allocation5_spill] sm:$0xff]  ;;  %v6675_v17 = vld [vmem:[#allocation6_spill] sm:$0xff]  ;;  %6727 = vst [vmem:[#allocation4_spill] sm:$0xff] %v4386_v10 }
 0x11a   :  { %1127 = vmatprep.mubr.bf16.mxu0 %v6671_v20  ;;  %1168 = vmatprep.mubr.bf16.mxu1 %v6671_v20 }
 0x11c   :  { %1098 = vmatpush1.bf16.msra.mxu0 %v3591_v18  ;;  %1139 = vmatpush1.bf16.msra.mxu1 %v3598_v19  ;;  %v6676_v18 = vld [vmem:[#allocation7_spill] sm:$0xff]  ;;  %v6677_v19 = vld [vmem:[#allocation8_spill] sm:$0xff] }
 0x11d   :  { %1099 = vmatprep.subr.bf16.mxu0 %v3613_v22  ;;  %1140 = vmatprep.subr.bf16.mxu1 %v3618_v23  ;;  %v6678_v22 = vld [vmem:[#allocation9_spill] sm:$0xff]  ;;  %v6679_v23 = vld [vmem:[#allocation10_spill] sm:$0xff] }
 0x120   :  { %1100 = vmatpush1.bf16.msra.mxu0 %v3627_v25  ;;  %1141 = vmatpush1.bf16.msra.mxu1 %v3632_v26  ;;  %v6680_v25 = vld [vmem:[#allocation11_spill] sm:$0xff]  ;;  %v6681_v26 = vld [vmem:[#allocation12_spill] sm:$0xff] }
 0x121   :  { %1101 = vmatprep.subr.bf16.mxu0 %v3639_v27  ;;  %1142 = vmatprep.subr.bf16.mxu1 %v3644_v28  ;;  %v6682_v27 = vld [vmem:[#allocation13_spill] sm:$0xff]  ;;  %v6683_v28 = vld [vmem:[#allocation14_spill] sm:$0xff] }
 0x124   :  { %1102 = vmatpush1.bf16.msra.mxu0 %v3649_v29  ;;  %1143 = vmatpush1.bf16.msra.mxu1 %v3654_v30  ;;  %v6684_v29 = vld [vmem:[#allocation15_spill] sm:$0xff]  ;;  %v6685_v30 = vld [vmem:[#allocation16_spill] sm:$0xff] }
 0x125   :  { %1103 = vmatprep.subr.bf16.mxu0 %v3669_v33  ;;  %1144 = vmatprep.subr.bf16.mxu1 %v3676_v34  ;;  %v6686_v33 = vld [vmem:[#allocation17_spill] sm:$0xff]  ;;  %v6687_v34 = vld [vmem:[#allocation18_spill] sm:$0xff] }
 0x128   :  { %1104 = vmatpush1.bf16.msra.mxu0 %v3683_v36  ;;  %1145 = vmatpush1.bf16.msra.mxu1 %v3690_v37  ;;  %v6688_v36 = vld [vmem:[#allocation19_spill] sm:$0xff]  ;;  %v6689_v37 = vld [vmem:[#allocation20_spill] sm:$0xff] }
 0x129   :  { %1105 = vmatprep.subr.bf16.mxu0 %v3697_v38  ;;  %1146 = vmatprep.subr.bf16.mxu1 %v3702_v39  ;;  %v6690_v38 = vld [vmem:[#allocation21_spill] sm:$0xff]  ;;  %v6691_v39 = vld [vmem:[#allocation22_spill] sm:$0xff] }
 0x12c   :  { %1106 = vmatpush1.bf16.msra.mxu0 %v3709_v40  ;;  %1147 = vmatpush1.bf16.msra.mxu1 %v3716_v41  ;;  %v6692_v40 = vld [vmem:[#allocation23_spill] sm:$0xff]  ;;  %v6693_v41 = vld [vmem:[#allocation24_spill] sm:$0xff] }
 0x12d   :  { %1107 = vmatprep.subr.bf16.mxu0 %v3729_v44  ;;  %1148 = vmatprep.subr.bf16.mxu1 %v3734_v45  ;;  %v6694_v44 = vld [vmem:[#allocation25_spill] sm:$0xff]  ;;  %v6695_v45 = vld [vmem:[#allocation26_spill] sm:$0xff] }
 0x130   :  { %1108 = vmatpush1.bf16.msra.mxu0 %v3743_v47  ;;  %1149 = vmatpush1.bf16.msra.mxu1 %v3748_v48  ;;  %v6696_v47 = vld [vmem:[#allocation27_spill] sm:$0xff]  ;;  %v6697_v48 = vld [vmem:[#allocation28_spill] sm:$0xff] }
 0x131   :  { %1109 = vmatprep.subr.bf16.mxu0 %v3755_v49  ;;  %1150 = vmatprep.subr.bf16.mxu1 %v3760_v50  ;;  %v6698_v49 = vld [vmem:[#allocation29_spill] sm:$0xff]  ;;  %v6699_v50 = vld [vmem:[#allocation30_spill] sm:$0xff] }
 0x134   :  { %1110 = vmatpush1.bf16.msra.mxu0 %v3769_v51  ;;  %1151 = vmatpush1.bf16.msra.mxu1 %v3774_v52  ;;  %v6700_v51 = vld [vmem:[#allocation31_spill] sm:$0xff]  ;;  %v6701_v52 = vld [vmem:[#allocation32_spill] sm:$0xff] }
 0x135   :  { %1200 = vmatprep.subr.bf16.mxu0 %v3789_v53  ;;  %1241 = vmatprep.subr.bf16.mxu1 %v3794_v54  ;;  %v6702_v53 = vld [vmem:[#allocation33_spill] sm:$0xff]  ;;  %v6703_v54 = vld [vmem:[#allocation34_spill] sm:$0xff] }
 0x137   :  { %1128 = vmatmul.mubr.bf16.vlgmr.msra.gmra.mxu0 %v584_v3  ;;  %1169 = vmatmul.mubr.bf16.vlgmr.msra.gmra.mxu1 %v584_v3  ;;  %v4380_v3 = vld [vmem:[%s6222_s2 + $0xe4] ss:$16 sps:$4 sm:$0xff]  }
 0x138   :  { %1201 = vmatpush1.bf16.msra.mxu0 %v3800_v55  ;;  %1242 = vmatpush1.bf16.msra.mxu1 %v3805_v56  ;;  %v6704_v55 = vld [vmem:[#allocation35_spill] sm:$0xff]  ;;  %v6705_v56 = vld [vmem:[#allocation36_spill] sm:$0xff]  ;;  %6726 = vst [vmem:[#allocation3_spill] sm:$0xff] %v4380_v3 }
 0x139   :  { %1202 = vmatprep.subr.bf16.mxu0 %v3813_v57  ;;  %1243 = vmatprep.subr.bf16.mxu1 %v3818_v58 }
 0x13c   :  { %1203 = vmatpush1.bf16.msra.mxu0 %v3823_v59  ;;  %1244 = vmatpush1.bf16.msra.mxu1 %v3828_v60 }
 0x13d   :  { %1204 = vmatprep.subr.bf16.mxu0 %v3837_v61  ;;  %1245 = vmatprep.subr.bf16.mxu1 %v3842_v62 }
 0x140   :  { %1205 = vmatpush1.bf16.msra.mxu0 %v6672_v14  ;;  %1246 = vmatpush1.bf16.msra.mxu1 %v6673_v15 }
 0x141   :  { %1206 = vmatprep.subr.bf16.mxu0 %v6674_v16  ;;  %1247 = vmatprep.subr.bf16.mxu1 %v6675_v17 }
 0x144   :  { %1207 = vmatpush1.bf16.msra.mxu0 %v6676_v18  ;;  %1248 = vmatpush1.bf16.msra.mxu1 %v6677_v19 }
 0x145   :  { %1208 = vmatprep.subr.bf16.mxu0 %v6678_v22  ;;  %1249 = vmatprep.subr.bf16.mxu1 %v6679_v23 }
 0x148   :  { %1209 = vmatpush1.bf16.msra.mxu0 %v6680_v25  ;;  %1250 = vmatpush1.bf16.msra.mxu1 %v6681_v26 }
 0x149   :  { %1210 = vmatprep.subr.bf16.mxu0 %v6682_v27  ;;  %1251 = vmatprep.subr.bf16.mxu1 %v6683_v28 }
 0x14c   :  { %1211 = vmatpush1.bf16.msra.mxu0 %v6684_v29  ;;  %1252 = vmatpush1.bf16.msra.mxu1 %v6685_v30 }
 0x14d   :  { %1212 = vmatprep.subr.bf16.mxu0 %v6686_v33  ;;  %1253 = vmatprep.subr.bf16.mxu1 %v6687_v34 }
 0x150   :  { %1213 = vmatpush1.bf16.msra.mxu0 %v6688_v36  ;;  %1254 = vmatpush1.bf16.msra.mxu1 %v6689_v37 }
 0x151   :  { %1214 = vmatprep.subr.bf16.mxu0 %v6690_v38  ;;  %1255 = vmatprep.subr.bf16.mxu1 %v6691_v39 }
 0x154   :  { %1215 = vmatpush1.bf16.msra.mxu0 %v6692_v40  ;;  %1256 = vmatpush1.bf16.msra.mxu1 %v6693_v41 }
 0x155   :  { %1216 = vmatprep.subr.bf16.mxu0 %v6694_v44  ;;  %1257 = vmatprep.subr.bf16.mxu1 %v6695_v45 }
 0x158   :  { %1217 = vmatpush2.bf16.msra.mxu0 %v6696_v47  ;;  %1258 = vmatpush2.bf16.msra.mxu1 %v6697_v48 }
 0x159   :  { %1218 = vmatprep.subr.bf16.mxu0 %v6698_v49  ;;  %1259 = vmatprep.subr.bf16.mxu1 %v6699_v50 }
 0x15c   :  { %1219 = vmatpush2.bf16.msra.mxu0 %v6700_v51  ;;  %1260 = vmatpush2.bf16.msra.mxu1 %v6701_v52 }
 0x15d   :  { %1220 = vmatprep.subr.bf16.mxu0 %v6702_v53  ;;  %1261 = vmatprep.subr.bf16.mxu1 %v6703_v54 }
 0x160   :  { %1221 = vmatpush2.bf16.msra.mxu0 %v6704_v55  ;;  %1262 = vmatpush2.bf16.msra.mxu1 %v6705_v56 }
 0x161   :  { %1222 = vmatprep.subr.bf16.mxu0 %v6706_v42  ;;  %1263 = vmatprep.subr.bf16.mxu1 %v6707_v43 }
 0x164   :  { %1223 = vmatpush2.bf16.msra.mxu0 %v6708_v46  ;;  %1264 = vmatpush2.bf16.msra.mxu1 %v6709_v11 }
 0x165   :  { %1224 = vmatprep.subr.bf16.mxu0 %v6710_v4  ;;  %1265 = vmatprep.subr.bf16.mxu1 %v6711_v8 }
 0x168   :  { %1225 = vmatpush2.bf16.msra.mxu0 %v6712_v35  ;;  %1266 = vmatpush2.bf16.msra.mxu1 %v6713_v24 }
 0x169   :  { %1226 = vmatprep.subr.bf16.mxu0 %v6714_v7  ;;  %1267 = vmatprep.subr.bf16.mxu1 %v6715_v6 }
 0x16c   :  { %1227 = vmatpush2.bf16.msra.mxu0 %v6716_v0  ;;  %1268 = vmatpush2.bf16.msra.mxu1 %v6717_v5 }
 0x16d   :  { %1228 = vmatprep.subr.bf16.mxu0 %v6718_v2  ;;  %1269 = vmatprep.subr.bf16.mxu1 %v6719_v9 }
 0x170   :  { %1229 = vmatpush2.bf16.msra.mxu0 %v6720_v32  ;;  %1270 = vmatpush2.bf16.msra.mxu1 %v6721_v63 }
 0x171   :  { %1230 = vmatprep.subr.bf16.mxu0 %v6722_v1  ;;  %1271 = vmatprep.subr.bf16.mxu1 %v6723_v12  ;;  %v6728_v12 = vld [vmem:[#allocation58_spill] sm:$0xff]  ;;  %v6730_v1 = vld [vmem:[#allocation57_spill] sm:$0xff] }
 0x172   :  { %v6731_v63 = vsub.s32 1, %v6730_v1 }
 0x174   :  { %1231 = vmatpush2.bf16.msra.mxu0 %v6724_v21  ;;  %1272 = vmatpush2.bf16.msra.mxu1 %v6725_v31  ;;  %v28_v21 = vld [vmem:[%s6224_s4 + $0x4] sm:$0xf] }
 0x175   :  { %1305 = vmatprep.subr.bf16.mxu0 %v4380_v3  ;;  %1346 = vmatprep.subr.bf16.mxu1 %v4386_v10  ;;  %v4393_v31 = vrot.slane %v28_v21, %v6728_v12  ;;  %v4397_v32 = vrot.slane %v28_v21, %v6731_v63  ;;  %v6733_v10 = vsub.s32 2, %v6730_v1 }
 0x177   :  { %6729 = vst [vmem:[#allocation5_spill] sm:$0xff] %v4393_v31  ;;  %6732 = vst [vmem:[#allocation6_spill] sm:$0xff] %v4397_v32  ;;  %v4402_v7 = vrot.slane %v28_v21, %v6733_v10 }
 0x179   :  { %6734 = vst [vmem:[#allocation7_spill] sm:$0xff] %v4402_v7 }
 0x1d7   :  { %v1024_v9 = vpop.f32.mrf.mxu0  ;;  %v1065_v3 = vpop.f32.mrf.mxu1 }
 0x1d8   :  { %v1025_v2 = vadd.f32 %v1024_v9, %v4393_v31  ;;  %v1066_v11 = vadd.f32 %v1065_v3, %v4402_v7  ;;  %v6735_v9 = vsub.s32 3, %v6730_v1 }
 0x1d9   :  { %v1026_v5 = vpop.f32.mrf.mxu0  ;;  %v1067_v0 = vpop.f32.mrf.mxu1 }
 0x1da   :  { %v1072_v6 = vmul.f32 0.5, %v1025_v2  ;;  %v1027_v24 = vadd.f32 %v1026_v5, %v4397_v32  ;;  %v4408_v31 = vrot.slane %v28_v21, %v6735_v9 }
 0x1db   :  { %v1028_v35 = vpop.f32.mrf.mxu0  ;;  %v1069_v12 = vpop.f32.mrf.mxu1 }
 0x1dc   :  { %3155 = vtanh.f32 %v1072_v6  ;;  %v1076_v8 = vmul.f32 0.5, %v1027_v24  ;;  %6736 = vst [vmem:[#allocation8_spill] sm:$0xff] %v4408_v31  ;;  %v1068_v2 = vadd.f32 %v1067_v0, %v4408_v31  ;;  %v6739_v31 = vld [vmem:[#allocation61_spill] sm:$0xff] }
 0x1dd   :  { %v1029_v4 = vpop.f32.mrf.mxu0  ;;  %v1070_v63 = vpop.f32.mrf.mxu1 }
 0x1de   :  { %3157 = vtanh.f32 %v1076_v8  ;;  %v1081_v10 = vmul.f32 0.5, %v1068_v2 }
 0x1df   :  { %3159 = vtanh.f32 %v1066_v11  ;;  %v6738_v11 = vld [vmem:[#allocation59_spill] sm:$0xff] }
 0x1e0   :  { %3161 = vtanh.f32 %v1081_v10 }
 0x1e9   :  { %v3156_v46 = vpop.eup %3155 }
 0x1ea   :  { %v1074_v43 = vmul.f32 0.5, %v3156_v46 }
 0x1eb   :  { %v3158_v5 = vpop.eup %3157 }
 0x1ec   :  { %v1075_v35 = vadd.f32 0.5, %v1074_v43  ;;  %v1078_v12 = vmul.f32 0.5, %v3158_v5  ;;  %v3160_v4 = vpop.eup %3159 }
 0x1ed   :  { %v3162_v0 = vpop.eup %3161 }
 0x1ee   :  { %v1079_v24 = vadd.f32 0.5, %v1078_v12  ;;  %v1086_v63 = vmul.f32 %v3160_v4, %v1075_v35  ;;  %v1083_v12 = vmul.f32 0.5, %v3162_v0 }
 0x1f0   :  { %v1085_v6 = vmul.f32 0.0, %v1079_v24  ;;  %v6740_v24 = vld [vmem:[#allocation60_spill] sm:$0xff] }
 0x1f2   :  { %v4411_v3 = vadd.f32 %v1086_v63, %v1085_v6 }
 0x1f4   :  { %6737 = vst [vmem:[#allocation9_spill] sm:$0xff] %v4411_v3  ;;  %3163 = vtanh.f32 %v4411_v3  ;;  %v1084_v3 = vadd.f32 0.5, %v1083_v12 }
 0x1f7   :  { %v1129_v8 = vpop.f32.mrf.mxu0  ;;  %v1170_v1 = vpop.f32.mrf.mxu1 }
 0x1f8   :  { %v1177_v21 = vadd.f32 %v1129_v8, %v6738_v11  ;;  %v1179_v35 = vadd.f32 %v1170_v1, %v6740_v24  ;;  %v6741_v11 = vld [vmem:[#allocation62_spill] sm:$0xff] }
 0x1f9   :  { %v1131_v9 = vpop.f32.mrf.mxu0  ;;  %v1172_v2 = vpop.f32.mrf.mxu1 }
 0x1fa   :  { %v1181_v46 = vmul.f32 0.5, %v1177_v21  ;;  %v1178_v43 = vadd.f32 %v1131_v9, %v6739_v31  ;;  %v1180_v32 = vadd.f32 %v1172_v2, %v6741_v11  ;;  %v4461_v11 = vld [vmem:[%s6222_s2 + $0xc8] ss:$16 sps:$4 sm:$0xff]  }
 0x1fb   :  { %v1133_v5 = vpop.f32.mrf.mxu0  ;;  %v1174_v10 = vpop.f32.mrf.mxu1 }
 0x1fc   :  { %3165 = vtanh.f32 %v1181_v46  ;;  %v1185_v4 = vmul.f32 0.5, %v1178_v43  ;;  %v1190_v31 = vmul.f32 0.5, %v1180_v32 }
 0x1fd   :  { %v1134_v6 = vpop.f32.mrf.mxu0  ;;  %v1175_v63 = vpop.f32.mrf.mxu1 }
 0x1fe   :  { %3167 = vtanh.f32 %v1185_v4  ;;  %v4429_v4 = vld [vmem:[%s6222_s2 + $0xe0] ss:$16 sps:$4 sm:$0xff]   ;;  %v4441_v6 = vld [vmem:[%s6222_s2 + $0xc4] ss:$16 sps:$4 sm:$0xff]   ;;  %v4447_v63 = vld [vmem:[%s6222_s2 + $0xcc] ss:$16 sps:$4 sm:$0xff]  }
 0x1ff   :  { %3169 = vtanh.f32 %v1179_v35 }
 0x200   :  { %3171 = vtanh.f32 %v1190_v31  ;;  %v4467_v31 = vld [vmem:[%s6222_s2 + $0xa4] ss:$16 sps:$4 sm:$0xff]  }
 0x201   :  { %v3164_v7 = vpop.eup %3163 }
 0x202   :  { %v1089_v8 = vmul.f32 %v3164_v7, %v1084_v3 }
 0x204   :  { %v1090_v42 = vpack.c.bf16 %v1089_v8, %v1089_v8  ;;  %v4455_v8 = vld [vmem:[%s6222_s2 + $0xc0] ss:$16 sps:$4 sm:$0xff]  }
 0x206   :  { %1232 = vmatprep.mubr.bf16.mxu0 %v1090_v42  ;;  %1273 = vmatprep.mubr.bf16.mxu1 %v1090_v42 }
 0x209   :  { %v3166_v21 = vpop.eup %3165 }
 0x20a   :  { %v1183_v9 = vmul.f32 0.5, %v3166_v21  ;;  %v4473_v21 = vld [vmem:[%s6222_s2 + $0xac] ss:$16 sps:$4 sm:$0xff]  }
 0x20b   :  { %v3168_v0 = vpop.eup %3167 }
 0x20c   :  { %v1184_v46 = vadd.f32 0.5, %v1183_v9  ;;  %v1187_v5 = vmul.f32 0.5, %v3168_v0  ;;  %v3170_v1 = vpop.eup %3169  ;;  %v4479_v9 = vld [vmem:[%s6222_s2 + $0xa0] ss:$16 sps:$4 sm:$0xff]   ;;  %v4485_v0 = vld [vmem:[%s6222_s2 + $0xa8] ss:$16 sps:$4 sm:$0xff]  }
 0x20d   :  { %v3172_v7 = vpop.eup %3171 }
 0x20e   :  { %v1188_v43 = vadd.f32 0.5, %v1187_v5  ;;  %v1195_v10 = vmul.f32 %v3170_v1, %v1184_v46  ;;  %v1192_v3 = vmul.f32 0.5, %v3172_v7  ;;  %v4491_v46 = vld [vmem:[%s6222_s2 + $0x84] ss:$16 sps:$4 sm:$0xff]   ;;  %v4497_v5 = vld [vmem:[%s6222_s2 + $0x8c] ss:$16 sps:$4 sm:$0xff]  }
 0x20f   :  { %v4503_v1 = vld [vmem:[%s6222_s2 + $0x80] ss:$16 sps:$4 sm:$0xff]  }
 0x210   :  { %v1194_v12 = vmul.f32 %v1188_v43, %v4278_v13  ;;  %v1193_v2 = vadd.f32 0.5, %v1192_v3  ;;  %v4435_v13 = vld [vmem:[%s6222_s2 + $0xe8] ss:$16 sps:$4 sm:$0xff]   ;;  %v4527_v7 = vld [vmem:[%s6222_s2 + $0x60] ss:$16 sps:$4 sm:$0xff]  }
 0x211   :  { %v4509_v43 = vld [vmem:[%s6222_s2 + $0x88] ss:$16 sps:$4 sm:$0xff]  }
 0x212   :  { %v4419_v24 = vadd.f32 %v1195_v10, %v1194_v12  ;;  %v4515_v10 = vld [vmem:[%s6222_s2 + $0x64] ss:$16 sps:$4 sm:$0xff]   ;;  %v4521_v12 = vld [vmem:[%s6222_s2 + $0x6c] ss:$16 sps:$4 sm:$0xff]   ;;  %v4533_v3 = vld [vmem:[%s6222_s2 + $0x68] ss:$16 sps:$4 sm:$0xff]  }
 0x213   :  { %6742 = vst [vmem:[#allocation10_spill] sm:$0xff] %v4533_v3 }
 0x214   :  { %3173 = vtanh.f32 %v4419_v24 }
 0x221   :  { %v3174_v42 = vpop.eup %3173 }
 0x222   :  { %v1198_v32 = vmul.f32 %v3174_v42, %v1193_v2  ;;  %v4539_v2 = vld [vmem:[%s6222_s2 + $0x44] ss:$16 sps:$4 sm:$0xff]   ;;  %v4545_v42 = vld [vmem:[%s6222_s2 + $0x4c] ss:$16 sps:$4 sm:$0xff]  }
 0x223   :  { %6743 = vst [vmem:[#allocation11_spill] sm:$0xff] %v4539_v2  ;;  %6744 = vst [vmem:[#allocation12_spill] sm:$0xff] %v4545_v42 }
 0x224   :  { %v4422_v35 = vpack.c.bf16 %v1198_v32, %v1198_v32  ;;  %v4551_v32 = vld [vmem:[%s6222_s2 + $0x40] ss:$16 sps:$4 sm:$0xff]  }
 0x225   :  { %6745 = vst [vmem:[#allocation13_spill] sm:$0xff] %v4551_v32 }
 0x226   :  { %1233 = vmatmul.mubr.bf16.vlgmr.msra.gmra.mxu0 %v4422_v35  ;;  %1274 = vmatmul.mubr.bf16.vlgmr.msra.gmra.mxu1 %v4422_v35 }
 0x227   :  { %1306 = vmatpush1.bf16.msra.mxu0 %v4429_v4  ;;  %1347 = vmatpush1.bf16.msra.mxu1 %v4435_v13 }
 0x228   :  { %1307 = vmatprep.subr.bf16.mxu0 %v4441_v6  ;;  %1348 = vmatprep.subr.bf16.mxu1 %v4447_v63 }
 0x229   :  { %1337 = vmatprep.mubr.bf16.mxu0 %v6671_v20  ;;  %1378 = vmatprep.mubr.bf16.mxu1 %v6671_v20 }
 0x22b   :  { %1308 = vmatpush1.bf16.msra.mxu0 %v4455_v8  ;;  %1349 = vmatpush1.bf16.msra.mxu1 %v4461_v11 }
 0x22c   :  { %1309 = vmatprep.subr.bf16.mxu0 %v4467_v31  ;;  %1350 = vmatprep.subr.bf16.mxu1 %v4473_v21 }
 0x22f   :  { %1310 = vmatpush1.bf16.msra.mxu0 %v4479_v9  ;;  %1351 = vmatpush1.bf16.msra.mxu1 %v4485_v0 }
 0x230   :  { %1311 = vmatprep.subr.bf16.mxu0 %v4491_v46  ;;  %1352 = vmatprep.subr.bf16.mxu1 %v4497_v5 }
 0x233   :  { %1312 = vmatpush1.bf16.msra.mxu0 %v4503_v1  ;;  %1353 = vmatpush1.bf16.msra.mxu1 %v4509_v43 }
 0x234   :  { %1313 = vmatprep.subr.bf16.mxu0 %v4515_v10  ;;  %1354 = vmatprep.subr.bf16.mxu1 %v4521_v12 }
 0x237   :  { %1314 = vmatpush1.bf16.msra.mxu0 %v4527_v7  ;;  %1355 = vmatpush1.bf16.msra.mxu1 %v4533_v3  ;;  %v4557_v3 = vld [vmem:[%s6222_s2 + $0x48] ss:$16 sps:$4 sm:$0xff]  }
 0x238   :  { %1315 = vmatprep.subr.bf16.mxu0 %v4539_v2  ;;  %1356 = vmatprep.subr.bf16.mxu1 %v4545_v42  ;;  %6746 = vst [vmem:[#allocation14_spill] sm:$0xff] %v4557_v3  ;;  %v4563_v2 = vld [vmem:[%s6222_s2 + $0x24] ss:$16 sps:$4 sm:$0xff]   ;;  %v4569_v42 = vld [vmem:[%s6222_s2 + $0x2c] ss:$16 sps:$4 sm:$0xff]  }
 0x239   :  { %6747 = vst [vmem:[#allocation15_spill] sm:$0xff] %v4563_v2  ;;  %6748 = vst [vmem:[#allocation16_spill] sm:$0xff] %v4569_v42 }
 0x23b   :  { %1316 = vmatpush1.bf16.msra.mxu0 %v4551_v32  ;;  %1357 = vmatpush1.bf16.msra.mxu1 %v4557_v3  ;;  %v4575_v32 = vld [vmem:[%s6222_s2 + $0x20] ss:$16 sps:$4 sm:$0xff]   ;;  %v4581_v3 = vld [vmem:[%s6222_s2 + $0x28] ss:$16 sps:$4 sm:$0xff]  }
 0x23c   :  { %1317 = vmatprep.subr.bf16.mxu0 %v4563_v2  ;;  %1358 = vmatprep.subr.bf16.mxu1 %v4569_v42  ;;  %6749 = vst [vmem:[#allocation17_spill] sm:$0xff] %v4575_v32  ;;  %6750 = vst [vmem:[#allocation18_spill] sm:$0xff] %v4581_v3  ;;  %v4587_v2 = vld [vmem:[%s6222_s2 + $0x4] ss:$16 sps:$4 sm:$0xff]   ;;  %v4593_v42 = vld [vmem:[%s6222_s2 + $0xc] ss:$16 sps:$4 sm:$0xff]  }
 0x23d   :  { %6751 = vst [vmem:[#allocation19_spill] sm:$0xff] %v4587_v2  ;;  %6752 = vst [vmem:[#allocation20_spill] sm:$0xff] %v4593_v42 }
 0x23f   :  { %1318 = vmatpush1.bf16.msra.mxu0 %v4575_v32  ;;  %1359 = vmatpush1.bf16.msra.mxu1 %v4581_v3  ;;  %v4599_v32 = vld [vmem:[%s6222_s2] ss:$16 sps:$4 sm:$0xff]   ;;  %v4605_v3 = vld [vmem:[%s6222_s2 + $0x8] ss:$16 sps:$4 sm:$0xff]  }
 0x240   :  { %1319 = vmatprep.subr.bf16.mxu0 %v4587_v2  ;;  %1360 = vmatprep.subr.bf16.mxu1 %v4593_v42  ;;  %6753 = vst [vmem:[#allocation21_spill] sm:$0xff] %v4605_v3  ;;  %v4611_v2 = vld [vmem:[%s6223_s3 + $0xe4] ss:$16 sps:$4 sm:$0xff]   ;;  %v4617_v42 = vld [vmem:[%s6223_s3 + $0xec] ss:$16 sps:$4 sm:$0xff]  }
 0x241   :  { %6754 = vst [vmem:[#allocation22_spill] sm:$0xff] %v4611_v2 }
 0x243   :  { %1320 = vmatpush1.bf16.msra.mxu0 %v4599_v32  ;;  %1361 = vmatpush1.bf16.msra.mxu1 %v4605_v3  ;;  %v4625_v3 = vld [vmem:[%s6223_s3 + $0xe0] ss:$16 sps:$4 sm:$0xff]  }
 0x244   :  { %1410 = vmatprep.subr.bf16.mxu0 %v4611_v2  ;;  %1451 = vmatprep.subr.bf16.mxu1 %v4617_v42  ;;  %v4631_v2 = vld [vmem:[%s6223_s3 + $0xe8] ss:$16 sps:$4 sm:$0xff]  }
 0x246   :  { %1338 = vmatmul.mubr.bf16.vlgmr.msra.gmra.mxu0 %v4422_v35  ;;  %1379 = vmatmul.mubr.bf16.vlgmr.msra.gmra.mxu1 %v4422_v35 }
 0x247   :  { %1411 = vmatpush1.bf16.msra.mxu0 %v4625_v3  ;;  %1452 = vmatpush1.bf16.msra.mxu1 %v4631_v2 }
 0x248   :  { %1412 = vmatprep.subr.bf16.mxu0 %v3813_v57  ;;  %1453 = vmatprep.subr.bf16.mxu1 %v3818_v58  ;;  %v6755_v57 = vld [vmem:[#allocation37_spill] sm:$0xff]  ;;  %v6756_v58 = vld [vmem:[#allocation38_spill] sm:$0xff] }
 0x24b   :  { %1413 = vmatpush1.bf16.msra.mxu0 %v3823_v59  ;;  %1454 = vmatpush1.bf16.msra.mxu1 %v3828_v60  ;;  %v6757_v59 = vld [vmem:[#allocation39_spill] sm:$0xff]  ;;  %v6758_v60 = vld [vmem:[#allocation40_spill] sm:$0xff] }
 0x24c   :  { %1414 = vmatprep.subr.bf16.mxu0 %v3837_v61  ;;  %1455 = vmatprep.subr.bf16.mxu1 %v3842_v62  ;;  %v6759_v61 = vld [vmem:[#allocation41_spill] sm:$0xff]  ;;  %v6760_v62 = vld [vmem:[#allocation42_spill] sm:$0xff] }
 0x24f   :  { %1415 = vmatpush1.bf16.msra.mxu0 %v6672_v14  ;;  %1456 = vmatpush1.bf16.msra.mxu1 %v6673_v15  ;;  %v6761_v14 = vld [vmem:[#allocation43_spill] sm:$0xff]  ;;  %v6762_v15 = vld [vmem:[#allocation44_spill] sm:$0xff] }
 0x250   :  { %1416 = vmatprep.subr.bf16.mxu0 %v6674_v16  ;;  %1457 = vmatprep.subr.bf16.mxu1 %v6675_v17  ;;  %v6763_v16 = vld [vmem:[#allocation45_spill] sm:$0xff]  ;;  %v6764_v17 = vld [vmem:[#allocation46_spill] sm:$0xff] }
 0x253   :  { %1417 = vmatpush1.bf16.msra.mxu0 %v6676_v18  ;;  %1458 = vmatpush1.bf16.msra.mxu1 %v6677_v19  ;;  %v6765_v18 = vld [vmem:[#allocation47_spill] sm:$0xff]  ;;  %v6766_v19 = vld [vmem:[#allocation48_spill] sm:$0xff] }
 0x254   :  { %1418 = vmatprep.subr.bf16.mxu0 %v6678_v22  ;;  %1459 = vmatprep.subr.bf16.mxu1 %v6679_v23  ;;  %v6767_v22 = vld [vmem:[#allocation49_spill] sm:$0xff]  ;;  %v6768_v23 = vld [vmem:[#allocation50_spill] sm:$0xff] }
 0x257   :  { %1419 = vmatpush1.bf16.msra.mxu0 %v6680_v25  ;;  %1460 = vmatpush1.bf16.msra.mxu1 %v6681_v26  ;;  %v6769_v25 = vld [vmem:[#allocation51_spill] sm:$0xff]  ;;  %v6770_v26 = vld [vmem:[#allocation52_spill] sm:$0xff] }
 0x258   :  { %1420 = vmatprep.subr.bf16.mxu0 %v6682_v27  ;;  %1461 = vmatprep.subr.bf16.mxu1 %v6683_v28  ;;  %v6771_v27 = vld [vmem:[#allocation53_spill] sm:$0xff]  ;;  %v6772_v28 = vld [vmem:[#allocation54_spill] sm:$0xff] }
 0x25b   :  { %1421 = vmatpush1.bf16.msra.mxu0 %v6684_v29  ;;  %1462 = vmatpush1.bf16.msra.mxu1 %v6685_v30  ;;  %v6773_v29 = vld [vmem:[#allocation55_spill] sm:$0xff]  ;;  %v6774_v30 = vld [vmem:[#allocation56_spill] sm:$0xff] }
 0x25c   :  { %1422 = vmatprep.subr.bf16.mxu0 %v6686_v33  ;;  %1463 = vmatprep.subr.bf16.mxu1 %v6687_v34  ;;  %v6775_v33 = vld [vmem:[#allocation3_spill] sm:$0xff]  ;;  %v6776_v34 = vld [vmem:[#allocation4_spill] sm:$0xff] }
 0x25f   :  { %1423 = vmatpush1.bf16.msra.mxu0 %v6688_v36  ;;  %1464 = vmatpush1.bf16.msra.mxu1 %v6689_v37 }
 0x260   :  { %1424 = vmatprep.subr.bf16.mxu0 %v6690_v38  ;;  %1465 = vmatprep.subr.bf16.mxu1 %v6691_v39  ;;  %v6777_v38 = vld [vmem:[#allocation5_spill] sm:$0xff] }
 0x263   :  { %1425 = vmatpush1.bf16.msra.mxu0 %v6692_v40  ;;  %1466 = vmatpush1.bf16.msra.mxu1 %v6693_v41 }
 0x264   :  { %1426 = vmatprep.subr.bf16.mxu0 %v6694_v44  ;;  %1467 = vmatprep.subr.bf16.mxu1 %v6695_v45  ;;  %v6778_v45 = vld [vmem:[#allocation6_spill] sm:$0xff] }
 0x267   :  { %1427 = vmatpush2.bf16.msra.mxu0 %v6696_v47  ;;  %1468 = vmatpush2.bf16.msra.mxu1 %v6697_v48 }
 0x268   :  { %1428 = vmatprep.subr.bf16.mxu0 %v6698_v49  ;;  %1469 = vmatprep.subr.bf16.mxu1 %v6699_v50 }
 0x26b   :  { %1429 = vmatpush2.bf16.msra.mxu0 %v6700_v51  ;;  %1470 = vmatpush2.bf16.msra.mxu1 %v6701_v52 }
 0x26c   :  { %1430 = vmatprep.subr.bf16.mxu0 %v6702_v53  ;;  %1471 = vmatprep.subr.bf16.mxu1 %v6703_v54  ;;  %v6779_v53 = vld [vmem:[#allocation7_spill] sm:$0xff] }
 0x26f   :  { %1431 = vmatpush2.bf16.msra.mxu0 %v6704_v55  ;;  %1472 = vmatpush2.bf16.msra.mxu1 %v6705_v56  ;;  %v6780_v55 = vld [vmem:[#allocation8_spill] sm:$0xff] }
 0x270   :  { %1432 = vmatprep.subr.bf16.mxu0 %v6755_v57  ;;  %1473 = vmatprep.subr.bf16.mxu1 %v6756_v58 }
 0x273   :  { %1433 = vmatpush2.bf16.msra.mxu0 %v6757_v59  ;;  %1474 = vmatpush2.bf16.msra.mxu1 %v6758_v60 }
 0x274   :  { %1434 = vmatprep.subr.bf16.mxu0 %v6759_v61  ;;  %1475 = vmatprep.subr.bf16.mxu1 %v6760_v62 }
 0x277   :  { %1435 = vmatpush2.bf16.msra.mxu0 %v6761_v14  ;;  %1476 = vmatpush2.bf16.msra.mxu1 %v6762_v15  ;;  %v6781_v15 = vld [vmem:[#allocation9_spill] sm:$0xff] }
 0x278   :  { %1436 = vmatprep.subr.bf16.mxu0 %v6763_v16  ;;  %1477 = vmatprep.subr.bf16.mxu1 %v6764_v17 }
 0x27b   :  { %1437 = vmatpush2.bf16.msra.mxu0 %v6765_v18  ;;  %1478 = vmatpush2.bf16.msra.mxu1 %v6766_v19 }
 0x27c   :  { %1438 = vmatprep.subr.bf16.mxu0 %v6767_v22  ;;  %1479 = vmatprep.subr.bf16.mxu1 %v6768_v23  ;;  %v6782_v23 = vld [vmem:[#allocation63_spill] sm:$0xff] }
 0x27f   :  { %1439 = vmatpush2.bf16.msra.mxu0 %v6769_v25  ;;  %1480 = vmatpush2.bf16.msra.mxu1 %v6770_v26 }
 0x280   :  { %1440 = vmatprep.subr.bf16.mxu0 %v6771_v27  ;;  %1481 = vmatprep.subr.bf16.mxu1 %v6772_v28 }
 0x283   :  { %1441 = vmatpush2.bf16.msra.mxu0 %v6773_v29  ;;  %1482 = vmatpush2.bf16.msra.mxu1 %v6774_v30  ;;  %v6783_v30 = vld [vmem:[#allocation65_spill] sm:$0xff] }
 0x284   :  { %1515 = vmatprep.subr.bf16.mxu0 %v6775_v33  ;;  %1556 = vmatprep.subr.bf16.mxu1 %v6776_v34 }
 0x2e6   :  { %v1234_v36 = vpop.f32.mrf.mxu0  ;;  %v1275_v37 = vpop.f32.mrf.mxu1 }
 0x2e7   :  { %v1235_v39 = vadd.f32 %v1234_v36, %v6777_v38  ;;  %v1276_v54 = vadd.f32 %v1275_v37, %v6779_v53 }
 0x2e8   :  { %v1236_v40 = vpop.f32.mrf.mxu0  ;;  %v1277_v41 = vpop.f32.mrf.mxu1 }
 0x2e9   :  { %v1282_v44 = vmul.f32 0.5, %v1235_v39  ;;  %v1237_v47 = vadd.f32 %v1236_v40, %v6778_v45  ;;  %v1278_v56 = vadd.f32 %v1277_v41, %v6780_v55  ;;  %v6784_v41 = vld [vmem:[#allocation64_spill] sm:$0xff] }
 0x2ea   :  { %v1238_v48 = vpop.f32.mrf.mxu0  ;;  %v1279_v49 = vpop.f32.mrf.mxu1 }
 0x2eb   :  { %3175 = vtanh.f32 %v1282_v44  ;;  %v1286_v50 = vmul.f32 0.5, %v1237_v47  ;;  %v1291_v35 = vmul.f32 0.5, %v1278_v56 }
 0x2ec   :  { %v1239_v51 = vpop.f32.mrf.mxu0  ;;  %v1280_v52 = vpop.f32.mrf.mxu1 }
 0x2ed   :  { %3177 = vtanh.f32 %v1286_v50 }
 0x2ee   :  { %3179 = vtanh.f32 %v1276_v54  ;;  %v6785_v54 = vld [vmem:[#allocation66_spill] sm:$0xff] }
 0x2ef   :  { %3181 = vtanh.f32 %v1291_v35 }
 0x2f8   :  { %v3176_v57 = vpop.eup %3175 }
 0x2f9   :  { %v1284_v58 = vmul.f32 0.5, %v3176_v57 }
 0x2fa   :  { %v3178_v59 = vpop.eup %3177 }
 0x2fb   :  { %v1285_v60 = vadd.f32 0.5, %v1284_v58  ;;  %v1288_v61 = vmul.f32 0.5, %v3178_v59  ;;  %v3180_v14 = vpop.eup %3179 }
 0x2fc   :  { %v3182_v26 = vpop.eup %3181 }
 0x2fd   :  { %v1289_v62 = vadd.f32 0.5, %v1288_v61  ;;  %v1296_v17 = vmul.f32 %v3180_v14, %v1285_v60  ;;  %v1293_v40 = vmul.f32 0.5, %v3182_v26 }
 0x2ff   :  { %v1295_v16 = vmul.f32 %v1289_v62, %v6781_v15  ;;  %v1294_v50 = vadd.f32 0.5, %v1293_v40  ;;  %v6792_v40 = vld [vmem:[#allocation16_spill] sm:$0xff] }
 0x301   :  { %v4701_v18 = vadd.f32 %v1296_v17, %v1295_v16 }
 0x303   :  { %3183 = vtanh.f32 %v4701_v18 }
 0x306   :  { %v1339_v19 = vpop.f32.mrf.mxu0  ;;  %v1380_v22 = vpop.f32.mrf.mxu1 }
 0x307   :  { %v1387_v25 = vadd.f32 %v1339_v19, %v6782_v23  ;;  %v1389_v44 = vadd.f32 %v1380_v22, %v6784_v41  ;;  %v6793_v41 = vld [vmem:[#allocation17_spill] sm:$0xff] }
 0x308   :  { %v1341_v27 = vpop.f32.mrf.mxu0  ;;  %v1382_v28 = vpop.f32.mrf.mxu1 }
 0x309   :  { %v1391_v29 = vmul.f32 0.5, %v1387_v25  ;;  %v1388_v36 = vadd.f32 %v1341_v27, %v6783_v30  ;;  %v1390_v56 = vadd.f32 %v1382_v28, %v6785_v54  ;;  %v6788_v30 = vld [vmem:[#allocation12_spill] sm:$0xff]  ;;  %v4763_v54 = vld [vmem:[%s6223_s3 + $0xc0] ss:$16 sps:$4 sm:$0xff]  }
 0x30a   :  { %v1343_v37 = vpop.f32.mrf.mxu0  ;;  %v1384_v39 = vpop.f32.mrf.mxu1 }
 0x30b   :  { %3185 = vtanh.f32 %v1391_v29  ;;  %v1395_v47 = vmul.f32 0.5, %v1388_v36  ;;  %v1400_v57 = vmul.f32 0.5, %v1390_v56  ;;  %v6787_v29 = vld [vmem:[#allocation11_spill] sm:$0xff]  ;;  %v6789_v36 = vld [vmem:[#allocation13_spill] sm:$0xff]  ;;  %v6790_v37 = vld [vmem:[#allocation14_spill] sm:$0xff] }
 0x30c   :  { %v1344_v48 = vpop.f32.mrf.mxu0  ;;  %v1385_v49 = vpop.f32.mrf.mxu1  ;;  %v6791_v39 = vld [vmem:[#allocation15_spill] sm:$0xff]  ;;  %v4769_v56 = vld [vmem:[%s6223_s3 + $0xc8] ss:$16 sps:$4 sm:$0xff]  }
 0x30d   :  { %3187 = vtanh.f32 %v1395_v47  ;;  %v6795_v47 = vld [vmem:[#allocation19_spill] sm:$0xff]  ;;  %v6796_v48 = vld [vmem:[#allocation20_spill] sm:$0xff]  ;;  %v6797_v49 = vld [vmem:[#allocation21_spill] sm:$0xff] }
 0x30e   :  { %3189 = vtanh.f32 %v1389_v44  ;;  %v6794_v44 = vld [vmem:[#allocation18_spill] sm:$0xff] }
 0x30f   :  { %3191 = vtanh.f32 %v1400_v57  ;;  %v4781_v57 = vld [vmem:[%s6223_s3 + $0xac] ss:$16 sps:$4 sm:$0xff]  }
 0x310   :  { %v3184_v51 = vpop.eup %3183 }
 0x311   :  { %v1299_v52 = vmul.f32 %v3184_v51, %v1294_v50  ;;  %v6798_v50 = vld [vmem:[#allocation22_spill] sm:$0xff]  ;;  %v4751_v51 = vld [vmem:[%s6223_s3 + $0xc4] ss:$16 sps:$4 sm:$0xff]  }
 0x313   :  { %v1300_v35 = vpack.c.bf16 %v1299_v52, %v1299_v52  ;;  %v4757_v52 = vld [vmem:[%s6223_s3 + $0xcc] ss:$16 sps:$4 sm:$0xff]  }
 0x315   :  { %1442 = vmatprep.mubr.bf16.mxu0 %v1300_v35  ;;  %1483 = vmatprep.mubr.bf16.mxu1 %v1300_v35  ;;  %v4775_v35 = vld [vmem:[%s6223_s3 + $0xa4] ss:$16 sps:$4 sm:$0xff]  }
 0x318   :  { %v3186_v58 = vpop.eup %3185 }
 0x319   :  { %v1393_v59 = vmul.f32 0.5, %v3186_v58  ;;  %v4787_v58 = vld [vmem:[%s6223_s3 + $0xa0] ss:$16 sps:$4 sm:$0xff]  }
 0x31a   :  { %v3188_v60 = vpop.eup %3187  ;;  %6799 = vst [vmem:[#allocation23_spill] sm:$0xff] %v4787_v58 }
 0x31b   :  { %v1394_v61 = vadd.f32 0.5, %v1393_v59  ;;  %v1397_v62 = vmul.f32 0.5, %v3188_v60  ;;  %v3190_v14 = vpop.eup %3189  ;;  %v4793_v59 = vld [vmem:[%s6223_s3 + $0xa8] ss:$16 sps:$4 sm:$0xff]   ;;  %v4799_v60 = vld [vmem:[%s6223_s3 + $0x84] ss:$16 sps:$4 sm:$0xff]  }
 0x31c   :  { %v3192_v22 = vpop.eup %3191  ;;  %6800 = vst [vmem:[#allocation24_spill] sm:$0xff] %v4793_v59  ;;  %6801 = vst [vmem:[#allocation25_spill] sm:$0xff] %v4799_v60 }
 0x31d   :  { %v1398_v15 = vadd.f32 0.5, %v1397_v62  ;;  %v1405_v16 = vmul.f32 %v3190_v14, %v1394_v61  ;;  %v1402_v23 = vmul.f32 0.5, %v3192_v22  ;;  %v4805_v61 = vld [vmem:[%s6223_s3 + $0x8c] ss:$16 sps:$4 sm:$0xff]   ;;  %v4811_v62 = vld [vmem:[%s6223_s3 + $0x80] ss:$16 sps:$4 sm:$0xff]  }
 0x31e   :  { %6802 = vst [vmem:[#allocation26_spill] sm:$0xff] %v4805_v61  ;;  %6803 = vst [vmem:[#allocation27_spill] sm:$0xff] %v4811_v62  ;;  %v4817_v14 = vld [vmem:[%s6223_s3 + $0x88] ss:$16 sps:$4 sm:$0xff]  }
 0x31f   :  { %v1404_v17 = vmul.f32 %v1398_v15, %v4419_v24  ;;  %v1403_v25 = vadd.f32 0.5, %v1402_v23  ;;  %v6786_v24 = vld [vmem:[#allocation10_spill] sm:$0xff]  ;;  %6804 = vst [vmem:[#allocation28_spill] sm:$0xff] %v4817_v14  ;;  %v4823_v15 = vld [vmem:[%s6223_s3 + $0x64] ss:$16 sps:$4 sm:$0xff]  }
 0x320   :  { %6805 = vst [vmem:[#allocation29_spill] sm:$0xff] %v4823_v15  ;;  %v4841_v22 = vld [vmem:[%s6223_s3 + $0x68] ss:$16 sps:$4 sm:$0xff]   ;;  %v4847_v23 = vld [vmem:[%s6223_s3 + $0x44] ss:$16 sps:$4 sm:$0xff]  }
 0x321   :  { %v4709_v19 = vadd.f32 %v1405_v16, %v1404_v17  ;;  %v4829_v16 = vld [vmem:[%s6223_s3 + $0x6c] ss:$16 sps:$4 sm:$0xff]   ;;  %v4835_v17 = vld [vmem:[%s6223_s3 + $0x60] ss:$16 sps:$4 sm:$0xff]   ;;  %6808 = vst [vmem:[#allocation32_spill] sm:$0xff] %v4841_v22  ;;  %6809 = vst [vmem:[#allocation33_spill] sm:$0xff] %v4847_v23 }
 0x322   :  { %6806 = vst [vmem:[#allocation30_spill] sm:$0xff] %v4829_v16  ;;  %6807 = vst [vmem:[#allocation31_spill] sm:$0xff] %v4835_v17 }
 0x323   :  { %3193 = vtanh.f32 %v4709_v19 }
 0x330   :  { %v3194_v26 = vpop.eup %3193 }
 0x331   :  { %v1408_v27 = vmul.f32 %v3194_v26, %v1403_v25  ;;  %v4853_v25 = vld [vmem:[%s6223_s3 + $0x4c] ss:$16 sps:$4 sm:$0xff]   ;;  %v4859_v26 = vld [vmem:[%s6223_s3 + $0x40] ss:$16 sps:$4 sm:$0xff]  }
 0x332   :  { %6810 = vst [vmem:[#allocation34_spill] sm:$0xff] %v4853_v25  ;;  %6811 = vst [vmem:[#allocation35_spill] sm:$0xff] %v4859_v26 }
 0x333   :  { %v1409_v28 = vpack.c.bf16 %v1408_v27, %v1408_v27  ;;  %v4865_v27 = vld [vmem:[%s6223_s3 + $0x48] ss:$16 sps:$4 sm:$0xff]  }
 0x334   :  { %6812 = vst [vmem:[#allocation36_spill] sm:$0xff] %v4865_v27 }
 0x335   :  { %1443 = vmatmul.mubr.bf16.vlgmr.msra.gmra.mxu0 %v1409_v28  ;;  %1484 = vmatmul.mubr.bf16.vlgmr.msra.gmra.mxu1 %v1409_v28 }
 0x336   :  { %1516 = vmatpush1.bf16.msra.mxu0 %v4429_v4  ;;  %1557 = vmatpush1.bf16.msra.mxu1 %v4435_v13 }
 0x337   :  { %1517 = vmatprep.subr.bf16.mxu0 %v4441_v6  ;;  %1558 = vmatprep.subr.bf16.mxu1 %v4447_v63 }
 0x338   :  { %1547 = vmatprep.mubr.bf16.mxu0 %v6671_v20  ;;  %1588 = vmatprep.mubr.bf16.mxu1 %v6671_v20 }
 0x33a   :  { %1518 = vmatpush1.bf16.msra.mxu0 %v4455_v8  ;;  %1559 = vmatpush1.bf16.msra.mxu1 %v4461_v11 }
 0x33b   :  { %1519 = vmatprep.subr.bf16.mxu0 %v4467_v31  ;;  %1560 = vmatprep.subr.bf16.mxu1 %v4473_v21 }
 0x33e   :  { %1520 = vmatpush1.bf16.msra.mxu0 %v4479_v9  ;;  %1561 = vmatpush1.bf16.msra.mxu1 %v4485_v0 }
 0x33f   :  { %1521 = vmatprep.subr.bf16.mxu0 %v4491_v46  ;;  %1562 = vmatprep.subr.bf16.mxu1 %v4497_v5 }
 0x342   :  { %1522 = vmatpush1.bf16.msra.mxu0 %v4503_v1  ;;  %1563 = vmatpush1.bf16.msra.mxu1 %v4509_v43 }
 0x343   :  { %1523 = vmatprep.subr.bf16.mxu0 %v4515_v10  ;;  %1564 = vmatprep.subr.bf16.mxu1 %v4521_v12 }
 0x346   :  { %1524 = vmatpush1.bf16.msra.mxu0 %v4527_v7  ;;  %1565 = vmatpush1.bf16.msra.mxu1 %v6786_v24 }
 0x347   :  { %1525 = vmatprep.subr.bf16.mxu0 %v6787_v29  ;;  %1566 = vmatprep.subr.bf16.mxu1 %v6788_v30 }
 0x34a   :  { %1526 = vmatpush1.bf16.msra.mxu0 %v6789_v36  ;;  %1567 = vmatpush1.bf16.msra.mxu1 %v6790_v37 }
 0x34b   :  { %1527 = vmatprep.subr.bf16.mxu0 %v6791_v39  ;;  %1568 = vmatprep.subr.bf16.mxu1 %v6792_v40 }
 0x34e   :  { %1528 = vmatpush1.bf16.msra.mxu0 %v6793_v41  ;;  %1569 = vmatpush1.bf16.msra.mxu1 %v6794_v44 }
 0x34f   :  { %1529 = vmatprep.subr.bf16.mxu0 %v6795_v47  ;;  %1570 = vmatprep.subr.bf16.mxu1 %v6796_v48 }
 0x352   :  { %1530 = vmatpush1.bf16.msra.mxu0 %v4599_v32  ;;  %1571 = vmatpush1.bf16.msra.mxu1 %v6797_v49 }
 0x353   :  { %1620 = vmatprep.subr.bf16.mxu0 %v6798_v50  ;;  %1661 = vmatprep.subr.bf16.mxu1 %v4617_v42 }
 0x355   :  { %1548 = vmatmul.mubr.bf16.vlgmr.msra.gmra.mxu0 %v1409_v28  ;;  %1589 = vmatmul.mubr.bf16.vlgmr.msra.gmra.mxu1 %v1409_v28  ;;  %v4871_v28 = vld [vmem:[%s6223_s3 + $0x24] ss:$16 sps:$4 sm:$0xff]  }
 0x356   :  { %1621 = vmatpush1.bf16.msra.mxu0 %v4625_v3  ;;  %1662 = vmatpush1.bf16.msra.mxu1 %v4631_v2  ;;  %6813 = vst [vmem:[#allocation57_spill] sm:$0xff] %v4871_v28 }
 0x357   :  { %1622 = vmatprep.subr.bf16.mxu0 %v4751_v51  ;;  %1663 = vmatprep.subr.bf16.mxu1 %v4757_v52 }
 0x35a   :  { %1623 = vmatpush1.bf16.msra.mxu0 %v4763_v54  ;;  %1664 = vmatpush1.bf16.msra.mxu1 %v4769_v56 }
 0x35b   :  { %1624 = vmatprep.subr.bf16.mxu0 %v4775_v35  ;;  %1665 = vmatprep.subr.bf16.mxu1 %v4781_v57 }
 0x35e   :  { %1625 = vmatpush1.bf16.msra.mxu0 %v4787_v58  ;;  %1666 = vmatpush1.bf16.msra.mxu1 %v4793_v59 }
 0x35f   :  { %1626 = vmatprep.subr.bf16.mxu0 %v4799_v60  ;;  %1667 = vmatprep.subr.bf16.mxu1 %v4805_v61 }
 0x362   :  { %1627 = vmatpush1.bf16.msra.mxu0 %v4811_v62  ;;  %1668 = vmatpush1.bf16.msra.mxu1 %v4817_v14 }
 0x363   :  { %1628 = vmatprep.subr.bf16.mxu0 %v4823_v15  ;;  %1669 = vmatprep.subr.bf16.mxu1 %v4829_v16 }
 0x366   :  { %1629 = vmatpush1.bf16.msra.mxu0 %v4835_v17  ;;  %1670 = vmatpush1.bf16.msra.mxu1 %v4841_v22 }
 0x367   :  { %1630 = vmatprep.subr.bf16.mxu0 %v4847_v23  ;;  %1671 = vmatprep.subr.bf16.mxu1 %v4853_v25  ;;  %v4877_v25 = vld [vmem:[%s6223_s3 + $0x2c] ss:$16 sps:$4 sm:$0xff]  }
 0x368   :  { %6814 = vst [vmem:[#allocation59_spill] sm:$0xff] %v4877_v25 }
 0x36a   :  { %1631 = vmatpush1.bf16.msra.mxu0 %v4859_v26  ;;  %1672 = vmatpush1.bf16.msra.mxu1 %v4865_v27  ;;  %v4883_v26 = vld [vmem:[%s6223_s3 + $0x20] ss:$16 sps:$4 sm:$0xff]   ;;  %v4889_v27 = vld [vmem:[%s6223_s3 + $0x28] ss:$16 sps:$4 sm:$0xff]  }
 0x36b   :  { %1632 = vmatprep.subr.bf16.mxu0 %v4871_v28  ;;  %1673 = vmatprep.subr.bf16.mxu1 %v4877_v25  ;;  %6815 = vst [vmem:[#allocation61_spill] sm:$0xff] %v4883_v26  ;;  %6816 = vst [vmem:[#allocation60_spill] sm:$0xff] %v4889_v27  ;;  %v4895_v28 = vld [vmem:[%s6223_s3 + $0x4] ss:$16 sps:$4 sm:$0xff]   ;;  %v4901_v25 = vld [vmem:[%s6223_s3 + $0xc] ss:$16 sps:$4 sm:$0xff]  }
 0x36c   :  { %6817 = vst [vmem:[#allocation62_spill] sm:$0xff] %v4895_v28  ;;  %6818 = vst [vmem:[#allocation37_spill] sm:$0xff] %v4901_v25 }
 0x36e   :  { %1633 = vmatpush1.bf16.msra.mxu0 %v4883_v26  ;;  %1674 = vmatpush1.bf16.msra.mxu1 %v4889_v27  ;;  %v4907_v26 = vld [vmem:[%s6223_s3] ss:$16 sps:$4 sm:$0xff]   ;;  %v4913_v27 = vld [vmem:[%s6223_s3 + $0x8] ss:$16 sps:$4 sm:$0xff]  }
 0x36f   :  { %1634 = vmatprep.subr.bf16.mxu0 %v4895_v28  ;;  %1675 = vmatprep.subr.bf16.mxu1 %v4901_v25  ;;  %6819 = vst [vmem:[#allocation38_spill] sm:$0xff] %v4907_v26  ;;  %6820 = vst [vmem:[#allocation39_spill] sm:$0xff] %v4913_v27  ;;  %v4919_v28 = vld [vmem:[%s6223_s3 + $0x1e4] ss:$16 sps:$4 sm:$0xff]   ;;  %v4925_v25 = vld [vmem:[%s6223_s3 + $0x1ec] ss:$16 sps:$4 sm:$0xff]  }
 0x370   :  { %6821 = vst [vmem:[#allocation40_spill] sm:$0xff] %v4919_v28  ;;  %6822 = vst [vmem:[#allocation41_spill] sm:$0xff] %v4925_v25 }
 0x372   :  { %1635 = vmatpush1.bf16.msra.mxu0 %v4907_v26  ;;  %1676 = vmatpush1.bf16.msra.mxu1 %v4913_v27  ;;  %v4931_v26 = vld [vmem:[%s6223_s3 + $0x1e0] ss:$16 sps:$4 sm:$0xff]   ;;  %v4937_v27 = vld [vmem:[%s6223_s3 + $0x1e8] ss:$16 sps:$4 sm:$0xff]  }
 0x373   :  { %1636 = vmatprep.subr.bf16.mxu0 %v4919_v28  ;;  %1677 = vmatprep.subr.bf16.mxu1 %v4925_v25  ;;  %6823 = vst [vmem:[#allocation42_spill] sm:$0xff] %v4931_v26  ;;  %6824 = vst [vmem:[#allocation43_spill] sm:$0xff] %v4937_v27  ;;  %v4943_v28 = vld [vmem:[%s6223_s3 + $0x1c4] ss:$16 sps:$4 sm:$0xff]   ;;  %v4949_v25 = vld [vmem:[%s6223_s3 + $0x1cc] ss:$16 sps:$4 sm:$0xff]  }
 0x374   :  { %6825 = vst [vmem:[#allocation44_spill] sm:$0xff] %v4943_v28  ;;  %6826 = vst [vmem:[#allocation45_spill] sm:$0xff] %v4949_v25 }
 0x376   :  { %1637 = vmatpush2.bf16.msra.mxu0 %v4931_v26  ;;  %1678 = vmatpush2.bf16.msra.mxu1 %v4937_v27  ;;  %v4955_v26 = vld [vmem:[%s6223_s3 + $0x1c0] ss:$16 sps:$4 sm:$0xff]   ;;  %v4961_v27 = vld [vmem:[%s6223_s3 + $0x1c8] ss:$16 sps:$4 sm:$0xff]  }
 0x377   :  { %1638 = vmatprep.subr.bf16.mxu0 %v4943_v28  ;;  %1679 = vmatprep.subr.bf16.mxu1 %v4949_v25  ;;  %6827 = vst [vmem:[#allocation46_spill] sm:$0xff] %v4955_v26  ;;  %6828 = vst [vmem:[#allocation47_spill] sm:$0xff] %v4961_v27  ;;  %v4967_v28 = vld [vmem:[%s6223_s3 + $0x1a4] ss:$16 sps:$4 sm:$0xff]   ;;  %v4973_v25 = vld [vmem:[%s6223_s3 + $0x1ac] ss:$16 sps:$4 sm:$0xff]  }
 0x378   :  { %6829 = vst [vmem:[#allocation48_spill] sm:$0xff] %v4967_v28  ;;  %6830 = vst [vmem:[#allocation49_spill] sm:$0xff] %v4973_v25 }
 0x37a   :  { %1639 = vmatpush2.bf16.msra.mxu0 %v4955_v26  ;;  %1680 = vmatpush2.bf16.msra.mxu1 %v4961_v27  ;;  %v4979_v26 = vld [vmem:[%s6223_s3 + $0x1a0] ss:$16 sps:$4 sm:$0xff]   ;;  %v4985_v27 = vld [vmem:[%s6223_s3 + $0x1a8] ss:$16 sps:$4 sm:$0xff]  }
 0x37b   :  { %1640 = vmatprep.subr.bf16.mxu0 %v4967_v28  ;;  %1681 = vmatprep.subr.bf16.mxu1 %v4973_v25  ;;  %6831 = vst [vmem:[#allocation50_spill] sm:$0xff] %v4979_v26  ;;  %6832 = vst [vmem:[#allocation51_spill] sm:$0xff] %v4985_v27  ;;  %v4991_v28 = vld [vmem:[%s6223_s3 + $0x184] ss:$16 sps:$4 sm:$0xff]   ;;  %v4997_v25 = vld [vmem:[%s6223_s3 + $0x18c] ss:$16 sps:$4 sm:$0xff]  }
 0x37c   :  { %6833 = vst [vmem:[#allocation52_spill] sm:$0xff] %v4991_v28  ;;  %6834 = vst [vmem:[#allocation53_spill] sm:$0xff] %v4997_v25 }
 0x37e   :  { %1641 = vmatpush2.bf16.msra.mxu0 %v4979_v26  ;;  %1682 = vmatpush2.bf16.msra.mxu1 %v4985_v27  ;;  %v5003_v26 = vld [vmem:[%s6223_s3 + $0x180] ss:$16 sps:$4 sm:$0xff]   ;;  %v5009_v27 = vld [vmem:[%s6223_s3 + $0x188] ss:$16 sps:$4 sm:$0xff]  }
 0x37f   :  { %1642 = vmatprep.subr.bf16.mxu0 %v4991_v28  ;;  %1683 = vmatprep.subr.bf16.mxu1 %v4997_v25  ;;  %6835 = vst [vmem:[#allocation54_spill] sm:$0xff] %v5003_v26  ;;  %6836 = vst [vmem:[#allocation55_spill] sm:$0xff] %v5009_v27  ;;  %v5015_v28 = vld [vmem:[%s6223_s3 + $0x164] ss:$16 sps:$4 sm:$0xff]   ;;  %v5021_v25 = vld [vmem:[%s6223_s3 + $0x16c] ss:$16 sps:$4 sm:$0xff]  }
 0x380   :  { %6837 = vst [vmem:[#allocation56_spill] sm:$0xff] %v5015_v28  ;;  %6838 = vst [vmem:[#allocation3_spill] sm:$0xff] %v5021_v25 }
 0x382   :  { %1643 = vmatpush2.bf16.msra.mxu0 %v5003_v26  ;;  %1684 = vmatpush2.bf16.msra.mxu1 %v5009_v27  ;;  %v5027_v26 = vld [vmem:[%s6223_s3 + $0x160] ss:$16 sps:$4 sm:$0xff]   ;;  %v5033_v27 = vld [vmem:[%s6223_s3 + $0x168] ss:$16 sps:$4 sm:$0xff]  }
 0x383   :  { %1644 = vmatprep.subr.bf16.mxu0 %v5015_v28  ;;  %1685 = vmatprep.subr.bf16.mxu1 %v5021_v25  ;;  %6839 = vst [vmem:[#allocation4_spill] sm:$0xff] %v5027_v26  ;;  %6840 = vst [vmem:[#allocation9_spill] sm:$0xff] %v5033_v27  ;;  %v5039_v28 = vld [vmem:[%s6223_s3 + $0x144] ss:$16 sps:$4 sm:$0xff]   ;;  %v5045_v25 = vld [vmem:[%s6223_s3 + $0x14c] ss:$16 sps:$4 sm:$0xff]  }
 0x384   :  { %6841 = vst [vmem:[#allocation63_spill] sm:$0xff] %v5039_v28  ;;  %6842 = vst [vmem:[#allocation65_spill] sm:$0xff] %v5045_v25 }
 0x386   :  { %1645 = vmatpush2.bf16.msra.mxu0 %v5027_v26  ;;  %1686 = vmatpush2.bf16.msra.mxu1 %v5033_v27  ;;  %v5051_v26 = vld [vmem:[%s6223_s3 + $0x140] ss:$16 sps:$4 sm:$0xff]   ;;  %v5057_v27 = vld [vmem:[%s6223_s3 + $0x148] ss:$16 sps:$4 sm:$0xff]  }
 0x387   :  { %1646 = vmatprep.subr.bf16.mxu0 %v5039_v28  ;;  %1687 = vmatprep.subr.bf16.mxu1 %v5045_v25  ;;  %6843 = vst [vmem:[#allocation64_spill] sm:$0xff] %v5051_v26  ;;  %6844 = vst [vmem:[#allocation66_spill] sm:$0xff] %v5057_v27  ;;  %v5063_v28 = vld [vmem:[%s6223_s3 + $0x124] ss:$16 sps:$4 sm:$0xff]   ;;  %v5069_v25 = vld [vmem:[%s6223_s3 + $0x12c] ss:$16 sps:$4 sm:$0xff]  }
 0x388   :  { %6845 = vst [vmem:[#allocation10_spill] sm:$0xff] %v5063_v28  ;;  %6846 = vst [vmem:[#allocation11_spill] sm:$0xff] %v5069_v25 }
 0x38a   :  { %1647 = vmatpush2.bf16.msra.mxu0 %v5051_v26  ;;  %1688 = vmatpush2.bf16.msra.mxu1 %v5057_v27  ;;  %v5075_v26 = vld [vmem:[%s6223_s3 + $0x120] ss:$16 sps:$4 sm:$0xff]   ;;  %v5081_v27 = vld [vmem:[%s6223_s3 + $0x128] ss:$16 sps:$4 sm:$0xff]  }
 0x38b   :  { %1648 = vmatprep.subr.bf16.mxu0 %v5063_v28  ;;  %1689 = vmatprep.subr.bf16.mxu1 %v5069_v25  ;;  %6847 = vst [vmem:[#allocation12_spill] sm:$0xff] %v5075_v26  ;;  %6848 = vst [vmem:[#allocation13_spill] sm:$0xff] %v5081_v27  ;;  %v5087_v28 = vld [vmem:[%s6223_s3 + $0x104] ss:$16 sps:$4 sm:$0xff]   ;;  %v5093_v25 = vld [vmem:[%s6223_s3 + $0x10c] ss:$16 sps:$4 sm:$0xff]  }
 0x38c   :  { %6849 = vst [vmem:[#allocation14_spill] sm:$0xff] %v5087_v28  ;;  %6850 = vst [vmem:[#allocation15_spill] sm:$0xff] %v5093_v25 }
 0x38e   :  { %1649 = vmatpush2.bf16.msra.mxu0 %v5075_v26  ;;  %1690 = vmatpush2.bf16.msra.mxu1 %v5081_v27  ;;  %v5099_v26 = vld [vmem:[%s6223_s3 + $0x100] ss:$16 sps:$4 sm:$0xff]   ;;  %v5105_v27 = vld [vmem:[%s6223_s3 + $0x108] ss:$16 sps:$4 sm:$0xff]  }
 0x38f   :  { %1650 = vmatprep.subr.bf16.mxu0 %v5087_v28  ;;  %1691 = vmatprep.subr.bf16.mxu1 %v5093_v25  ;;  %6851 = vst [vmem:[#allocation16_spill] sm:$0xff] %v5099_v26  ;;  %6852 = vst [vmem:[#allocation17_spill] sm:$0xff] %v5105_v27 }
 0x392   :  { %1651 = vmatpush2.bf16.msra.mxu0 %v5099_v26  ;;  %1692 = vmatpush2.bf16.msra.mxu1 %v5105_v27 }
 0x393   :  { %1725 = vmatprep.subr.bf16.mxu0 %v6775_v33  ;;  %1766 = vmatprep.subr.bf16.mxu1 %v6776_v34 }
 0x3f5   :  { %v1444_v28 = vpop.f32.mrf.mxu0  ;;  %v1485_v25 = vpop.f32.mrf.mxu1 }
 0x3f6   :  { %v1445_v23 = vadd.f32 %v1444_v28, %v6777_v38  ;;  %v1486_v27 = vadd.f32 %v1485_v25, %v6779_v53  ;;  %v6854_v25 = vld [vmem:[#allocation67_spill] sm:$0xff] }
 0x3f7   :  { %v1446_v22 = vpop.f32.mrf.mxu0  ;;  %v1487_v17 = vpop.f32.mrf.mxu1 }
 0x3f8   :  { %v1492_v16 = vmul.f32 0.5, %v1445_v23  ;;  %v1447_v26 = vadd.f32 %v1446_v22, %v6778_v45  ;;  %v1488_v33 = vadd.f32 %v1487_v17, %v6780_v55 }
 0x3f9   :  { %v1448_v15 = vpop.f32.mrf.mxu0  ;;  %v1489_v14 = vpop.f32.mrf.mxu1 }
 0x3fa   :  { %3195 = vtanh.f32 %v1492_v16  ;;  %v1496_v62 = vmul.f32 0.5, %v1447_v26  ;;  %v1501_v34 = vmul.f32 0.5, %v1488_v33 }
 0x3fb   :  { %v1449_v61 = vpop.f32.mrf.mxu0  ;;  %v1490_v60 = vpop.f32.mrf.mxu1 }
 0x3fc   :  { %3197 = vtanh.f32 %v1496_v62 }
 0x3fd   :  { %3199 = vtanh.f32 %v1486_v27 }
 0x3fe   :  { %3201 = vtanh.f32 %v1501_v34 }
 0x407   :  { %v3196_v59 = vpop.eup %3195 }
 0x408   :  { %v1494_v28 = vmul.f32 0.5, %v3196_v59 }
 0x409   :  { %v3198_v38 = vpop.eup %3197 }
 0x40a   :  { %v1495_v58 = vadd.f32 0.5, %v1494_v28  ;;  %v1498_v23 = vmul.f32 0.5, %v3198_v38  ;;  %v3200_v15 = vpop.eup %3199  ;;  %v6855_v28 = vld [vmem:[#allocation69_spill] sm:$0xff] }
 0x40b   :  { %v3202_v26 = vpop.eup %3201 }
 0x40c   :  { %v1499_v22 = vadd.f32 0.5, %v1498_v23  ;;  %v1506_v16 = vmul.f32 %v3200_v15, %v1495_v58  ;;  %v1503_v55 = vmul.f32 0.5, %v3202_v26 }
 0x40e   :  { %v1505_v14 = vmul.f32 %v1499_v22, %v4701_v18  ;;  %v6856_v18 = vld [vmem:[#allocation68_spill] sm:$0xff] }
 0x410   :  { %v5115_v61 = vadd.f32 %v1506_v16, %v1505_v14  ;;  %v1504_v16 = vadd.f32 0.5, %v1503_v55 }
 0x412   :  { %6853 = vst [vmem:[#allocation18_spill] sm:$0xff] %v5115_v61  ;;  %3203 = vtanh.f32 %v5115_v61 }
 0x415   :  { %v1549_v60 = vpop.f32.mrf.mxu0  ;;  %v1590_v62 = vpop.f32.mrf.mxu1 }
 0x416   :  { %v1597_v17 = vadd.f32 %v1549_v60, %v6854_v25  ;;  %v1599_v58 = vadd.f32 %v1590_v62, %v6856_v18  ;;  %v6857_v25 = vld [vmem:[#allocation70_spill] sm:$0xff] }
 0x417   :  { %v1551_v27 = vpop.f32.mrf.mxu0  ;;  %v1592_v59 = vpop.f32.mrf.mxu1 }
 0x418   :  { %v1601_v33 = vmul.f32 0.5, %v1597_v17  ;;  %v1598_v38 = vadd.f32 %v1551_v27, %v6855_v28  ;;  %v1600_v53 = vadd.f32 %v1592_v59, %v6857_v25  ;;  %v6897_v25 = vld [vmem:[#allocation3_spill] sm:$0xff] }
 0x419   :  { %v1553_v34 = vpop.f32.mrf.mxu0  ;;  %v1594_v23 = vpop.f32.mrf.mxu1 }
 0x41a   :  { %3205 = vtanh.f32 %v1601_v33  ;;  %v1605_v22 = vmul.f32 0.5, %v1598_v38  ;;  %v1610_v17 = vmul.f32 0.5, %v1600_v53 }
 0x41b   :  { %v1554_v15 = vpop.f32.mrf.mxu0  ;;  %v1595_v14 = vpop.f32.mrf.mxu1 }
 0x41c   :  { %3207 = vtanh.f32 %v1605_v22  ;;  %v6893_v15 = vld [vmem:[#allocation53_spill] sm:$0xff]  ;;  %v6894_v14 = vld [vmem:[#allocation54_spill] sm:$0xff] }
 0x41d   :  { %3209 = vtanh.f32 %v1599_v58 }
 0x41e   :  { %3211 = vtanh.f32 %v1610_v17  ;;  %v6898_v17 = vld [vmem:[#allocation4_spill] sm:$0xff] }
 0x41f   :  { %v3204_v61 = vpop.eup %3203 }
 0x420   :  { %v1509_v60 = vmul.f32 %v3204_v61, %v1504_v16  ;;  %v6895_v16 = vld [vmem:[#allocation55_spill] sm:$0xff] }
 0x422   :  { %v1510_v45 = vpack.c.bf16 %v1509_v60, %v1509_v60  ;;  %v6896_v60 = vld [vmem:[#allocation56_spill] sm:$0xff] }
 0x424   :  { %1652 = vmatprep.mubr.bf16.mxu0 %v1510_v45  ;;  %1693 = vmatprep.mubr.bf16.mxu1 %v1510_v45 }
 0x427   :  { %v3206_v27 = vpop.eup %3205 }
 0x428   :  { %v1603_v28 = vmul.f32 0.5, %v3206_v27  ;;  %v6899_v27 = vld [vmem:[#allocation9_spill] sm:$0xff] }
 0x429   :  { %v3208_v26 = vpop.eup %3207 }
 0x42a   :  { %v1604_v33 = vadd.f32 0.5, %v1603_v28  ;;  %v1607_v34 = vmul.f32 0.5, %v3208_v26  ;;  %v3210_v62 = vpop.eup %3209  ;;  %v6900_v28 = vld [vmem:[#allocation63_spill] sm:$0xff]  ;;  %v6901_v26 = vld [vmem:[#allocation65_spill] sm:$0xff] }
 0x42b   :  { %v3212_v61 = vpop.eup %3211 }
 0x42c   :  { %v1608_v38 = vadd.f32 0.5, %v1607_v34  ;;  %v1615_v23 = vmul.f32 %v3210_v62, %v1604_v33  ;;  %v1612_v59 = vmul.f32 0.5, %v3212_v61  ;;  %v6902_v33 = vld [vmem:[#allocation64_spill] sm:$0xff]  ;;  %v6903_v34 = vld [vmem:[#allocation66_spill] sm:$0xff] }
 0x42d   :  { %v6904_v62 = vld [vmem:[#allocation10_spill] sm:$0xff] }
 0x42e   :  { %v1614_v55 = vmul.f32 %v1608_v38, %v4709_v19  ;;  %v1613_v58 = vadd.f32 0.5, %v1612_v59  ;;  %v6879_v19 = vld [vmem:[#allocation39_spill] sm:$0xff]  ;;  %v6908_v61 = vld [vmem:[#allocation14_spill] sm:$0xff] }
 0x42f   :  { %v6905_v38 = vld [vmem:[#allocation11_spill] sm:$0xff] }
 0x430   :  { %v5123_v18 = vadd.f32 %v1615_v23, %v1614_v55  ;;  %v6906_v23 = vld [vmem:[#allocation12_spill] sm:$0xff]  ;;  %v6907_v55 = vld [vmem:[#allocation13_spill] sm:$0xff]  ;;  %v6909_v59 = vld [vmem:[#allocation15_spill] sm:$0xff] }
 0x432   :  { %3213 = vtanh.f32 %v5123_v18 }
 0x43f   :  { %v3214_v45 = vpop.eup %3213 }
 0x440   :  { %v1618_v53 = vmul.f32 %v3214_v45, %v1613_v58  ;;  %v6910_v58 = vld [vmem:[#allocation16_spill] sm:$0xff]  ;;  %v6911_v45 = vld [vmem:[#allocation17_spill] sm:$0xff] }
 0x442   :  { %v1619_v22 = vpack.c.bf16 %v1618_v53, %v1618_v53  ;;  %v5225_v53 = vld [vmem:[%s6222_s2 + $0xe4] ss:$16 sps:$4 sm:$0xff]  }
 0x443   :  { %6912 = vst [vmem:[#allocation19_spill] sm:$0xff] %v5225_v53 }
 0x444   :  { %1653 = vmatmul.mubr.bf16.vlgmr.msra.gmra.mxu0 %v1619_v22  ;;  %1694 = vmatmul.mubr.bf16.vlgmr.msra.gmra.mxu1 %v1619_v22 }
 0x445   :  { %1726 = vmatpush1.bf16.msra.mxu0 %v4429_v4  ;;  %1767 = vmatpush1.bf16.msra.mxu1 %v4435_v13  ;;  %v6858_v4 = vld [vmem:[#allocation23_spill] sm:$0xff]  ;;  %v6859_v13 = vld [vmem:[#allocation24_spill] sm:$0xff] }
 0x446   :  { %1727 = vmatprep.subr.bf16.mxu0 %v4441_v6  ;;  %1768 = vmatprep.subr.bf16.mxu1 %v4447_v63  ;;  %v6860_v6 = vld [vmem:[#allocation25_spill] sm:$0xff]  ;;  %v6861_v63 = vld [vmem:[#allocation26_spill] sm:$0xff] }
 0x447   :  { %1757 = vmatprep.mubr.bf16.mxu0 %v6671_v20  ;;  %1798 = vmatprep.mubr.bf16.mxu1 %v6671_v20 }
 0x449   :  { %1728 = vmatpush1.bf16.msra.mxu0 %v4455_v8  ;;  %1769 = vmatpush1.bf16.msra.mxu1 %v4461_v11  ;;  %v6862_v8 = vld [vmem:[#allocation27_spill] sm:$0xff]  ;;  %v6863_v11 = vld [vmem:[#allocation28_spill] sm:$0xff] }
 0x44a   :  { %1729 = vmatprep.subr.bf16.mxu0 %v4467_v31  ;;  %1770 = vmatprep.subr.bf16.mxu1 %v4473_v21  ;;  %v6864_v31 = vld [vmem:[#allocation29_spill] sm:$0xff]  ;;  %v6865_v21 = vld [vmem:[#allocation30_spill] sm:$0xff] }
 0x44d   :  { %1730 = vmatpush1.bf16.msra.mxu0 %v4479_v9  ;;  %1771 = vmatpush1.bf16.msra.mxu1 %v4485_v0  ;;  %v6866_v9 = vld [vmem:[#allocation31_spill] sm:$0xff]  ;;  %v6867_v0 = vld [vmem:[#allocation32_spill] sm:$0xff] }
 0x44e   :  { %1731 = vmatprep.subr.bf16.mxu0 %v4491_v46  ;;  %1772 = vmatprep.subr.bf16.mxu1 %v4497_v5  ;;  %v6868_v46 = vld [vmem:[#allocation33_spill] sm:$0xff]  ;;  %v6869_v5 = vld [vmem:[#allocation34_spill] sm:$0xff] }
 0x451   :  { %1732 = vmatpush1.bf16.msra.mxu0 %v4503_v1  ;;  %1773 = vmatpush1.bf16.msra.mxu1 %v4509_v43  ;;  %v6870_v1 = vld [vmem:[#allocation35_spill] sm:$0xff]  ;;  %v6871_v43 = vld [vmem:[#allocation36_spill] sm:$0xff] }
 0x452   :  { %1733 = vmatprep.subr.bf16.mxu0 %v4515_v10  ;;  %1774 = vmatprep.subr.bf16.mxu1 %v4521_v12  ;;  %v6872_v10 = vld [vmem:[#allocation57_spill] sm:$0xff]  ;;  %v6873_v12 = vld [vmem:[#allocation59_spill] sm:$0xff] }
 0x455   :  { %1734 = vmatpush1.bf16.msra.mxu0 %v4527_v7  ;;  %1775 = vmatpush1.bf16.msra.mxu1 %v6786_v24  ;;  %v6874_v7 = vld [vmem:[#allocation61_spill] sm:$0xff]  ;;  %v6880_v24 = vld [vmem:[#allocation40_spill] sm:$0xff] }
 0x456   :  { %1735 = vmatprep.subr.bf16.mxu0 %v6787_v29  ;;  %1776 = vmatprep.subr.bf16.mxu1 %v6788_v30  ;;  %v6881_v29 = vld [vmem:[#allocation41_spill] sm:$0xff]  ;;  %v6882_v30 = vld [vmem:[#allocation42_spill] sm:$0xff] }
 0x459   :  { %1736 = vmatpush1.bf16.msra.mxu0 %v6789_v36  ;;  %1777 = vmatpush1.bf16.msra.mxu1 %v6790_v37  ;;  %v6883_v36 = vld [vmem:[#allocation43_spill] sm:$0xff]  ;;  %v6884_v37 = vld [vmem:[#allocation44_spill] sm:$0xff] }
 0x45a   :  { %1737 = vmatprep.subr.bf16.mxu0 %v6791_v39  ;;  %1778 = vmatprep.subr.bf16.mxu1 %v6792_v40  ;;  %v6885_v39 = vld [vmem:[#allocation45_spill] sm:$0xff]  ;;  %v6886_v40 = vld [vmem:[#allocation46_spill] sm:$0xff] }
 0x45d   :  { %1738 = vmatpush1.bf16.msra.mxu0 %v6793_v41  ;;  %1779 = vmatpush1.bf16.msra.mxu1 %v6794_v44  ;;  %v6887_v41 = vld [vmem:[#allocation47_spill] sm:$0xff]  ;;  %v6888_v44 = vld [vmem:[#allocation48_spill] sm:$0xff] }
 0x45e   :  { %1739 = vmatprep.subr.bf16.mxu0 %v6795_v47  ;;  %1780 = vmatprep.subr.bf16.mxu1 %v6796_v48  ;;  %v6889_v47 = vld [vmem:[#allocation49_spill] sm:$0xff]  ;;  %v6890_v48 = vld [vmem:[#allocation50_spill] sm:$0xff] }
 0x461   :  { %1740 = vmatpush1.bf16.msra.mxu0 %v4599_v32  ;;  %1781 = vmatpush1.bf16.msra.mxu1 %v6797_v49  ;;  %v6878_v32 = vld [vmem:[#allocation38_spill] sm:$0xff]  ;;  %v6891_v49 = vld [vmem:[#allocation51_spill] sm:$0xff] }
 0x462   :  { %1830 = vmatprep.subr.bf16.mxu0 %v6798_v50  ;;  %1871 = vmatprep.subr.bf16.mxu1 %v4617_v42  ;;  %v6877_v42 = vld [vmem:[#allocation37_spill] sm:$0xff]  ;;  %v6892_v50 = vld [vmem:[#allocation52_spill] sm:$0xff] }
 0x464   :  { %1758 = vmatmul.mubr.bf16.vlgmr.msra.gmra.mxu0 %v1619_v22  ;;  %1799 = vmatmul.mubr.bf16.vlgmr.msra.gmra.mxu1 %v1619_v22  ;;  %v5231_v22 = vld [vmem:[%s6222_s2 + $0xec] ss:$16 sps:$4 sm:$0xff]  }
 0x465   :  { %1831 = vmatpush1.bf16.msra.mxu0 %v4625_v3  ;;  %1872 = vmatpush1.bf16.msra.mxu1 %v4631_v2  ;;  %v6875_v3 = vld [vmem:[#allocation60_spill] sm:$0xff]  ;;  %v6876_v2 = vld [vmem:[#allocation62_spill] sm:$0xff]  ;;  %6913 = vst [vmem:[#allocation20_spill] sm:$0xff] %v5231_v22 }
 0x466   :  { %1832 = vmatprep.subr.bf16.mxu0 %v4751_v51  ;;  %1873 = vmatprep.subr.bf16.mxu1 %v4757_v52 }
 0x469   :  { %1833 = vmatpush1.bf16.msra.mxu0 %v4763_v54  ;;  %1874 = vmatpush1.bf16.msra.mxu1 %v4769_v56 }
 0x46a   :  { %1834 = vmatprep.subr.bf16.mxu0 %v4775_v35  ;;  %1875 = vmatprep.subr.bf16.mxu1 %v4781_v57 }
 0x46d   :  { %1835 = vmatpush1.bf16.msra.mxu0 %v6858_v4  ;;  %1876 = vmatpush1.bf16.msra.mxu1 %v6859_v13 }
 0x46e   :  { %1836 = vmatprep.subr.bf16.mxu0 %v6860_v6  ;;  %1877 = vmatprep.subr.bf16.mxu1 %v6861_v63 }
 0x471   :  { %1837 = vmatpush1.bf16.msra.mxu0 %v6862_v8  ;;  %1878 = vmatpush1.bf16.msra.mxu1 %v6863_v11 }
 0x472   :  { %1838 = vmatprep.subr.bf16.mxu0 %v6864_v31  ;;  %1879 = vmatprep.subr.bf16.mxu1 %v6865_v21 }
 0x475   :  { %1839 = vmatpush1.bf16.msra.mxu0 %v6866_v9  ;;  %1880 = vmatpush1.bf16.msra.mxu1 %v6867_v0 }
 0x476   :  { %1840 = vmatprep.subr.bf16.mxu0 %v6868_v46  ;;  %1881 = vmatprep.subr.bf16.mxu1 %v6869_v5 }
 0x479   :  { %1841 = vmatpush1.bf16.msra.mxu0 %v6870_v1  ;;  %1882 = vmatpush1.bf16.msra.mxu1 %v6871_v43 }
 0x47a   :  { %1842 = vmatprep.subr.bf16.mxu0 %v6872_v10  ;;  %1883 = vmatprep.subr.bf16.mxu1 %v6873_v12 }
 0x47d   :  { %1843 = vmatpush1.bf16.msra.mxu0 %v6874_v7  ;;  %1884 = vmatpush1.bf16.msra.mxu1 %v6875_v3 }
 0x47e   :  { %1844 = vmatprep.subr.bf16.mxu0 %v6876_v2  ;;  %1885 = vmatprep.subr.bf16.mxu1 %v6877_v42 }
 0x481   :  { %1845 = vmatpush1.bf16.msra.mxu0 %v6878_v32  ;;  %1886 = vmatpush1.bf16.msra.mxu1 %v6879_v19 }
 0x482   :  { %1846 = vmatprep.subr.bf16.mxu0 %v6880_v24  ;;  %1887 = vmatprep.subr.bf16.mxu1 %v6881_v29 }
 0x485   :  { %1847 = vmatpush2.bf16.msra.mxu0 %v6882_v30  ;;  %1888 = vmatpush2.bf16.msra.mxu1 %v6883_v36 }
 0x486   :  { %1848 = vmatprep.subr.bf16.mxu0 %v6884_v37  ;;  %1889 = vmatprep.subr.bf16.mxu1 %v6885_v39 }
 0x489   :  { %1849 = vmatpush2.bf16.msra.mxu0 %v6886_v40  ;;  %1890 = vmatpush2.bf16.msra.mxu1 %v6887_v41 }
 0x48a   :  { %1850 = vmatprep.subr.bf16.mxu0 %v6888_v44  ;;  %1891 = vmatprep.subr.bf16.mxu1 %v6889_v47 }
 0x48d   :  { %1851 = vmatpush2.bf16.msra.mxu0 %v6890_v48  ;;  %1892 = vmatpush2.bf16.msra.mxu1 %v6891_v49 }
 0x48e   :  { %1852 = vmatprep.subr.bf16.mxu0 %v6892_v50  ;;  %1893 = vmatprep.subr.bf16.mxu1 %v6893_v15 }
 0x491   :  { %1853 = vmatpush2.bf16.msra.mxu0 %v6894_v14  ;;  %1894 = vmatpush2.bf16.msra.mxu1 %v6895_v16 }
 0x492   :  { %1854 = vmatprep.subr.bf16.mxu0 %v6896_v60  ;;  %1895 = vmatprep.subr.bf16.mxu1 %v6897_v25 }
 0x495   :  { %1855 = vmatpush2.bf16.msra.mxu0 %v6898_v17  ;;  %1896 = vmatpush2.bf16.msra.mxu1 %v6899_v27  ;;  %v6916_v17 = vld [vmem:[#allocation7_spill] sm:$0xff] }
 0x496   :  { %1856 = vmatprep.subr.bf16.mxu0 %v6900_v28  ;;  %1897 = vmatprep.subr.bf16.mxu1 %v6901_v26 }
 0x499   :  { %1857 = vmatpush2.bf16.msra.mxu0 %v6902_v33  ;;  %1898 = vmatpush2.bf16.msra.mxu1 %v6903_v34 }
 0x49a   :  { %1858 = vmatprep.subr.bf16.mxu0 %v6904_v62  ;;  %1899 = vmatprep.subr.bf16.mxu1 %v6905_v38  ;;  %v6915_v62 = vld [vmem:[#allocation6_spill] sm:$0xff] }
 0x49d   :  { %1859 = vmatpush2.bf16.msra.mxu0 %v6906_v23  ;;  %1900 = vmatpush2.bf16.msra.mxu1 %v6907_v55  ;;  %v6914_v55 = vld [vmem:[#allocation5_spill] sm:$0xff] }
 0x49e   :  { %1860 = vmatprep.subr.bf16.mxu0 %v6908_v61  ;;  %1901 = vmatprep.subr.bf16.mxu1 %v6909_v59 }
 0x4a1   :  { %1861 = vmatpush2.bf16.msra.mxu0 %v6910_v58  ;;  %1902 = vmatpush2.bf16.msra.mxu1 %v6911_v45 }
 0x4a2   :  { %1935 = vmatprep.subr.bf16.mxu0 %v5225_v53  ;;  %1976 = vmatprep.subr.bf16.mxu1 %v5231_v22  ;;  %v6917_v22 = vld [vmem:[#allocation8_spill] sm:$0xff] }
 0x504   :  { %v1654_v61 = vpop.f32.mrf.mxu0  ;;  %v1695_v59 = vpop.f32.mrf.mxu1 }
 0x505   :  { %v1655_v58 = vadd.f32 %v1654_v61, %v6914_v55  ;;  %v1696_v25 = vadd.f32 %v1695_v59, %v6916_v17  ;;  %v6920_v59 = vld [vmem:[#allocation71_spill] sm:$0xff] }
 0x506   :  { %v1656_v23 = vpop.f32.mrf.mxu0  ;;  %v1697_v45 = vpop.f32.mrf.mxu1 }
 0x507   :  { %v1702_v38 = vmul.f32 0.5, %v1655_v58  ;;  %v1657_v34 = vadd.f32 %v1656_v23, %v6915_v62  ;;  %v1698_v60 = vadd.f32 %v1697_v45, %v6917_v22 }
 0x508   :  { %v1658_v33 = vpop.f32.mrf.mxu0  ;;  %v1699_v26 = vpop.f32.mrf.mxu1 }
 0x509   :  { %3215 = vtanh.f32 %v1702_v38  ;;  %v1706_v53 = vmul.f32 0.5, %v1657_v34  ;;  %v1711_v16 = vmul.f32 0.5, %v1698_v60  ;;  %v6918_v26 = vld [vmem:[#allocation18_spill] sm:$0xff] }
 0x50a   :  { %v1659_v28 = vpop.f32.mrf.mxu0  ;;  %v1700_v27 = vpop.f32.mrf.mxu1 }
 0x50b   :  { %3217 = vtanh.f32 %v1706_v53 }
 0x50c   :  { %3219 = vtanh.f32 %v1696_v25 }
 0x50d   :  { %3221 = vtanh.f32 %v1711_v16 }
 0x516   :  { %v3216_v14 = vpop.eup %3215 }
 0x517   :  { %v1704_v61 = vmul.f32 0.5, %v3216_v14 }
 0x518   :  { %v3218_v55 = vpop.eup %3217 }
 0x519   :  { %v1705_v15 = vadd.f32 0.5, %v1704_v61  ;;  %v1708_v58 = vmul.f32 0.5, %v3218_v55  ;;  %v3220_v33 = vpop.eup %3219  ;;  %v6921_v61 = vld [vmem:[#allocation73_spill] sm:$0xff] }
 0x51a   :  { %v3222_v60 = vpop.eup %3221 }
 0x51b   :  { %v1709_v23 = vadd.f32 0.5, %v1708_v58  ;;  %v1716_v34 = vmul.f32 %v3220_v33, %v1705_v15  ;;  %v1713_v17 = vmul.f32 0.5, %v3222_v60 }
 0x51d   :  { %v1715_v38 = vmul.f32 %v1709_v23, %v6918_v26  ;;  %v6922_v23 = vld [vmem:[#allocation72_spill] sm:$0xff] }
 0x51f   :  { %v5239_v28 = vadd.f32 %v1716_v34, %v1715_v38  ;;  %v1714_v34 = vadd.f32 0.5, %v1713_v17 }
 0x521   :  { %6919 = vst [vmem:[#allocation21_spill] sm:$0xff] %v5239_v28  ;;  %3223 = vtanh.f32 %v5239_v28 }
 0x524   :  { %v1759_v27 = vpop.f32.mrf.mxu0  ;;  %v1800_v25 = vpop.f32.mrf.mxu1 }
 0x525   :  { %v1807_v45 = vadd.f32 %v1759_v27, %v6920_v59  ;;  %v1809_v15 = vadd.f32 %v1800_v25, %v6922_v23  ;;  %v6923_v59 = vld [vmem:[#allocation74_spill] sm:$0xff] }
 0x526   :  { %v1761_v53 = vpop.f32.mrf.mxu0  ;;  %v1802_v14 = vpop.f32.mrf.mxu1 }
 0x527   :  { %v1811_v22 = vmul.f32 0.5, %v1807_v45  ;;  %v1808_v55 = vadd.f32 %v1761_v53, %v6921_v61  ;;  %v1810_v62 = vadd.f32 %v1802_v14, %v6923_v59  ;;  %v5289_v59 = vld [vmem:[%s6222_s2 + $0xc8] ss:$16 sps:$4 sm:$0xff]  }
 0x528   :  { %v1763_v16 = vpop.f32.mrf.mxu0  ;;  %v1804_v58 = vpop.f32.mrf.mxu1 }
 0x529   :  { %3225 = vtanh.f32 %v1811_v22  ;;  %v1815_v33 = vmul.f32 0.5, %v1808_v55  ;;  %v1820_v45 = vmul.f32 0.5, %v1810_v62 }
 0x52a   :  { %v1764_v26 = vpop.f32.mrf.mxu0  ;;  %v1805_v38 = vpop.f32.mrf.mxu1 }
 0x52b   :  { %3227 = vtanh.f32 %v1815_v33  ;;  %v5257_v26 = vld [vmem:[%s6222_s2 + $0xe0] ss:$16 sps:$4 sm:$0xff]   ;;  %v5269_v38 = vld [vmem:[%s6222_s2 + $0xc4] ss:$16 sps:$4 sm:$0xff]  }
 0x52c   :  { %3229 = vtanh.f32 %v1809_v15 }
 0x52d   :  { %3231 = vtanh.f32 %v1820_v45  ;;  %v5295_v45 = vld [vmem:[%s6222_s2 + $0xa4] ss:$16 sps:$4 sm:$0xff]  }
 0x52e   :  { %v3224_v28 = vpop.eup %3223 }
 0x52f   :  { %v1719_v27 = vmul.f32 %v3224_v28, %v1714_v34  ;;  %v5275_v34 = vld [vmem:[%s6222_s2 + $0xcc] ss:$16 sps:$4 sm:$0xff]  }
 0x531   :  { %v1720_v50 = vpack.c.bf16 %v1719_v27, %v1719_v27  ;;  %v5283_v27 = vld [vmem:[%s6222_s2 + $0xc0] ss:$16 sps:$4 sm:$0xff]  }
 0x533   :  { %1862 = vmatprep.mubr.bf16.mxu0 %v1720_v50  ;;  %1903 = vmatprep.mubr.bf16.mxu1 %v1720_v50 }
 0x536   :  { %v3226_v53 = vpop.eup %3225 }
 0x537   :  { %v1813_v61 = vmul.f32 0.5, %v3226_v53  ;;  %v5301_v53 = vld [vmem:[%s6222_s2 + $0xac] ss:$16 sps:$4 sm:$0xff]  }
 0x538   :  { %v3228_v60 = vpop.eup %3227 }
 0x539   :  { %v1814_v22 = vadd.f32 0.5, %v1813_v61  ;;  %v1817_v16 = vmul.f32 0.5, %v3228_v60  ;;  %v3230_v25 = vpop.eup %3229  ;;  %v5307_v61 = vld [vmem:[%s6222_s2 + $0xa0] ss:$16 sps:$4 sm:$0xff]   ;;  %v5313_v60 = vld [vmem:[%s6222_s2 + $0xa8] ss:$16 sps:$4 sm:$0xff]  }
 0x53a   :  { %v3232_v28 = vpop.eup %3231 }
 0x53b   :  { %v1818_v55 = vadd.f32 0.5, %v1817_v16  ;;  %v1825_v58 = vmul.f32 %v3230_v25, %v1814_v22  ;;  %v1822_v14 = vmul.f32 0.5, %v3232_v28  ;;  %v5319_v22 = vld [vmem:[%s6222_s2 + $0x84] ss:$16 sps:$4 sm:$0xff]   ;;  %v5325_v16 = vld [vmem:[%s6222_s2 + $0x8c] ss:$16 sps:$4 sm:$0xff]  }
 0x53c   :  { %v5331_v25 = vld [vmem:[%s6222_s2 + $0x80] ss:$16 sps:$4 sm:$0xff]  }
 0x53d   :  { %v1824_v17 = vmul.f32 %v1818_v55, %v5123_v18  ;;  %v1823_v15 = vadd.f32 0.5, %v1822_v14  ;;  %v5263_v18 = vld [vmem:[%s6222_s2 + $0xe8] ss:$16 sps:$4 sm:$0xff]   ;;  %v5355_v28 = vld [vmem:[%s6222_s2 + $0x60] ss:$16 sps:$4 sm:$0xff]  }
 0x53e   :  { %v5337_v55 = vld [vmem:[%s6222_s2 + $0x88] ss:$16 sps:$4 sm:$0xff]  }
 0x53f   :  { %v5247_v23 = vadd.f32 %v1825_v58, %v1824_v17  ;;  %v5343_v58 = vld [vmem:[%s6222_s2 + $0x64] ss:$16 sps:$4 sm:$0xff]   ;;  %v5349_v17 = vld [vmem:[%s6222_s2 + $0x6c] ss:$16 sps:$4 sm:$0xff]   ;;  %v5361_v14 = vld [vmem:[%s6222_s2 + $0x68] ss:$16 sps:$4 sm:$0xff]  }
 0x540   :  { %6924 = vst [vmem:[#allocation22_spill] sm:$0xff] %v5361_v14 }
 0x541   :  { %3233 = vtanh.f32 %v5247_v23 }
 0x54e   :  { %v3234_v50 = vpop.eup %3233 }
 0x54f   :  { %v1828_v62 = vmul.f32 %v3234_v50, %v1823_v15  ;;  %v5367_v15 = vld [vmem:[%s6222_s2 + $0x44] ss:$16 sps:$4 sm:$0xff]   ;;  %v5373_v50 = vld [vmem:[%s6222_s2 + $0x4c] ss:$16 sps:$4 sm:$0xff]  }
 0x550   :  { %6925 = vst [vmem:[#allocation67_spill] sm:$0xff] %v5367_v15  ;;  %6926 = vst [vmem:[#allocation69_spill] sm:$0xff] %v5373_v50 }
 0x551   :  { %v5250_v33 = vpack.c.bf16 %v1828_v62, %v1828_v62  ;;  %v5379_v62 = vld [vmem:[%s6222_s2 + $0x40] ss:$16 sps:$4 sm:$0xff]  }
 0x552   :  { %6927 = vst [vmem:[#allocation68_spill] sm:$0xff] %v5379_v62 }
 0x553   :  { %1863 = vmatmul.mubr.bf16.vlgmr.msra.gmra.mxu0 %v5250_v33  ;;  %1904 = vmatmul.mubr.bf16.vlgmr.msra.gmra.mxu1 %v5250_v33 }
 0x554   :  { %1936 = vmatpush1.bf16.msra.mxu0 %v5257_v26  ;;  %1977 = vmatpush1.bf16.msra.mxu1 %v5263_v18 }
 0x555   :  { %1937 = vmatprep.subr.bf16.mxu0 %v5269_v38  ;;  %1978 = vmatprep.subr.bf16.mxu1 %v5275_v34 }
 0x556   :  { %1967 = vmatprep.mubr.bf16.mxu0 %v6671_v20  ;;  %2008 = vmatprep.mubr.bf16.mxu1 %v6671_v20 }
 0x558   :  { %1938 = vmatpush1.bf16.msra.mxu0 %v5283_v27  ;;  %1979 = vmatpush1.bf16.msra.mxu1 %v5289_v59 }
 0x559   :  { %1939 = vmatprep.subr.bf16.mxu0 %v5295_v45  ;;  %1980 = vmatprep.subr.bf16.mxu1 %v5301_v53 }
 0x55c   :  { %1940 = vmatpush1.bf16.msra.mxu0 %v5307_v61  ;;  %1981 = vmatpush1.bf16.msra.mxu1 %v5313_v60 }
 0x55d   :  { %1941 = vmatprep.subr.bf16.mxu0 %v5319_v22  ;;  %1982 = vmatprep.subr.bf16.mxu1 %v5325_v16 }
 0x560   :  { %1942 = vmatpush1.bf16.msra.mxu0 %v5331_v25  ;;  %1983 = vmatpush1.bf16.msra.mxu1 %v5337_v55 }
 0x561   :  { %1943 = vmatprep.subr.bf16.mxu0 %v5343_v58  ;;  %1984 = vmatprep.subr.bf16.mxu1 %v5349_v17 }
 0x564   :  { %1944 = vmatpush1.bf16.msra.mxu0 %v5355_v28  ;;  %1985 = vmatpush1.bf16.msra.mxu1 %v5361_v14  ;;  %v5385_v14 = vld [vmem:[%s6222_s2 + $0x48] ss:$16 sps:$4 sm:$0xff]  }
 0x565   :  { %1945 = vmatprep.subr.bf16.mxu0 %v5367_v15  ;;  %1986 = vmatprep.subr.bf16.mxu1 %v5373_v50  ;;  %6928 = vst [vmem:[#allocation70_spill] sm:$0xff] %v5385_v14  ;;  %v5391_v15 = vld [vmem:[%s6222_s2 + $0x24] ss:$16 sps:$4 sm:$0xff]   ;;  %v5397_v50 = vld [vmem:[%s6222_s2 + $0x2c] ss:$16 sps:$4 sm:$0xff]  }
 0x566   :  { %6929 = vst [vmem:[#allocation23_spill] sm:$0xff] %v5391_v15  ;;  %6930 = vst [vmem:[#allocation24_spill] sm:$0xff] %v5397_v50 }
 0x568   :  { %1946 = vmatpush1.bf16.msra.mxu0 %v5379_v62  ;;  %1987 = vmatpush1.bf16.msra.mxu1 %v5385_v14  ;;  %v5403_v62 = vld [vmem:[%s6222_s2 + $0x20] ss:$16 sps:$4 sm:$0xff]   ;;  %v5409_v14 = vld [vmem:[%s6222_s2 + $0x28] ss:$16 sps:$4 sm:$0xff]  }
 0x569   :  { %1947 = vmatprep.subr.bf16.mxu0 %v5391_v15  ;;  %1988 = vmatprep.subr.bf16.mxu1 %v5397_v50  ;;  %6931 = vst [vmem:[#allocation25_spill] sm:$0xff] %v5403_v62  ;;  %6932 = vst [vmem:[#allocation26_spill] sm:$0xff] %v5409_v14  ;;  %v5415_v15 = vld [vmem:[%s6222_s2 + $0x4] ss:$16 sps:$4 sm:$0xff]   ;;  %v5421_v50 = vld [vmem:[%s6222_s2 + $0xc] ss:$16 sps:$4 sm:$0xff]  }
 0x56a   :  { %6933 = vst [vmem:[#allocation27_spill] sm:$0xff] %v5415_v15  ;;  %6934 = vst [vmem:[#allocation28_spill] sm:$0xff] %v5421_v50 }
 0x56c   :  { %1948 = vmatpush1.bf16.msra.mxu0 %v5403_v62  ;;  %1989 = vmatpush1.bf16.msra.mxu1 %v5409_v14  ;;  %v5427_v62 = vld [vmem:[%s6222_s2] ss:$16 sps:$4 sm:$0xff]   ;;  %v5433_v14 = vld [vmem:[%s6222_s2 + $0x8] ss:$16 sps:$4 sm:$0xff]  }
 0x56d   :  { %1949 = vmatprep.subr.bf16.mxu0 %v5415_v15  ;;  %1990 = vmatprep.subr.bf16.mxu1 %v5421_v50  ;;  %6935 = vst [vmem:[#allocation29_spill] sm:$0xff] %v5433_v14  ;;  %v5439_v15 = vld [vmem:[%s6223_s3 + $0xe4] ss:$16 sps:$4 sm:$0xff]   ;;  %v5445_v50 = vld [vmem:[%s6223_s3 + $0xec] ss:$16 sps:$4 sm:$0xff]  }
 0x56e   :  { %6936 = vst [vmem:[#allocation30_spill] sm:$0xff] %v5439_v15 }
 0x570   :  { %1950 = vmatpush1.bf16.msra.mxu0 %v5427_v62  ;;  %1991 = vmatpush1.bf16.msra.mxu1 %v5433_v14  ;;  %v5453_v14 = vld [vmem:[%s6223_s3 + $0xe0] ss:$16 sps:$4 sm:$0xff]  }
 0x571   :  { %2040 = vmatprep.subr.bf16.mxu0 %v5439_v15  ;;  %2081 = vmatprep.subr.bf16.mxu1 %v5445_v50  ;;  %v5459_v15 = vld [vmem:[%s6223_s3 + $0xe8] ss:$16 sps:$4 sm:$0xff]  }
 0x573   :  { %1968 = vmatmul.mubr.bf16.vlgmr.msra.gmra.mxu0 %v5250_v33  ;;  %2009 = vmatmul.mubr.bf16.vlgmr.msra.gmra.mxu1 %v5250_v33 }
 0x574   :  { %2041 = vmatpush1.bf16.msra.mxu0 %v5453_v14  ;;  %2082 = vmatpush1.bf16.msra.mxu1 %v5459_v15 }
 0x575   :  { %2042 = vmatprep.subr.bf16.mxu0 %v4751_v51  ;;  %2083 = vmatprep.subr.bf16.mxu1 %v4757_v52  ;;  %v6937_v51 = vld [vmem:[#allocation52_spill] sm:$0xff]  ;;  %v6938_v52 = vld [vmem:[#allocation53_spill] sm:$0xff] }
 0x578   :  { %2043 = vmatpush1.bf16.msra.mxu0 %v4763_v54  ;;  %2084 = vmatpush1.bf16.msra.mxu1 %v4769_v56  ;;  %v6939_v54 = vld [vmem:[#allocation54_spill] sm:$0xff]  ;;  %v6940_v56 = vld [vmem:[#allocation55_spill] sm:$0xff] }
 0x579   :  { %2044 = vmatprep.subr.bf16.mxu0 %v4775_v35  ;;  %2085 = vmatprep.subr.bf16.mxu1 %v4781_v57  ;;  %v6941_v35 = vld [vmem:[#allocation56_spill] sm:$0xff]  ;;  %v6942_v57 = vld [vmem:[#allocation3_spill] sm:$0xff] }
 0x57c   :  { %2045 = vmatpush1.bf16.msra.mxu0 %v6858_v4  ;;  %2086 = vmatpush1.bf16.msra.mxu1 %v6859_v13  ;;  %v6943_v4 = vld [vmem:[#allocation4_spill] sm:$0xff]  ;;  %v6944_v13 = vld [vmem:[#allocation9_spill] sm:$0xff] }
 0x57d   :  { %2046 = vmatprep.subr.bf16.mxu0 %v6860_v6  ;;  %2087 = vmatprep.subr.bf16.mxu1 %v6861_v63  ;;  %v6945_v6 = vld [vmem:[#allocation63_spill] sm:$0xff]  ;;  %v6946_v63 = vld [vmem:[#allocation65_spill] sm:$0xff] }
 0x580   :  { %2047 = vmatpush1.bf16.msra.mxu0 %v6862_v8  ;;  %2088 = vmatpush1.bf16.msra.mxu1 %v6863_v11  ;;  %v6947_v8 = vld [vmem:[#allocation64_spill] sm:$0xff]  ;;  %v6948_v11 = vld [vmem:[#allocation66_spill] sm:$0xff] }
 0x581   :  { %2048 = vmatprep.subr.bf16.mxu0 %v6864_v31  ;;  %2089 = vmatprep.subr.bf16.mxu1 %v6865_v21  ;;  %v6949_v31 = vld [vmem:[#allocation10_spill] sm:$0xff]  ;;  %v6950_v21 = vld [vmem:[#allocation11_spill] sm:$0xff] }
 0x584   :  { %2049 = vmatpush1.bf16.msra.mxu0 %v6866_v9  ;;  %2090 = vmatpush1.bf16.msra.mxu1 %v6867_v0  ;;  %v6951_v9 = vld [vmem:[#allocation12_spill] sm:$0xff]  ;;  %v6952_v0 = vld [vmem:[#allocation13_spill] sm:$0xff] }
 0x585   :  { %2050 = vmatprep.subr.bf16.mxu0 %v6868_v46  ;;  %2091 = vmatprep.subr.bf16.mxu1 %v6869_v5  ;;  %v6953_v46 = vld [vmem:[#allocation14_spill] sm:$0xff]  ;;  %v6954_v5 = vld [vmem:[#allocation15_spill] sm:$0xff] }
 0x588   :  { %2051 = vmatpush1.bf16.msra.mxu0 %v6870_v1  ;;  %2092 = vmatpush1.bf16.msra.mxu1 %v6871_v43  ;;  %v6955_v1 = vld [vmem:[#allocation16_spill] sm:$0xff]  ;;  %v6956_v43 = vld [vmem:[#allocation17_spill] sm:$0xff] }
 0x589   :  { %2052 = vmatprep.subr.bf16.mxu0 %v6872_v10  ;;  %2093 = vmatprep.subr.bf16.mxu1 %v6873_v12  ;;  %v6957_v10 = vld [vmem:[#allocation19_spill] sm:$0xff]  ;;  %v6958_v12 = vld [vmem:[#allocation20_spill] sm:$0xff] }
 0x58c   :  { %2053 = vmatpush1.bf16.msra.mxu0 %v6874_v7  ;;  %2094 = vmatpush1.bf16.msra.mxu1 %v6875_v3 }
 0x58d   :  { %2054 = vmatprep.subr.bf16.mxu0 %v6876_v2  ;;  %2095 = vmatprep.subr.bf16.mxu1 %v6877_v42  ;;  %v6959_v2 = vld [vmem:[#allocation5_spill] sm:$0xff] }
 0x590   :  { %2055 = vmatpush1.bf16.msra.mxu0 %v6878_v32  ;;  %2096 = vmatpush1.bf16.msra.mxu1 %v6879_v19 }
 0x591   :  { %2056 = vmatprep.subr.bf16.mxu0 %v6880_v24  ;;  %2097 = vmatprep.subr.bf16.mxu1 %v6881_v29  ;;  %v6960_v29 = vld [vmem:[#allocation6_spill] sm:$0xff] }
 0x594   :  { %2057 = vmatpush2.bf16.msra.mxu0 %v6882_v30  ;;  %2098 = vmatpush2.bf16.msra.mxu1 %v6883_v36 }
 0x595   :  { %2058 = vmatprep.subr.bf16.mxu0 %v6884_v37  ;;  %2099 = vmatprep.subr.bf16.mxu1 %v6885_v39 }
 0x598   :  { %2059 = vmatpush2.bf16.msra.mxu0 %v6886_v40  ;;  %2100 = vmatpush2.bf16.msra.mxu1 %v6887_v41 }
 0x599   :  { %2060 = vmatprep.subr.bf16.mxu0 %v6888_v44  ;;  %2101 = vmatprep.subr.bf16.mxu1 %v6889_v47  ;;  %v6961_v44 = vld [vmem:[#allocation7_spill] sm:$0xff] }
 0x59c   :  { %2061 = vmatpush2.bf16.msra.mxu0 %v6890_v48  ;;  %2102 = vmatpush2.bf16.msra.mxu1 %v6891_v49  ;;  %v6962_v48 = vld [vmem:[#allocation8_spill] sm:$0xff] }
 0x59d   :  { %2062 = vmatprep.subr.bf16.mxu0 %v6937_v51  ;;  %2103 = vmatprep.subr.bf16.mxu1 %v6938_v52 }
 0x5a0   :  { %2063 = vmatpush2.bf16.msra.mxu0 %v6939_v54  ;;  %2104 = vmatpush2.bf16.msra.mxu1 %v6940_v56 }
 0x5a1   :  { %2064 = vmatprep.subr.bf16.mxu0 %v6941_v35  ;;  %2105 = vmatprep.subr.bf16.mxu1 %v6942_v57 }
 0x5a4   :  { %2065 = vmatpush2.bf16.msra.mxu0 %v6943_v4  ;;  %2106 = vmatpush2.bf16.msra.mxu1 %v6944_v13  ;;  %v6963_v13 = vld [vmem:[#allocation21_spill] sm:$0xff] }
 0x5a5   :  { %2066 = vmatprep.subr.bf16.mxu0 %v6945_v6  ;;  %2107 = vmatprep.subr.bf16.mxu1 %v6946_v63 }
 0x5a8   :  { %2067 = vmatpush2.bf16.msra.mxu0 %v6947_v8  ;;  %2108 = vmatpush2.bf16.msra.mxu1 %v6948_v11 }
 0x5a9   :  { %2068 = vmatprep.subr.bf16.mxu0 %v6949_v31  ;;  %2109 = vmatprep.subr.bf16.mxu1 %v6950_v21  ;;  %v6964_v21 = vld [vmem:[#allocation75_spill] sm:$0xff] }
 0x5ac   :  { %2069 = vmatpush2.bf16.msra.mxu0 %v6951_v9  ;;  %2110 = vmatpush2.bf16.msra.mxu1 %v6952_v0 }
 0x5ad   :  { %2070 = vmatprep.subr.bf16.mxu0 %v6953_v46  ;;  %2111 = vmatprep.subr.bf16.mxu1 %v6954_v5 }
 0x5b0   :  { %2071 = vmatpush2.bf16.msra.mxu0 %v6955_v1  ;;  %2112 = vmatpush2.bf16.msra.mxu1 %v6956_v43  ;;  %v6965_v43 = vld [vmem:[#allocation77_spill] sm:$0xff] }
 0x5b1   :  { %2145 = vmatprep.subr.bf16.mxu0 %v6957_v10  ;;  %2186 = vmatprep.subr.bf16.mxu1 %v6958_v12 }
 0x613   :  { %v1864_v7 = vpop.f32.mrf.mxu0  ;;  %v1905_v3 = vpop.f32.mrf.mxu1 }
 0x614   :  { %v1865_v42 = vadd.f32 %v1864_v7, %v6959_v2  ;;  %v1906_v47 = vadd.f32 %v1905_v3, %v6961_v44 }
 0x615   :  { %v1866_v32 = vpop.f32.mrf.mxu0  ;;  %v1907_v19 = vpop.f32.mrf.mxu1 }
 0x616   :  { %v1912_v24 = vmul.f32 0.5, %v1865_v42  ;;  %v1867_v30 = vadd.f32 %v1866_v32, %v6960_v29  ;;  %v1908_v49 = vadd.f32 %v1907_v19, %v6962_v48  ;;  %v6966_v19 = vld [vmem:[#allocation76_spill] sm:$0xff] }
 0x617   :  { %v1868_v36 = vpop.f32.mrf.mxu0  ;;  %v1909_v37 = vpop.f32.mrf.mxu1 }
 0x618   :  { %3235 = vtanh.f32 %v1912_v24  ;;  %v1916_v39 = vmul.f32 0.5, %v1867_v30  ;;  %v1921_v33 = vmul.f32 0.5, %v1908_v49 }
 0x619   :  { %v1869_v40 = vpop.f32.mrf.mxu0  ;;  %v1910_v41 = vpop.f32.mrf.mxu1 }
 0x61a   :  { %3237 = vtanh.f32 %v1916_v39 }
 0x61b   :  { %3239 = vtanh.f32 %v1906_v47  ;;  %v6967_v47 = vld [vmem:[#allocation78_spill] sm:$0xff] }
 0x61c   :  { %3241 = vtanh.f32 %v1921_v33 }
 0x625   :  { %v3236_v51 = vpop.eup %3235 }
 0x626   :  { %v1914_v52 = vmul.f32 0.5, %v3236_v51 }
 0x627   :  { %v3238_v54 = vpop.eup %3237 }
 0x628   :  { %v1915_v56 = vadd.f32 0.5, %v1914_v52  ;;  %v1918_v35 = vmul.f32 0.5, %v3238_v54  ;;  %v3240_v4 = vpop.eup %3239 }
 0x629   :  { %v3242_v0 = vpop.eup %3241 }
 0x62a   :  { %v1919_v57 = vadd.f32 0.5, %v1918_v35  ;;  %v1926_v63 = vmul.f32 %v3240_v4, %v1915_v56  ;;  %v1923_v32 = vmul.f32 0.5, %v3242_v0 }
 0x62c   :  { %v1925_v6 = vmul.f32 %v1919_v57, %v6963_v13  ;;  %v1924_v39 = vadd.f32 0.5, %v1923_v32  ;;  %v6974_v32 = vld [vmem:[#allocation24_spill] sm:$0xff] }
 0x62e   :  { %v5529_v8 = vadd.f32 %v1926_v63, %v1925_v6 }
 0x630   :  { %3243 = vtanh.f32 %v5529_v8 }
 0x633   :  { %v1969_v11 = vpop.f32.mrf.mxu0  ;;  %v2010_v31 = vpop.f32.mrf.mxu1 }
 0x634   :  { %v2017_v9 = vadd.f32 %v1969_v11, %v6964_v21  ;;  %v2019_v24 = vadd.f32 %v2010_v31, %v6966_v19  ;;  %v6975_v19 = vld [vmem:[#allocation25_spill] sm:$0xff] }
 0x635   :  { %v1971_v46 = vpop.f32.mrf.mxu0  ;;  %v2012_v5 = vpop.f32.mrf.mxu1 }
 0x636   :  { %v2021_v1 = vmul.f32 0.5, %v2017_v9  ;;  %v2018_v7 = vadd.f32 %v1971_v46, %v6965_v43  ;;  %v2020_v49 = vadd.f32 %v2012_v5, %v6967_v47  ;;  %v6970_v43 = vld [vmem:[#allocation69_spill] sm:$0xff] }
 0x637   :  { %v1973_v3 = vpop.f32.mrf.mxu0  ;;  %v2014_v42 = vpop.f32.mrf.mxu1  ;;  %v5591_v47 = vld [vmem:[%s6223_s3 + $0xc0] ss:$16 sps:$4 sm:$0xff]  }
 0x638   :  { %3245 = vtanh.f32 %v2021_v1  ;;  %v2025_v30 = vmul.f32 0.5, %v2018_v7  ;;  %v2030_v51 = vmul.f32 0.5, %v2020_v49  ;;  %v6969_v1 = vld [vmem:[#allocation67_spill] sm:$0xff]  ;;  %v6971_v7 = vld [vmem:[#allocation68_spill] sm:$0xff]  ;;  %v6972_v3 = vld [vmem:[#allocation70_spill] sm:$0xff] }
 0x639   :  { %v1974_v36 = vpop.f32.mrf.mxu0  ;;  %v2015_v37 = vpop.f32.mrf.mxu1  ;;  %v6973_v42 = vld [vmem:[#allocation23_spill] sm:$0xff]  ;;  %v5597_v49 = vld [vmem:[%s6223_s3 + $0xc8] ss:$16 sps:$4 sm:$0xff]  }
 0x63a   :  { %3247 = vtanh.f32 %v2025_v30  ;;  %v6977_v30 = vld [vmem:[#allocation27_spill] sm:$0xff]  ;;  %v6978_v36 = vld [vmem:[#allocation28_spill] sm:$0xff]  ;;  %v6979_v37 = vld [vmem:[#allocation29_spill] sm:$0xff] }
 0x63b   :  { %3249 = vtanh.f32 %v2019_v24  ;;  %v6976_v24 = vld [vmem:[#allocation26_spill] sm:$0xff] }
 0x63c   :  { %3251 = vtanh.f32 %v2030_v51  ;;  %v5609_v51 = vld [vmem:[%s6223_s3 + $0xac] ss:$16 sps:$4 sm:$0xff]  }
 0x63d   :  { %v3244_v40 = vpop.eup %3243 }
 0x63e   :  { %v1929_v41 = vmul.f32 %v3244_v40, %v1924_v39  ;;  %v6980_v39 = vld [vmem:[#allocation30_spill] sm:$0xff]  ;;  %v5579_v40 = vld [vmem:[%s6223_s3 + $0xc4] ss:$16 sps:$4 sm:$0xff]  }
 0x640   :  { %v1930_v33 = vpack.c.bf16 %v1929_v41, %v1929_v41  ;;  %v5585_v41 = vld [vmem:[%s6223_s3 + $0xcc] ss:$16 sps:$4 sm:$0xff]  }
 0x642   :  { %2072 = vmatprep.mubr.bf16.mxu0 %v1930_v33  ;;  %2113 = vmatprep.mubr.bf16.mxu1 %v1930_v33  ;;  %v5603_v33 = vld [vmem:[%s6223_s3 + $0xa4] ss:$16 sps:$4 sm:$0xff]  }
 0x645   :  { %v3246_v52 = vpop.eup %3245 }
 0x646   :  { %v2023_v54 = vmul.f32 0.5, %v3246_v52  ;;  %v5615_v52 = vld [vmem:[%s6223_s3 + $0xa0] ss:$16 sps:$4 sm:$0xff]  }
 0x647   :  { %v3248_v56 = vpop.eup %3247  ;;  %6981 = vst [vmem:[#allocation31_spill] sm:$0xff] %v5615_v52 }
 0x648   :  { %v2024_v35 = vadd.f32 0.5, %v2023_v54  ;;  %v2027_v57 = vmul.f32 0.5, %v3248_v56  ;;  %v3250_v4 = vpop.eup %3249  ;;  %v5621_v54 = vld [vmem:[%s6223_s3 + $0xa8] ss:$16 sps:$4 sm:$0xff]   ;;  %v5627_v56 = vld [vmem:[%s6223_s3 + $0x84] ss:$16 sps:$4 sm:$0xff]  }
 0x649   :  { %v3252_v31 = vpop.eup %3251  ;;  %6982 = vst [vmem:[#allocation32_spill] sm:$0xff] %v5621_v54  ;;  %6983 = vst [vmem:[#allocation33_spill] sm:$0xff] %v5627_v56 }
 0x64a   :  { %v2028_v13 = vadd.f32 0.5, %v2027_v57  ;;  %v2035_v6 = vmul.f32 %v3250_v4, %v2024_v35  ;;  %v2032_v21 = vmul.f32 0.5, %v3252_v31  ;;  %v5633_v35 = vld [vmem:[%s6223_s3 + $0x8c] ss:$16 sps:$4 sm:$0xff]   ;;  %v5639_v57 = vld [vmem:[%s6223_s3 + $0x80] ss:$16 sps:$4 sm:$0xff]  }
 0x64b   :  { %6984 = vst [vmem:[#allocation34_spill] sm:$0xff] %v5633_v35  ;;  %6985 = vst [vmem:[#allocation35_spill] sm:$0xff] %v5639_v57  ;;  %v5645_v4 = vld [vmem:[%s6223_s3 + $0x88] ss:$16 sps:$4 sm:$0xff]  }
 0x64c   :  { %v2034_v63 = vmul.f32 %v2028_v13, %v5247_v23  ;;  %v2033_v9 = vadd.f32 0.5, %v2032_v21  ;;  %v6968_v23 = vld [vmem:[#allocation22_spill] sm:$0xff]  ;;  %6986 = vst [vmem:[#allocation36_spill] sm:$0xff] %v5645_v4  ;;  %v5651_v13 = vld [vmem:[%s6223_s3 + $0x64] ss:$16 sps:$4 sm:$0xff]  }
 0x64d   :  { %6987 = vst [vmem:[#allocation57_spill] sm:$0xff] %v5651_v13  ;;  %v5669_v31 = vld [vmem:[%s6223_s3 + $0x68] ss:$16 sps:$4 sm:$0xff]   ;;  %v5675_v21 = vld [vmem:[%s6223_s3 + $0x44] ss:$16 sps:$4 sm:$0xff]  }
 0x64e   :  { %v5537_v11 = vadd.f32 %v2035_v6, %v2034_v63  ;;  %v5657_v6 = vld [vmem:[%s6223_s3 + $0x6c] ss:$16 sps:$4 sm:$0xff]   ;;  %v5663_v63 = vld [vmem:[%s6223_s3 + $0x60] ss:$16 sps:$4 sm:$0xff]   ;;  %6990 = vst [vmem:[#allocation60_spill] sm:$0xff] %v5669_v31  ;;  %6991 = vst [vmem:[#allocation62_spill] sm:$0xff] %v5675_v21 }
 0x64f   :  { %6988 = vst [vmem:[#allocation59_spill] sm:$0xff] %v5657_v6  ;;  %6989 = vst [vmem:[#allocation61_spill] sm:$0xff] %v5663_v63 }
 0x650   :  { %3253 = vtanh.f32 %v5537_v11 }
 0x65d   :  { %v3254_v0 = vpop.eup %3253 }
 0x65e   :  { %v2038_v46 = vmul.f32 %v3254_v0, %v2033_v9  ;;  %v5681_v9 = vld [vmem:[%s6223_s3 + $0x4c] ss:$16 sps:$4 sm:$0xff]   ;;  %v5687_v0 = vld [vmem:[%s6223_s3 + $0x40] ss:$16 sps:$4 sm:$0xff]  }
 0x65f   :  { %6992 = vst [vmem:[#allocation37_spill] sm:$0xff] %v5681_v9  ;;  %6993 = vst [vmem:[#allocation38_spill] sm:$0xff] %v5687_v0 }
 0x660   :  { %v2039_v5 = vpack.c.bf16 %v2038_v46, %v2038_v46  ;;  %v5693_v46 = vld [vmem:[%s6223_s3 + $0x48] ss:$16 sps:$4 sm:$0xff]  }
 0x661   :  { %6994 = vst [vmem:[#allocation39_spill] sm:$0xff] %v5693_v46 }
 0x662   :  { %2073 = vmatmul.mubr.bf16.vlgmr.msra.gmra.mxu0 %v2039_v5  ;;  %2114 = vmatmul.mubr.bf16.vlgmr.msra.gmra.mxu1 %v2039_v5 }
 0x663   :  { %2146 = vmatpush1.bf16.msra.mxu0 %v5257_v26  ;;  %2187 = vmatpush1.bf16.msra.mxu1 %v5263_v18 }
 0x664   :  { %2147 = vmatprep.subr.bf16.mxu0 %v5269_v38  ;;  %2188 = vmatprep.subr.bf16.mxu1 %v5275_v34 }
 0x665   :  { %2177 = vmatprep.mubr.bf16.mxu0 %v6671_v20  ;;  %2218 = vmatprep.mubr.bf16.mxu1 %v6671_v20 }
 0x667   :  { %2148 = vmatpush1.bf16.msra.mxu0 %v5283_v27  ;;  %2189 = vmatpush1.bf16.msra.mxu1 %v5289_v59 }
 0x668   :  { %2149 = vmatprep.subr.bf16.mxu0 %v5295_v45  ;;  %2190 = vmatprep.subr.bf16.mxu1 %v5301_v53 }
 0x66b   :  { %2150 = vmatpush1.bf16.msra.mxu0 %v5307_v61  ;;  %2191 = vmatpush1.bf16.msra.mxu1 %v5313_v60 }
 0x66c   :  { %2151 = vmatprep.subr.bf16.mxu0 %v5319_v22  ;;  %2192 = vmatprep.subr.bf16.mxu1 %v5325_v16 }
 0x66f   :  { %2152 = vmatpush1.bf16.msra.mxu0 %v5331_v25  ;;  %2193 = vmatpush1.bf16.msra.mxu1 %v5337_v55 }
 0x670   :  { %2153 = vmatprep.subr.bf16.mxu0 %v5343_v58  ;;  %2194 = vmatprep.subr.bf16.mxu1 %v5349_v17 }
 0x673   :  { %2154 = vmatpush1.bf16.msra.mxu0 %v5355_v28  ;;  %2195 = vmatpush1.bf16.msra.mxu1 %v6968_v23 }
 0x674   :  { %2155 = vmatprep.subr.bf16.mxu0 %v6969_v1  ;;  %2196 = vmatprep.subr.bf16.mxu1 %v6970_v43 }
 0x677   :  { %2156 = vmatpush1.bf16.msra.mxu0 %v6971_v7  ;;  %2197 = vmatpush1.bf16.msra.mxu1 %v6972_v3 }
 0x678   :  { %2157 = vmatprep.subr.bf16.mxu0 %v6973_v42  ;;  %2198 = vmatprep.subr.bf16.mxu1 %v6974_v32 }
 0x67b   :  { %2158 = vmatpush1.bf16.msra.mxu0 %v6975_v19  ;;  %2199 = vmatpush1.bf16.msra.mxu1 %v6976_v24 }
 0x67c   :  { %2159 = vmatprep.subr.bf16.mxu0 %v6977_v30  ;;  %2200 = vmatprep.subr.bf16.mxu1 %v6978_v36 }
 0x67f   :  { %2160 = vmatpush1.bf16.msra.mxu0 %v5427_v62  ;;  %2201 = vmatpush1.bf16.msra.mxu1 %v6979_v37 }
 0x680   :  { %2250 = vmatprep.subr.bf16.mxu0 %v6980_v39  ;;  %2291 = vmatprep.subr.bf16.mxu1 %v5445_v50 }
 0x682   :  { %2178 = vmatmul.mubr.bf16.vlgmr.msra.gmra.mxu0 %v2039_v5  ;;  %2219 = vmatmul.mubr.bf16.vlgmr.msra.gmra.mxu1 %v2039_v5  ;;  %v5699_v5 = vld [vmem:[%s6223_s3 + $0x24] ss:$16 sps:$4 sm:$0xff]  }
 0x683   :  { %2251 = vmatpush1.bf16.msra.mxu0 %v5453_v14  ;;  %2292 = vmatpush1.bf16.msra.mxu1 %v5459_v15  ;;  %6995 = vst [vmem:[#allocation40_spill] sm:$0xff] %v5699_v5 }
 0x684   :  { %2252 = vmatprep.subr.bf16.mxu0 %v5579_v40  ;;  %2293 = vmatprep.subr.bf16.mxu1 %v5585_v41 }
 0x687   :  { %2253 = vmatpush1.bf16.msra.mxu0 %v5591_v47  ;;  %2294 = vmatpush1.bf16.msra.mxu1 %v5597_v49 }
 0x688   :  { %2254 = vmatprep.subr.bf16.mxu0 %v5603_v33  ;;  %2295 = vmatprep.subr.bf16.mxu1 %v5609_v51 }
 0x68b   :  { %2255 = vmatpush1.bf16.msra.mxu0 %v5615_v52  ;;  %2296 = vmatpush1.bf16.msra.mxu1 %v5621_v54 }
 0x68c   :  { %2256 = vmatprep.subr.bf16.mxu0 %v5627_v56  ;;  %2297 = vmatprep.subr.bf16.mxu1 %v5633_v35 }
 0x68f   :  { %2257 = vmatpush1.bf16.msra.mxu0 %v5639_v57  ;;  %2298 = vmatpush1.bf16.msra.mxu1 %v5645_v4 }
 0x690   :  { %2258 = vmatprep.subr.bf16.mxu0 %v5651_v13  ;;  %2299 = vmatprep.subr.bf16.mxu1 %v5657_v6 }
 0x693   :  { %2259 = vmatpush1.bf16.msra.mxu0 %v5663_v63  ;;  %2300 = vmatpush1.bf16.msra.mxu1 %v5669_v31 }
 0x694   :  { %2260 = vmatprep.subr.bf16.mxu0 %v5675_v21  ;;  %2301 = vmatprep.subr.bf16.mxu1 %v5681_v9  ;;  %v5705_v9 = vld [vmem:[%s6223_s3 + $0x2c] ss:$16 sps:$4 sm:$0xff]  }
 0x695   :  { %6996 = vst [vmem:[#allocation41_spill] sm:$0xff] %v5705_v9 }
 0x697   :  { %2261 = vmatpush1.bf16.msra.mxu0 %v5687_v0  ;;  %2302 = vmatpush1.bf16.msra.mxu1 %v5693_v46  ;;  %v5711_v0 = vld [vmem:[%s6223_s3 + $0x20] ss:$16 sps:$4 sm:$0xff]   ;;  %v5717_v46 = vld [vmem:[%s6223_s3 + $0x28] ss:$16 sps:$4 sm:$0xff]  }
 0x698   :  { %2262 = vmatprep.subr.bf16.mxu0 %v5699_v5  ;;  %2303 = vmatprep.subr.bf16.mxu1 %v5705_v9  ;;  %6997 = vst [vmem:[#allocation42_spill] sm:$0xff] %v5711_v0  ;;  %6998 = vst [vmem:[#allocation43_spill] sm:$0xff] %v5717_v46  ;;  %v5723_v5 = vld [vmem:[%s6223_s3 + $0x4] ss:$16 sps:$4 sm:$0xff]   ;;  %v5729_v9 = vld [vmem:[%s6223_s3 + $0xc] ss:$16 sps:$4 sm:$0xff]  }
 0x699   :  { %6999 = vst [vmem:[#allocation44_spill] sm:$0xff] %v5723_v5  ;;  %7000 = vst [vmem:[#allocation45_spill] sm:$0xff] %v5729_v9 }
 0x69b   :  { %2263 = vmatpush1.bf16.msra.mxu0 %v5711_v0  ;;  %2304 = vmatpush1.bf16.msra.mxu1 %v5717_v46  ;;  %v5735_v0 = vld [vmem:[%s6223_s3] ss:$16 sps:$4 sm:$0xff]   ;;  %v5741_v46 = vld [vmem:[%s6223_s3 + $0x8] ss:$16 sps:$4 sm:$0xff]  }
 0x69c   :  { %2264 = vmatprep.subr.bf16.mxu0 %v5723_v5  ;;  %2305 = vmatprep.subr.bf16.mxu1 %v5729_v9  ;;  %7001 = vst [vmem:[#allocation46_spill] sm:$0xff] %v5735_v0  ;;  %7002 = vst [vmem:[#allocation47_spill] sm:$0xff] %v5741_v46  ;;  %v5747_v5 = vld [vmem:[%s6223_s3 + $0x1e4] ss:$16 sps:$4 sm:$0xff]   ;;  %v5753_v9 = vld [vmem:[%s6223_s3 + $0x1ec] ss:$16 sps:$4 sm:$0xff]  }
 0x69d   :  { %7003 = vst [vmem:[#allocation48_spill] sm:$0xff] %v5747_v5  ;;  %7004 = vst [vmem:[#allocation49_spill] sm:$0xff] %v5753_v9 }
 0x69f   :  { %2265 = vmatpush1.bf16.msra.mxu0 %v5735_v0  ;;  %2306 = vmatpush1.bf16.msra.mxu1 %v5741_v46  ;;  %v5759_v0 = vld [vmem:[%s6223_s3 + $0x1e0] ss:$16 sps:$4 sm:$0xff]   ;;  %v5765_v46 = vld [vmem:[%s6223_s3 + $0x1e8] ss:$16 sps:$4 sm:$0xff]  }
 0x6a0   :  { %2266 = vmatprep.subr.bf16.mxu0 %v5747_v5  ;;  %2307 = vmatprep.subr.bf16.mxu1 %v5753_v9  ;;  %7005 = vst [vmem:[#allocation50_spill] sm:$0xff] %v5759_v0  ;;  %7006 = vst [vmem:[#allocation51_spill] sm:$0xff] %v5765_v46  ;;  %v5771_v5 = vld [vmem:[%s6223_s3 + $0x1c4] ss:$16 sps:$4 sm:$0xff]   ;;  %v5777_v9 = vld [vmem:[%s6223_s3 + $0x1cc] ss:$16 sps:$4 sm:$0xff]  }
 0x6a1   :  { %7007 = vst [vmem:[#allocation18_spill] sm:$0xff] %v5771_v5  ;;  %7008 = vst [vmem:[#allocation71_spill] sm:$0xff] %v5777_v9 }
 0x6a3   :  { %2267 = vmatpush2.bf16.msra.mxu0 %v5759_v0  ;;  %2308 = vmatpush2.bf16.msra.mxu1 %v5765_v46  ;;  %v5783_v0 = vld [vmem:[%s6223_s3 + $0x1c0] ss:$16 sps:$4 sm:$0xff]   ;;  %v5789_v46 = vld [vmem:[%s6223_s3 + $0x1c8] ss:$16 sps:$4 sm:$0xff]  }
 0x6a4   :  { %2268 = vmatprep.subr.bf16.mxu0 %v5771_v5  ;;  %2309 = vmatprep.subr.bf16.mxu1 %v5777_v9  ;;  %7009 = vst [vmem:[#allocation73_spill] sm:$0xff] %v5783_v0  ;;  %7010 = vst [vmem:[#allocation72_spill] sm:$0xff] %v5789_v46  ;;  %v5795_v5 = vld [vmem:[%s6223_s3 + $0x1a4] ss:$16 sps:$4 sm:$0xff]   ;;  %v5801_v9 = vld [vmem:[%s6223_s3 + $0x1ac] ss:$16 sps:$4 sm:$0xff]  }
 0x6a5   :  { %7011 = vst [vmem:[#allocation74_spill] sm:$0xff] %v5795_v5  ;;  %7012 = vst [vmem:[#allocation52_spill] sm:$0xff] %v5801_v9 }
 0x6a7   :  { %2269 = vmatpush2.bf16.msra.mxu0 %v5783_v0  ;;  %2310 = vmatpush2.bf16.msra.mxu1 %v5789_v46  ;;  %v5807_v0 = vld [vmem:[%s6223_s3 + $0x1a0] ss:$16 sps:$4 sm:$0xff]   ;;  %v5813_v46 = vld [vmem:[%s6223_s3 + $0x1a8] ss:$16 sps:$4 sm:$0xff]  }
 0x6a8   :  { %2270 = vmatprep.subr.bf16.mxu0 %v5795_v5  ;;  %2311 = vmatprep.subr.bf16.mxu1 %v5801_v9  ;;  %7013 = vst [vmem:[#allocation53_spill] sm:$0xff] %v5807_v0  ;;  %7014 = vst [vmem:[#allocation54_spill] sm:$0xff] %v5813_v46  ;;  %v5819_v5 = vld [vmem:[%s6223_s3 + $0x184] ss:$16 sps:$4 sm:$0xff]   ;;  %v5825_v9 = vld [vmem:[%s6223_s3 + $0x18c] ss:$16 sps:$4 sm:$0xff]  }
 0x6a9   :  { %7015 = vst [vmem:[#allocation55_spill] sm:$0xff] %v5819_v5  ;;  %7016 = vst [vmem:[#allocation56_spill] sm:$0xff] %v5825_v9 }
 0x6ab   :  { %2271 = vmatpush2.bf16.msra.mxu0 %v5807_v0  ;;  %2312 = vmatpush2.bf16.msra.mxu1 %v5813_v46  ;;  %v5831_v0 = vld [vmem:[%s6223_s3 + $0x180] ss:$16 sps:$4 sm:$0xff]   ;;  %v5837_v46 = vld [vmem:[%s6223_s3 + $0x188] ss:$16 sps:$4 sm:$0xff]  }
 0x6ac   :  { %2272 = vmatprep.subr.bf16.mxu0 %v5819_v5  ;;  %2313 = vmatprep.subr.bf16.mxu1 %v5825_v9  ;;  %7017 = vst [vmem:[#allocation3_spill] sm:$0xff] %v5831_v0  ;;  %7018 = vst [vmem:[#allocation4_spill] sm:$0xff] %v5837_v46  ;;  %v5843_v5 = vld [vmem:[%s6223_s3 + $0x164] ss:$16 sps:$4 sm:$0xff]   ;;  %v5849_v9 = vld [vmem:[%s6223_s3 + $0x16c] ss:$16 sps:$4 sm:$0xff]  }
 0x6ad   :  { %7019 = vst [vmem:[#allocation9_spill] sm:$0xff] %v5843_v5  ;;  %7020 = vst [vmem:[#allocation63_spill] sm:$0xff] %v5849_v9 }
 0x6af   :  { %2273 = vmatpush2.bf16.msra.mxu0 %v5831_v0  ;;  %2314 = vmatpush2.bf16.msra.mxu1 %v5837_v46  ;;  %v5855_v0 = vld [vmem:[%s6223_s3 + $0x160] ss:$16 sps:$4 sm:$0xff]   ;;  %v5861_v46 = vld [vmem:[%s6223_s3 + $0x168] ss:$16 sps:$4 sm:$0xff]  }
 0x6b0   :  { %2274 = vmatprep.subr.bf16.mxu0 %v5843_v5  ;;  %2315 = vmatprep.subr.bf16.mxu1 %v5849_v9  ;;  %7021 = vst [vmem:[#allocation65_spill] sm:$0xff] %v5855_v0  ;;  %7022 = vst [vmem:[#allocation64_spill] sm:$0xff] %v5861_v46  ;;  %v5867_v5 = vld [vmem:[%s6223_s3 + $0x144] ss:$16 sps:$4 sm:$0xff]   ;;  %v5873_v9 = vld [vmem:[%s6223_s3 + $0x14c] ss:$16 sps:$4 sm:$0xff]  }
 0x6b1   :  { %7023 = vst [vmem:[#allocation66_spill] sm:$0xff] %v5867_v5  ;;  %7024 = vst [vmem:[#allocation10_spill] sm:$0xff] %v5873_v9 }
 0x6b3   :  { %2275 = vmatpush2.bf16.msra.mxu0 %v5855_v0  ;;  %2316 = vmatpush2.bf16.msra.mxu1 %v5861_v46  ;;  %v5879_v0 = vld [vmem:[%s6223_s3 + $0x140] ss:$16 sps:$4 sm:$0xff]   ;;  %v5885_v46 = vld [vmem:[%s6223_s3 + $0x148] ss:$16 sps:$4 sm:$0xff]  }
 0x6b4   :  { %2276 = vmatprep.subr.bf16.mxu0 %v5867_v5  ;;  %2317 = vmatprep.subr.bf16.mxu1 %v5873_v9  ;;  %7025 = vst [vmem:[#allocation11_spill] sm:$0xff] %v5879_v0  ;;  %7026 = vst [vmem:[#allocation12_spill] sm:$0xff] %v5885_v46  ;;  %v5891_v5 = vld [vmem:[%s6223_s3 + $0x124] ss:$16 sps:$4 sm:$0xff]   ;;  %v5897_v9 = vld [vmem:[%s6223_s3 + $0x12c] ss:$16 sps:$4 sm:$0xff]  }
 0x6b5   :  { %7027 = vst [vmem:[#allocation13_spill] sm:$0xff] %v5891_v5  ;;  %7028 = vst [vmem:[#allocation14_spill] sm:$0xff] %v5897_v9 }
 0x6b7   :  { %2277 = vmatpush2.bf16.msra.mxu0 %v5879_v0  ;;  %2318 = vmatpush2.bf16.msra.mxu1 %v5885_v46  ;;  %v5903_v0 = vld [vmem:[%s6223_s3 + $0x120] ss:$16 sps:$4 sm:$0xff]   ;;  %v5909_v46 = vld [vmem:[%s6223_s3 + $0x128] ss:$16 sps:$4 sm:$0xff]  }
 0x6b8   :  { %2278 = vmatprep.subr.bf16.mxu0 %v5891_v5  ;;  %2319 = vmatprep.subr.bf16.mxu1 %v5897_v9  ;;  %7029 = vst [vmem:[#allocation15_spill] sm:$0xff] %v5903_v0  ;;  %7030 = vst [vmem:[#allocation16_spill] sm:$0xff] %v5909_v46  ;;  %v5915_v5 = vld [vmem:[%s6223_s3 + $0x104] ss:$16 sps:$4 sm:$0xff]   ;;  %v5921_v9 = vld [vmem:[%s6223_s3 + $0x10c] ss:$16 sps:$4 sm:$0xff]  }
 0x6b9   :  { %7031 = vst [vmem:[#allocation17_spill] sm:$0xff] %v5915_v5  ;;  %7032 = vst [vmem:[#allocation19_spill] sm:$0xff] %v5921_v9 }
 0x6bb   :  { %2279 = vmatpush2.bf16.msra.mxu0 %v5903_v0  ;;  %2320 = vmatpush2.bf16.msra.mxu1 %v5909_v46  ;;  %v5927_v0 = vld [vmem:[%s6223_s3 + $0x100] ss:$16 sps:$4 sm:$0xff]   ;;  %v5933_v46 = vld [vmem:[%s6223_s3 + $0x108] ss:$16 sps:$4 sm:$0xff]  }
 0x6bc   :  { %2280 = vmatprep.subr.bf16.mxu0 %v5915_v5  ;;  %2321 = vmatprep.subr.bf16.mxu1 %v5921_v9  ;;  %7033 = vst [vmem:[#allocation20_spill] sm:$0xff] %v5927_v0  ;;  %7034 = vst [vmem:[#allocation21_spill] sm:$0xff] %v5933_v46 }
 0x6bf   :  { %2281 = vmatpush2.bf16.msra.mxu0 %v5927_v0  ;;  %2322 = vmatpush2.bf16.msra.mxu1 %v5933_v46 }
 0x6c0   :  { %2355 = vmatprep.subr.bf16.mxu0 %v6957_v10  ;;  %2396 = vmatprep.subr.bf16.mxu1 %v6958_v12 }
 0x722   :  { %v2074_v5 = vpop.f32.mrf.mxu0  ;;  %v2115_v9 = vpop.f32.mrf.mxu1 }
 0x723   :  { %v2075_v21 = vadd.f32 %v2074_v5, %v6959_v2  ;;  %v2116_v46 = vadd.f32 %v2115_v9, %v6961_v44  ;;  %v7036_v9 = vld [vmem:[#allocation79_spill] sm:$0xff] }
 0x724   :  { %v2076_v31 = vpop.f32.mrf.mxu0  ;;  %v2117_v63 = vpop.f32.mrf.mxu1 }
 0x725   :  { %v2122_v6 = vmul.f32 0.5, %v2075_v21  ;;  %v2077_v0 = vadd.f32 %v2076_v31, %v6960_v29  ;;  %v2118_v10 = vadd.f32 %v2117_v63, %v6962_v48 }
 0x726   :  { %v2078_v13 = vpop.f32.mrf.mxu0  ;;  %v2119_v4 = vpop.f32.mrf.mxu1 }
 0x727   :  { %3255 = vtanh.f32 %v2122_v6  ;;  %v2126_v57 = vmul.f32 0.5, %v2077_v0  ;;  %v2131_v12 = vmul.f32 0.5, %v2118_v10 }
 0x728   :  { %v2079_v35 = vpop.f32.mrf.mxu0  ;;  %v2120_v56 = vpop.f32.mrf.mxu1 }
 0x729   :  { %3257 = vtanh.f32 %v2126_v57 }
 0x72a   :  { %3259 = vtanh.f32 %v2116_v46 }
 0x72b   :  { %3261 = vtanh.f32 %v2131_v12 }
 0x734   :  { %v3256_v54 = vpop.eup %3255 }
 0x735   :  { %v2124_v5 = vmul.f32 0.5, %v3256_v54 }
 0x736   :  { %v3258_v2 = vpop.eup %3257 }
 0x737   :  { %v2125_v52 = vadd.f32 0.5, %v2124_v5  ;;  %v2128_v21 = vmul.f32 0.5, %v3258_v2  ;;  %v3260_v13 = vpop.eup %3259  ;;  %v7037_v5 = vld [vmem:[#allocation81_spill] sm:$0xff] }
 0x738   :  { %v3262_v0 = vpop.eup %3261 }
 0x739   :  { %v2129_v31 = vadd.f32 0.5, %v2128_v21  ;;  %v2136_v6 = vmul.f32 %v3260_v13, %v2125_v52  ;;  %v2133_v48 = vmul.f32 0.5, %v3262_v0 }
 0x73b   :  { %v2135_v4 = vmul.f32 %v2129_v31, %v5529_v8  ;;  %v7038_v8 = vld [vmem:[#allocation80_spill] sm:$0xff] }
 0x73d   :  { %v5943_v35 = vadd.f32 %v2136_v6, %v2135_v4  ;;  %v2134_v6 = vadd.f32 0.5, %v2133_v48 }
 0x73f   :  { %7035 = vst [vmem:[#allocation75_spill] sm:$0xff] %v5943_v35  ;;  %3263 = vtanh.f32 %v5943_v35 }
 0x742   :  { %v2179_v56 = vpop.f32.mrf.mxu0  ;;  %v2220_v57 = vpop.f32.mrf.mxu1 }
 0x743   :  { %v2227_v63 = vadd.f32 %v2179_v56, %v7036_v9  ;;  %v2229_v52 = vadd.f32 %v2220_v57, %v7038_v8  ;;  %v7039_v9 = vld [vmem:[#allocation82_spill] sm:$0xff] }
 0x744   :  { %v2181_v46 = vpop.f32.mrf.mxu0  ;;  %v2222_v54 = vpop.f32.mrf.mxu1 }
 0x745   :  { %v2231_v10 = vmul.f32 0.5, %v2227_v63  ;;  %v2228_v2 = vadd.f32 %v2181_v46, %v7037_v5  ;;  %v2230_v44 = vadd.f32 %v2222_v54, %v7039_v9  ;;  %v7086_v9 = vld [vmem:[#allocation13_spill] sm:$0xff] }
 0x746   :  { %v2183_v12 = vpop.f32.mrf.mxu0  ;;  %v2224_v21 = vpop.f32.mrf.mxu1 }
 0x747   :  { %3265 = vtanh.f32 %v2231_v10  ;;  %v2235_v31 = vmul.f32 0.5, %v2228_v2  ;;  %v2240_v63 = vmul.f32 0.5, %v2230_v44 }
 0x748   :  { %v2184_v13 = vpop.f32.mrf.mxu0  ;;  %v2225_v4 = vpop.f32.mrf.mxu1 }
 0x749   :  { %3267 = vtanh.f32 %v2235_v31  ;;  %v7082_v13 = vld [vmem:[#allocation66_spill] sm:$0xff] }
 0x74a   :  { %3269 = vtanh.f32 %v2229_v52  ;;  %v7083_v4 = vld [vmem:[#allocation10_spill] sm:$0xff] }
 0x74b   :  { %3271 = vtanh.f32 %v2240_v63  ;;  %v7087_v63 = vld [vmem:[#allocation14_spill] sm:$0xff] }
 0x74c   :  { %v3264_v35 = vpop.eup %3263 }
 0x74d   :  { %v2139_v56 = vmul.f32 %v3264_v35, %v2134_v6  ;;  %v7084_v6 = vld [vmem:[#allocation11_spill] sm:$0xff] }
 0x74f   :  { %v2140_v29 = vpack.c.bf16 %v2139_v56, %v2139_v56  ;;  %v7085_v56 = vld [vmem:[#allocation12_spill] sm:$0xff] }
 0x751   :  { %2282 = vmatprep.mubr.bf16.mxu0 %v2140_v29  ;;  %2323 = vmatprep.mubr.bf16.mxu1 %v2140_v29 }
 0x754   :  { %v3266_v46 = vpop.eup %3265 }
 0x755   :  { %v2233_v5 = vmul.f32 0.5, %v3266_v46  ;;  %v7088_v46 = vld [vmem:[#allocation15_spill] sm:$0xff] }
 0x756   :  { %v3268_v0 = vpop.eup %3267 }
 0x757   :  { %v2234_v10 = vadd.f32 0.5, %v2233_v5  ;;  %v2237_v12 = vmul.f32 0.5, %v3268_v0  ;;  %v3270_v57 = vpop.eup %3269  ;;  %v7089_v5 = vld [vmem:[#allocation16_spill] sm:$0xff]  ;;  %v7090_v0 = vld [vmem:[#allocation17_spill] sm:$0xff] }
 0x758   :  { %v3272_v35 = vpop.eup %3271 }
 0x759   :  { %v2238_v2 = vadd.f32 0.5, %v2237_v12  ;;  %v2245_v21 = vmul.f32 %v3270_v57, %v2234_v10  ;;  %v2242_v54 = vmul.f32 0.5, %v3272_v35  ;;  %v7091_v10 = vld [vmem:[#allocation19_spill] sm:$0xff]  ;;  %v7092_v12 = vld [vmem:[#allocation20_spill] sm:$0xff]  ;;  %v7093_v57 = vld [vmem:[#allocation21_spill] sm:$0xff] }
 0x75b   :  { %v2244_v48 = vmul.f32 %v2238_v2, %v5537_v11  ;;  %v2243_v52 = vadd.f32 0.5, %v2242_v54  ;;  %v7062_v11 = vld [vmem:[#allocation48_spill] sm:$0xff] }
 0x75d   :  { %v5951_v8 = vadd.f32 %v2245_v21, %v2244_v48  ;;  %v7094_v48 = vld [vmem:[#allocation5_spill] sm:$0xff] }
 0x75f   :  { %3273 = vtanh.f32 %v5951_v8 }
 0x76c   :  { %v3274_v29 = vpop.eup %3273 }
 0x76d   :  { %v2248_v44 = vmul.f32 %v3274_v29, %v2243_v52 }
 0x76f   :  { %v2249_v31 = vpack.c.bf16 %v2248_v44, %v2248_v44  ;;  %v7095_v44 = vld [vmem:[#allocation6_spill] sm:$0xff] }
 0x771   :  { %2283 = vmatmul.mubr.bf16.vlgmr.msra.gmra.mxu0 %v2249_v31  ;;  %2324 = vmatmul.mubr.bf16.vlgmr.msra.gmra.mxu1 %v2249_v31 }
 0x772   :  { %2356 = vmatpush1.bf16.msra.mxu0 %v5257_v26  ;;  %2397 = vmatpush1.bf16.msra.mxu1 %v5263_v18  ;;  %v7041_v26 = vld [vmem:[#allocation32_spill] sm:$0xff]  ;;  %v7042_v18 = vld [vmem:[#allocation33_spill] sm:$0xff] }
 0x773   :  { %2357 = vmatprep.subr.bf16.mxu0 %v5269_v38  ;;  %2398 = vmatprep.subr.bf16.mxu1 %v5275_v34  ;;  %v7043_v38 = vld [vmem:[#allocation34_spill] sm:$0xff]  ;;  %v7044_v34 = vld [vmem:[#allocation35_spill] sm:$0xff] }
 0x774   :  { %2387 = vmatprep.mubr.bf16.mxu0 %v6671_v20  ;;  %2428 = vmatprep.mubr.bf16.mxu1 %v6671_v20  ;;  %v7040_v20 = vld [vmem:[#allocation31_spill] sm:$0xff] }
 0x776   :  { %2358 = vmatpush1.bf16.msra.mxu0 %v5283_v27  ;;  %2399 = vmatpush1.bf16.msra.mxu1 %v5289_v59  ;;  %v7045_v27 = vld [vmem:[#allocation36_spill] sm:$0xff]  ;;  %v7046_v59 = vld [vmem:[#allocation57_spill] sm:$0xff] }
 0x777   :  { %2359 = vmatprep.subr.bf16.mxu0 %v5295_v45  ;;  %2400 = vmatprep.subr.bf16.mxu1 %v5301_v53  ;;  %v7047_v45 = vld [vmem:[#allocation59_spill] sm:$0xff]  ;;  %v7048_v53 = vld [vmem:[#allocation61_spill] sm:$0xff] }
 0x77a   :  { %2360 = vmatpush1.bf16.msra.mxu0 %v5307_v61  ;;  %2401 = vmatpush1.bf16.msra.mxu1 %v5313_v60  ;;  %v7049_v61 = vld [vmem:[#allocation60_spill] sm:$0xff]  ;;  %v7050_v60 = vld [vmem:[#allocation62_spill] sm:$0xff] }
 0x77b   :  { %2361 = vmatprep.subr.bf16.mxu0 %v5319_v22  ;;  %2402 = vmatprep.subr.bf16.mxu1 %v5325_v16  ;;  %v7051_v22 = vld [vmem:[#allocation37_spill] sm:$0xff]  ;;  %v7052_v16 = vld [vmem:[#allocation38_spill] sm:$0xff] }
 0x77e   :  { %2362 = vmatpush1.bf16.msra.mxu0 %v5331_v25  ;;  %2403 = vmatpush1.bf16.msra.mxu1 %v5337_v55  ;;  %v7053_v25 = vld [vmem:[#allocation39_spill] sm:$0xff]  ;;  %v7054_v55 = vld [vmem:[#allocation40_spill] sm:$0xff] }
 0x77f   :  { %2363 = vmatprep.subr.bf16.mxu0 %v5343_v58  ;;  %2404 = vmatprep.subr.bf16.mxu1 %v5349_v17  ;;  %v7055_v58 = vld [vmem:[#allocation41_spill] sm:$0xff]  ;;  %v7056_v17 = vld [vmem:[#allocation42_spill] sm:$0xff] }
 0x782   :  { %2364 = vmatpush1.bf16.msra.mxu0 %v5355_v28  ;;  %2405 = vmatpush1.bf16.msra.mxu1 %v6968_v23  ;;  %v7057_v28 = vld [vmem:[#allocation43_spill] sm:$0xff]  ;;  %v7063_v23 = vld [vmem:[#allocation49_spill] sm:$0xff] }
 0x783   :  { %2365 = vmatprep.subr.bf16.mxu0 %v6969_v1  ;;  %2406 = vmatprep.subr.bf16.mxu1 %v6970_v43  ;;  %v7064_v1 = vld [vmem:[#allocation50_spill] sm:$0xff]  ;;  %v7065_v43 = vld [vmem:[#allocation51_spill] sm:$0xff] }
 0x786   :  { %2366 = vmatpush1.bf16.msra.mxu0 %v6971_v7  ;;  %2407 = vmatpush1.bf16.msra.mxu1 %v6972_v3  ;;  %v7066_v7 = vld [vmem:[#allocation18_spill] sm:$0xff]  ;;  %v7067_v3 = vld [vmem:[#allocation71_spill] sm:$0xff] }
 0x787   :  { %2367 = vmatprep.subr.bf16.mxu0 %v6973_v42  ;;  %2408 = vmatprep.subr.bf16.mxu1 %v6974_v32  ;;  %v7068_v42 = vld [vmem:[#allocation73_spill] sm:$0xff]  ;;  %v7069_v32 = vld [vmem:[#allocation72_spill] sm:$0xff] }
 0x78a   :  { %2368 = vmatpush1.bf16.msra.mxu0 %v6975_v19  ;;  %2409 = vmatpush1.bf16.msra.mxu1 %v6976_v24  ;;  %v7070_v19 = vld [vmem:[#allocation74_spill] sm:$0xff]  ;;  %v7071_v24 = vld [vmem:[#allocation52_spill] sm:$0xff] }
 0x78b   :  { %2369 = vmatprep.subr.bf16.mxu0 %v6977_v30  ;;  %2410 = vmatprep.subr.bf16.mxu1 %v6978_v36  ;;  %v7072_v30 = vld [vmem:[#allocation53_spill] sm:$0xff]  ;;  %v7073_v36 = vld [vmem:[#allocation54_spill] sm:$0xff] }
 0x78e   :  { %2370 = vmatpush1.bf16.msra.mxu0 %v5427_v62  ;;  %2411 = vmatpush1.bf16.msra.mxu1 %v6979_v37  ;;  %v7061_v62 = vld [vmem:[#allocation47_spill] sm:$0xff] }
 0x78f   :  { %2460 = vmatprep.subr.bf16.mxu0 %v6980_v39  ;;  %2501 = vmatprep.subr.bf16.mxu1 %v5445_v50  ;;  %v7060_v50 = vld [vmem:[#allocation46_spill] sm:$0xff]  ;;  %v7074_v37 = vld [vmem:[#allocation55_spill] sm:$0xff]  ;;  %v7075_v39 = vld [vmem:[#allocation56_spill] sm:$0xff] }
 0x791   :  { %2388 = vmatmul.mubr.bf16.vlgmr.msra.gmra.mxu0 %v2249_v31  ;;  %2429 = vmatmul.mubr.bf16.vlgmr.msra.gmra.mxu1 %v2249_v31 }
 0x792   :  { %2461 = vmatpush1.bf16.msra.mxu0 %v5453_v14  ;;  %2502 = vmatpush1.bf16.msra.mxu1 %v5459_v15  ;;  %v7058_v14 = vld [vmem:[#allocation44_spill] sm:$0xff]  ;;  %v7059_v15 = vld [vmem:[#allocation45_spill] sm:$0xff] }
 0x793   :  { %2462 = vmatprep.subr.bf16.mxu0 %v5579_v40  ;;  %2503 = vmatprep.subr.bf16.mxu1 %v5585_v41  ;;  %v7076_v40 = vld [vmem:[#allocation3_spill] sm:$0xff]  ;;  %v7077_v41 = vld [vmem:[#allocation4_spill] sm:$0xff] }
 0x796   :  { %2463 = vmatpush1.bf16.msra.mxu0 %v5591_v47  ;;  %2504 = vmatpush1.bf16.msra.mxu1 %v5597_v49  ;;  %v7078_v47 = vld [vmem:[#allocation9_spill] sm:$0xff]  ;;  %v7079_v49 = vld [vmem:[#allocation63_spill] sm:$0xff] }
 0x797   :  { %2464 = vmatprep.subr.bf16.mxu0 %v5603_v33  ;;  %2505 = vmatprep.subr.bf16.mxu1 %v5609_v51  ;;  %v7080_v33 = vld [vmem:[#allocation65_spill] sm:$0xff]  ;;  %v7081_v51 = vld [vmem:[#allocation64_spill] sm:$0xff] }
 0x79a   :  { %2465 = vmatpush1.bf16.msra.mxu0 %v7040_v20  ;;  %2506 = vmatpush1.bf16.msra.mxu1 %v7041_v26 }
 0x79b   :  { %2466 = vmatprep.subr.bf16.mxu0 %v7042_v18  ;;  %2507 = vmatprep.subr.bf16.mxu1 %v7043_v38 }
 0x79e   :  { %2467 = vmatpush1.bf16.msra.mxu0 %v7044_v34  ;;  %2508 = vmatpush1.bf16.msra.mxu1 %v7045_v27  ;;  %v7096_v27 = vld [vmem:[#allocation7_spill] sm:$0xff] }
 0x79f   :  { %2468 = vmatprep.subr.bf16.mxu0 %v7046_v59  ;;  %2509 = vmatprep.subr.bf16.mxu1 %v7047_v45  ;;  %v7097_v45 = vld [vmem:[#allocation8_spill] sm:$0xff] }
 0x7a2   :  { %2469 = vmatpush1.bf16.msra.mxu0 %v7048_v53  ;;  %2510 = vmatpush1.bf16.msra.mxu1 %v7049_v61 }
 0x7a3   :  { %2470 = vmatprep.subr.bf16.mxu0 %v7050_v60  ;;  %2511 = vmatprep.subr.bf16.mxu1 %v7051_v22 }
 0x7a6   :  { %2471 = vmatpush1.bf16.msra.mxu0 %v7052_v16  ;;  %2512 = vmatpush1.bf16.msra.mxu1 %v7053_v25 }
 0x7a7   :  { %2472 = vmatprep.subr.bf16.mxu0 %v7054_v55  ;;  %2513 = vmatprep.subr.bf16.mxu1 %v7055_v58 }
 0x7aa   :  { %2473 = vmatpush1.bf16.msra.mxu0 %v7056_v17  ;;  %2514 = vmatpush1.bf16.msra.mxu1 %v7057_v28  ;;  %v7098_v28 = vld [vmem:[#allocation75_spill] sm:$0xff] }
 0x7ab   :  { %2474 = vmatprep.subr.bf16.mxu0 %v7058_v14  ;;  %2515 = vmatprep.subr.bf16.mxu1 %v7059_v15 }
 0x7ae   :  { %2475 = vmatpush1.bf16.msra.mxu0 %v7060_v50  ;;  %2516 = vmatpush1.bf16.msra.mxu1 %v7061_v62 }
 0x7af   :  { %2476 = vmatprep.subr.bf16.mxu0 %v7062_v11  ;;  %2517 = vmatprep.subr.bf16.mxu1 %v7063_v23  ;;  %v7099_v23 = vld [vmem:[#allocation83_spill] sm:$0xff] }
 0x7b2   :  { %2477 = vmatpush2.bf16.msra.mxu0 %v7064_v1  ;;  %2518 = vmatpush2.bf16.msra.mxu1 %v7065_v43 }
 0x7b3   :  { %2478 = vmatprep.subr.bf16.mxu0 %v7066_v7  ;;  %2519 = vmatprep.subr.bf16.mxu1 %v7067_v3 }
 0x7b6   :  { %2479 = vmatpush2.bf16.msra.mxu0 %v7068_v42  ;;  %2520 = vmatpush2.bf16.msra.mxu1 %v7069_v32  ;;  %v7100_v32 = vld [vmem:[#allocation85_spill] sm:$0xff] }
 0x7b7   :  { %2480 = vmatprep.subr.bf16.mxu0 %v7070_v19  ;;  %2521 = vmatprep.subr.bf16.mxu1 %v7071_v24 }
 0x7ba   :  { %2481 = vmatpush2.bf16.msra.mxu0 %v7072_v30  ;;  %2522 = vmatpush2.bf16.msra.mxu1 %v7073_v36 }
 0x7bb   :  { %2482 = vmatprep.subr.bf16.mxu0 %v7074_v37  ;;  %2523 = vmatprep.subr.bf16.mxu1 %v7075_v39  ;;  %v7101_v37 = vld [vmem:[#allocation84_spill] sm:$0xff] }
 0x7be   :  { %2483 = vmatpush2.bf16.msra.mxu0 %v7076_v40  ;;  %2524 = vmatpush2.bf16.msra.mxu1 %v7077_v41 }
 0x7bf   :  { %2484 = vmatprep.subr.bf16.mxu0 %v7078_v47  ;;  %2525 = vmatprep.subr.bf16.mxu1 %v7079_v49 }
 0x7c2   :  { %2485 = vmatpush2.bf16.msra.mxu0 %v7080_v33  ;;  %2526 = vmatpush2.bf16.msra.mxu1 %v7081_v51 }
 0x7c3   :  { %2486 = vmatprep.subr.bf16.mxu0 %v7082_v13  ;;  %2527 = vmatprep.subr.bf16.mxu1 %v7083_v4  ;;  %v7102_v13 = vld [vmem:[#allocation86_spill] sm:$0xff] }
 0x7c6   :  { %2487 = vmatpush2.bf16.msra.mxu0 %v7084_v6  ;;  %2528 = vmatpush2.bf16.msra.mxu1 %v7085_v56 }
 0x7c7   :  { %2488 = vmatprep.subr.bf16.mxu0 %v7086_v9  ;;  %2529 = vmatprep.subr.bf16.mxu1 %v7087_v63 }
 0x7ca   :  { %2489 = vmatpush2.bf16.msra.mxu0 %v7088_v46  ;;  %2530 = vmatpush2.bf16.msra.mxu1 %v7089_v5 }
 0x7cb   :  { %2490 = vmatprep.subr.bf16.mxu0 %v7090_v0  ;;  %2531 = vmatprep.subr.bf16.mxu1 %v7091_v10 }
 0x7ce   :  { %2491 = vmatpush2.bf16.msra.mxu0 %v7092_v12  ;;  %2532 = vmatpush2.bf16.msra.mxu1 %v7093_v57 }
 0x831   :  { %v2284_v2 = vpop.f32.mrf.mxu0  ;;  %v2325_v21 = vpop.f32.mrf.mxu1 }
 0x832   :  { %v2285_v35 = vadd.f32 %v2284_v2, %v7094_v48  ;;  %v2326_v59 = vadd.f32 %v2325_v21, %v7096_v27 }
 0x833   :  { %v2286_v54 = vpop.f32.mrf.mxu0  ;;  %v2327_v52 = vpop.f32.mrf.mxu1 }
 0x834   :  { %v2332_v29 = vmul.f32 0.5, %v2285_v35  ;;  %v2287_v31 = vadd.f32 %v2286_v54, %v7095_v44  ;;  %v2328_v53 = vadd.f32 %v2327_v52, %v7097_v45 }
 0x835   :  { %v2288_v20 = vpop.f32.mrf.mxu0  ;;  %v2329_v26 = vpop.f32.mrf.mxu1 }
 0x836   :  { %3275 = vtanh.f32 %v2332_v29  ;;  %v2336_v18 = vmul.f32 0.5, %v2287_v31  ;;  %v2341_v61 = vmul.f32 0.5, %v2328_v53  ;;  %v3500_v26 = vmov 0.0   ;;  %v2596_v53 = vld [vmem:[%s6225_s5 + $0x50] sm:$0xff] }
 0x837   :  { %v2289_v38 = vpop.f32.mrf.mxu0  ;;  %v2330_v34 = vpop.f32.mrf.mxu1  ;;  %2924 = vmatprep.subr.mxu0 %v3500_v26  ;;  %2959 = vmatprep.subr.mxu1 %v3500_v26 }
 0x838   :  { %3277 = vtanh.f32 %v2336_v18  ;;  %v2601_v18 = vld [vmem:[%s6225_s5 + $0x78] sm:$0xff]  ;;  %v2599_v38 = vld [vmem:[%s6225_s5 + $0x68] sm:$0xff]  ;;  %v2598_v34 = vld [vmem:[%s6225_s5 + $0x60] sm:$0xff] }
 0x839   :  { %3279 = vtanh.f32 %v2326_v59  ;;  %v2597_v59 = vld [vmem:[%s6225_s5 + $0x58] sm:$0xff] }
 0x83a   :  { %3281 = vtanh.f32 %v2341_v61  ;;  %v2595_v61 = vld [vmem:[%s6225_s5 + $0x48] sm:$0xff] }
 0x843   :  { %v3276_v60 = vpop.eup %3275 }
 0x844   :  { %v2334_v22 = vmul.f32 0.5, %v3276_v60  ;;  %v2594_v60 = vld [vmem:[%s6225_s5 + $0x40] sm:$0xff] }
 0x845   :  { %v3278_v16 = vpop.eup %3277 }
 0x846   :  { %v2335_v25 = vadd.f32 0.5, %v2334_v22  ;;  %v2338_v55 = vmul.f32 0.5, %v3278_v16  ;;  %v3280_v17 = vpop.eup %3279  ;;  %v2593_v22 = vld [vmem:[%s6225_s5 + $0x38] sm:$0xff]  ;;  %v2592_v16 = vld [vmem:[%s6225_s5 + $0x30] sm:$0xff] }
 0x847   :  { %v3282_v43 = vpop.eup %3281 }
 0x848   :  { %v2339_v58 = vadd.f32 0.5, %v2338_v55  ;;  %v2346_v15 = vmul.f32 %v3280_v17, %v2335_v25  ;;  %v2343_v36 = vmul.f32 0.5, %v3282_v43  ;;  %v2591_v25 = vld [vmem:[%s6225_s5 + $0x28] sm:$0xff]  ;;  %v2590_v55 = vld [vmem:[%s6225_s5 + $0x20] sm:$0xff]  ;;  %v2588_v17 = vld [vmem:[%s6225_s5 + $0x10] sm:$0xff] }
 0x849   :  { %v2689_v43 = vld [vmem:[%s6226_s6 + $0x50] sm:$0xff] }
 0x84a   :  { %v2345_v14 = vmul.f32 %v2339_v58, %v7098_v28  ;;  %v2344_v49 = vadd.f32 0.5, %v2343_v36  ;;  %v2589_v58 = vld [vmem:[%s6225_s5 + $0x18] sm:$0xff]  ;;  %v2587_v28 = vld [vmem:[%s6225_s5 + $0x8] sm:$0xff] }
 0x84c   :  { %v6055_v50 = vadd.f32 %v2346_v15, %v2345_v14  ;;  %v2586_v14 = vld [vmem:[%s6225_s5] sm:$0xff]  ;;  %v2694_v15 = vld [vmem:[%s6226_s6 + $0x78] sm:$0xff] }
 0x84e   :  { %3283 = vtanh.f32 %v6055_v50 }
 0x851   :  { %v2389_v62 = vpop.f32.mrf.mxu0  ;;  %v2430_v11 = vpop.f32.mrf.mxu1 }
 0x852   :  { %v2437_v1 = vadd.f32 %v2389_v62, %v7099_v23  ;;  %v2439_v39 = vadd.f32 %v2430_v11, %v7101_v37  ;;  %v2693_v62 = vld [vmem:[%s6226_s6 + $0x70] sm:$0xff]  ;;  %v2692_v11 = vld [vmem:[%s6226_s6 + $0x68] sm:$0xff]  ;;  %v2691_v23 = vld [vmem:[%s6226_s6 + $0x60] sm:$0xff] }
 0x853   :  { %v2391_v7 = vpop.f32.mrf.mxu0  ;;  %v2432_v3 = vpop.f32.mrf.mxu1 }
 0x854   :  { %v2441_v42 = vmul.f32 0.5, %v2437_v1  ;;  %v2438_v19 = vadd.f32 %v2391_v7, %v7100_v32  ;;  %v2440_v4 = vadd.f32 %v2432_v3, %v7102_v13  ;;  %v2690_v1 = vld [vmem:[%s6226_s6 + $0x58] sm:$0xff]  ;;  %v2688_v7 = vld [vmem:[%s6226_s6 + $0x48] sm:$0xff]  ;;  %v2687_v3 = vld [vmem:[%s6226_s6 + $0x40] sm:$0xff] }
 0x855   :  { %v2393_v24 = vpop.f32.mrf.mxu0  ;;  %v2434_v30 = vpop.f32.mrf.mxu1  ;;  %v2685_v32 = vld [vmem:[%s6226_s6 + $0x30] sm:$0xff] }
 0x856   :  { %3285 = vtanh.f32 %v2441_v42  ;;  %v2445_v40 = vmul.f32 0.5, %v2438_v19  ;;  %v2450_v56 = vmul.f32 0.5, %v2440_v4  ;;  %v2686_v42 = vld [vmem:[%s6226_s6 + $0x38] sm:$0xff]  ;;  %v2684_v19 = vld [vmem:[%s6226_s6 + $0x28] sm:$0xff]  ;;  %v2683_v24 = vld [vmem:[%s6226_s6 + $0x20] sm:$0xff] }
 0x857   :  { %v2394_v41 = vpop.f32.mrf.mxu0  ;;  %v2435_v47 = vpop.f32.mrf.mxu1  ;;  %v2682_v30 = vld [vmem:[%s6226_s6 + $0x18] sm:$0xff] }
 0x858   :  { %3287 = vtanh.f32 %v2445_v40 }
 0x859   :  { %3289 = vtanh.f32 %v2439_v39 }
 0x85a   :  { %3291 = vtanh.f32 %v2450_v56 }
 0x85b   :  { %v3284_v33 = vpop.eup %3283 }
 0x85c   :  { %v2349_v51 = vmul.f32 %v3284_v33, %v2344_v49 }
 0x85e   :  { %v2350_v6 = vpack.c.bf16 %v2349_v51, %v2349_v51 }
 0x860   :  { %2492 = vmatprep.mubr.bf16.mxu0 %v2350_v6  ;;  %2533 = vmatprep.mubr.bf16.mxu1 %v2350_v6 }
 0x863   :  { %v3286_v9 = vpop.eup %3285 }
 0x864   :  { %v2443_v63 = vmul.f32 0.5, %v3286_v9 }
 0x865   :  { %v3288_v46 = vpop.eup %3287 }
 0x866   :  { %v2444_v5 = vadd.f32 0.5, %v2443_v63  ;;  %v2447_v0 = vmul.f32 0.5, %v3288_v46  ;;  %v3290_v10 = vpop.eup %3289 }
 0x867   :  { %v3292_v35 = vpop.eup %3291 }
 0x868   :  { %v2448_v12 = vadd.f32 0.5, %v2447_v0  ;;  %v2455_v57 = vmul.f32 %v3290_v10, %v2444_v5  ;;  %v2452_v54 = vmul.f32 0.5, %v3292_v35 }
 0x86a   :  { %v2454_v2 = vmul.f32 %v2448_v12, %v5951_v8  ;;  %v2453_v52 = vadd.f32 0.5, %v2452_v54  ;;  %v2600_v8 = vld [vmem:[%s6225_s5 + $0x70] sm:$0xff] }
 0x86c   :  { %v2456_v21 = vadd.f32 %v2455_v57, %v2454_v2 }
 0x86e   :  { %3293 = vtanh.f32 %v2456_v21 }
 0x87b   :  { %v3294_v29 = vpop.eup %3293 }
 0x87c   :  { %v2458_v31 = vmul.f32 %v3294_v29, %v2453_v52  ;;  %v29_v29 = vld [vmem:[%s6224_s4 + $0x8] sm:$0x1] }
 0x87e   :  { %v2459_v20 = vpack.c.bf16 %v2458_v31, %v2458_v31 }
 0x880   :  { %2493 = vmatmul.mubr.bf16.vlgmr.msra.gmra.mxu0 %v2459_v20  ;;  %2534 = vmatmul.mubr.bf16.vlgmr.msra.gmra.mxu1 %v2459_v20 }
 0x881   :  { %2925 = vmatpush3.msra.mxu0 %v2601_v18  ;;  %2956 = vmatprep.mubr.msk.f32.mxu0 %vm3501_vm2, %v3500_v26 }
 0x882   :  { %2926 = vmatprep.subr.mxu0 %v3500_v26  ;;  %2991 = vmatprep.mubr.msk.f32.mxu1 %vm3501_vm2, %v3500_v26 }
 0x883   :  { %2927 = vmatpush3.msra.mxu0 %v2600_v8  ;;  %2960 = vmatpush3.msra.mxu1 %v2694_v15 }
 0x884   :  { %2928 = vmatprep.subr.mxu0 %v3500_v26  ;;  %2961 = vmatprep.subr.mxu1 %v3500_v26 }
 0x885   :  { %2929 = vmatpush3.msra.mxu0 %v2599_v38  ;;  %2962 = vmatpush3.msra.mxu1 %v2693_v62 }
 0x886   :  { %2930 = vmatprep.subr.mxu0 %v3500_v26  ;;  %2963 = vmatprep.subr.mxu1 %v3500_v26 }
 0x887   :  { %2931 = vmatpush3.msra.mxu0 %v2598_v34  ;;  %2964 = vmatpush3.msra.mxu1 %v2692_v11  ;;  %v2889_v11 = vld [vmem:[%s6224_s4 + $0xd] ss:$0 sm:$0xff] }
 0x888   :  { %2932 = vmatprep.subr.mxu0 %v3500_v26  ;;  %2965 = vmatprep.subr.mxu1 %v3500_v26 }
 0x889   :  { %2933 = vmatpush3.msra.mxu0 %v2597_v59  ;;  %2966 = vmatpush3.msra.mxu1 %v2691_v23  ;;  %v7103_v59 = vld [vmem:[#allocation58_spill] sm:$0xff] }
 0x88a   :  { %2934 = vmatprep.subr.mxu0 %v3500_v26  ;;  %2967 = vmatprep.subr.mxu1 %v3500_v26 }
 0x88b   :  { %2935 = vmatpush3.msra.mxu0 %v2596_v53  ;;  %2968 = vmatpush3.msra.mxu1 %v2690_v1 }
 0x88c   :  { %2936 = vmatprep.subr.mxu0 %v3500_v26  ;;  %2969 = vmatprep.subr.mxu1 %v3500_v26 }
 0x88d   :  { %2937 = vmatpush3.msra.mxu0 %v2595_v61  ;;  %2970 = vmatpush3.msra.mxu1 %v2689_v43 }
 0x88e   :  { %2938 = vmatprep.subr.mxu0 %v3500_v26  ;;  %2971 = vmatprep.subr.mxu1 %v3500_v26 }
 0x88f   :  { %2939 = vmatpush3.msra.mxu0 %v2594_v60  ;;  %2972 = vmatpush3.msra.mxu1 %v2688_v7  ;;  %v2887_v60 = vld [vmem:[%s6224_s4 + $0x9] ss:$0 sm:$0xff] }
 0x890   :  { %2940 = vmatprep.subr.mxu0 %v3500_v26  ;;  %2973 = vmatprep.subr.mxu1 %v3500_v26 }
 0x891   :  { %2941 = vmatpush3.msra.mxu0 %v2593_v22  ;;  %2974 = vmatpush3.msra.mxu1 %v2687_v3 }
 0x892   :  { %2942 = vmatprep.subr.mxu0 %v3500_v26  ;;  %2975 = vmatprep.subr.mxu1 %v3500_v26 }
 0x893   :  { %2943 = vmatpush3.msra.mxu0 %v2592_v16  ;;  %2976 = vmatpush3.msra.mxu1 %v2686_v42 }
 0x894   :  { %2944 = vmatprep.subr.mxu0 %v3500_v26  ;;  %2977 = vmatprep.subr.mxu1 %v3500_v26 }
 0x895   :  { %2945 = vmatpush3.msra.mxu0 %v2591_v25  ;;  %2978 = vmatpush3.msra.mxu1 %v2685_v32  ;;  %v2681_v25 = vld [vmem:[%s6226_s6 + $0x10] sm:$0xff] }
 0x896   :  { %2946 = vmatprep.subr.mxu0 %v3500_v26  ;;  %2979 = vmatprep.subr.mxu1 %v3500_v26 }
 0x897   :  { %2947 = vmatpush3.msra.mxu0 %v2590_v55  ;;  %2980 = vmatpush3.msra.mxu1 %v2684_v19  ;;  %v2680_v55 = vld [vmem:[%s6226_s6 + $0x8] sm:$0xff] }
 0x898   :  { %2948 = vmatprep.subr.mxu0 %v3500_v26  ;;  %2981 = vmatprep.subr.mxu1 %v3500_v26 }
 0x899   :  { %2949 = vmatpush3.msra.mxu0 %v2589_v58  ;;  %2982 = vmatpush3.msra.mxu1 %v2683_v24  ;;  %v2679_v58 = vld [vmem:[%s6226_s6] sm:$0xff] }
 0x89a   :  { %2950 = vmatprep.subr.mxu0 %v3500_v26  ;;  %2983 = vmatprep.subr.mxu1 %v3500_v26 }
 0x89b   :  { %2951 = vmatpush3.msra.mxu0 %v2588_v17  ;;  %2984 = vmatpush3.msra.mxu1 %v2682_v30  ;;  %v2888_v17 = vld [vmem:[%s6224_s4 + $0xc] ss:$0 sm:$0xff] }
 0x89c   :  { %2952 = vmatprep.subr.mxu0 %v3500_v26  ;;  %2985 = vmatprep.subr.mxu1 %v3500_v26 }
 0x89d   :  { %2953 = vmatpush3.msra.mxu0 %v2587_v28  ;;  %2986 = vmatpush3.msra.mxu1 %v2681_v25 }
 0x89e   :  { %2954 = vmatprep.subr.mxu0 %v3500_v26  ;;  %2987 = vmatprep.subr.mxu1 %v3500_v26 }
 0x89f   :  { %2955 = vmatpush3.msra.mxu0 %v2586_v14  ;;  %2988 = vmatpush3.msra.mxu1 %v2680_v55 }
 0x8a0   :  { %2989 = vmatprep.subr.mxu1 %v3500_v26 }
 0x8a1   :  { %2990 = vmatpush3.msra.mxu1 %v2679_v58 }
 0x940   :  { %v2494_v36 = vpop.f32.mrf.mxu0  ;;  %v2535_v37 = vpop.f32.mrf.mxu1 }
 0x941   :  { %v2495_v39 = vadd.f32 %v2494_v36, %v7094_v48  ;;  %v2536_v56 = vadd.f32 %v2535_v37, %v7096_v27 }
 0x942   :  { %v2496_v40 = vpop.f32.mrf.mxu0  ;;  %v2537_v41 = vpop.f32.mrf.mxu1 }
 0x943   :  { %v2542_v47 = vmul.f32 0.5, %v2495_v39  ;;  %v2497_v49 = vadd.f32 %v2496_v40, %v7095_v44  ;;  %v2538_v9 = vadd.f32 %v2537_v41, %v7097_v45  ;;  %v32_v44 = vld [vmem:[%s6224_s4 + $0xb] sm:$0x1] }
 0x944   :  { %v2498_v33 = vpop.f32.mrf.mxu0  ;;  %v2539_v51 = vpop.f32.mrf.mxu1  ;;  %v2562_v57 = vadd.f32 1e-05, %v32_v44 }
 0x945   :  { %3295 = vtanh.f32 %v2542_v47  ;;  %v2546_v13 = vmul.f32 0.5, %v2497_v49  ;;  %v2551_v63 = vmul.f32 0.5, %v2538_v9 }
 0x946   :  { %v2499_v4 = vpop.f32.mrf.mxu0  ;;  %v2540_v6 = vpop.f32.mrf.mxu1 }
 0x947   :  { %3297 = vtanh.f32 %v2546_v13 }
 0x948   :  { %3299 = vtanh.f32 %v2536_v56 }
 0x949   :  { %3301 = vtanh.f32 %v2551_v63 }
 0x94a   :  { %3303 = vrsqrt.f32 %v2562_v57 }
 0x952   :  { %v3296_v46 = vpop.eup %3295 }
 0x953   :  { %v2544_v48 = vmul.f32 0.5, %v3296_v46 }
 0x954   :  { %v3298_v5 = vpop.eup %3297 }
 0x955   :  { %v2545_v0 = vadd.f32 0.5, %v2544_v48  ;;  %v2548_v10 = vmul.f32 0.5, %v3298_v5  ;;  %v3300_v2 = vpop.eup %3299 }
 0x956   :  { %v3302_v45 = vpop.eup %3301 }
 0x957   :  { %v2549_v12 = vadd.f32 0.5, %v2548_v10  ;;  %v2556_v21 = vmul.f32 %v3300_v2, %v2545_v0  ;;  %v2553_v54 = vmul.f32 0.5, %v3302_v45  ;;  %v3304_v52 = vpop.eup %3303 }
 0x958   :  { %v2571_v8 = vmul.f32 %v3304_v52, %v29_v29 }
 0x959   :  { %v2555_v27 = vmul.f32 %v2549_v12, %v6055_v50  ;;  %v2554_v31 = vadd.f32 0.5, %v2553_v54  ;;  %v2886_v50 = vld [vmem:[%s6224_s4 + $0xa] ss:$0 sm:$0xff] }
 0x95a   :  { %v2576_v53 = vrot.slane %v2571_v8, %v7103_v59 }
 0x95b   :  { %v2557_v35 = vadd.f32 %v2556_v21, %v2555_v27 }
 0x95d   :  { %3305 = vtanh.f32 %v2557_v35 }
 0x96a   :  { %v3306_v20 = vpop.eup %3305 }
 0x96b   :  { %v2559_v18 = vmul.f32 %v3306_v20, %v2554_v31 }
 0x96d   :  { %v2560_v38 = vpack.c.bf16 %v2559_v18, %v2559_v18 }
 0x96f   :  { %v2561_v34 = vunpack.c.l.bf16 %v2560_v38 }
 0x971   :  { %v2570_v61 = vsub.f32 %v2561_v34, %v2886_v50 }
 0x973   :  { %v2578_v22 = vmul.f32 %v2576_v53, %v2570_v61 }
 0x975   :  { %v2585_v16 = vadd.f32 %v2887_v60, %v2578_v22 }
 0x977   :  { %2957 = vmatmul.mubr.f32.vlgmr.msra.gmra.mxu0 %v2585_v16 }
 0xa37   :  { %v2674_v28 = vpop.f32.mrf.mxu0 }
 0xa38   :  { %v2675_v14 = vadd.f32 %v2888_v17, %v2674_v28 }
 0xa39   :  { %v2958_v15 = vpop.f32.mrf.mxu0 }
 0xa3a   :  { %v2678_v62 = vmax.f32 %v2675_v14, 0.0 }
 0xa3c   :  { %2992 = vmatmul.mubr.f32.vlgmr.msra.gmra.mxu1 %v2678_v62 }
 0xafc   :  { %v2767_v23 = vpop.f32.mrf.mxu1 }
 0xafd   :  { %v2768_v1 = vadd.f32 %v2889_v11, %v2767_v23 }
 0xafe   :  { %v2993_v43 = vpop.f32.mrf.mxu1 }
 0xaff   :  { %2771 = vst [vmem:[%s6227_s7] sm:$0xff] %v2768_v1 }

</bundles_post_ra>
